<compile_context>
chip_gen: v5e
topology: v5e:2x2
jax: 0.10.0
libtpu: 0.0.40
codegen_flags: <defaults>
</compile_context>

<pallas_src>
import functools

import jax
import jax.numpy as jnp
from jax import lax
from jax.experimental import pallas as pl
from jax.experimental.pallas import tpu as pltpu


STEP_SIZE = 2.0 / 255.0      # config['step_size']
EPSILON = 8.0 / 255.0        # config['epsilon']
NUM_STEPS = 5                # config['num_steps']

_LANE = 128
_SUBLANE = 8


def _round_up(x, m):
    return ((x + m - 1) // m) * m


def _tile_params():
    """Generation-aware (max row tile, vmem limit)."""
    try:
        info = pltpu.get_tpu_info()
        vmem_cap = getattr(info, "vmem_capacity_bytes", 64 * 1024 * 1024)
    except Exception:  # pragma: no cover - conservative fallback
        vmem_cap = 64 * 1024 * 1024
    if vmem_cap >= 100 * 1024 * 1024:        # v5e / v6e: 128 MiB VMEM
        return 256, 96 * 1024 * 1024
    # v7x: 64 MiB per TC -> leave >= 12 MiB headroom for compiler scratch.
    return 128, 50 * 1024 * 1024


def _pgd_cosine_inverse_kernel(images_ref, plfeat_ref, delta0_ref,
                               w1_ref, b1_ref, w2_ref, b2_ref,
                               adv_ref,
                               *, step_size, epsilon, num_steps):
    x0 = images_ref[...]                     # (TB, Fp)  f32
    plv = plfeat_ref[...]                    # (TB, Dp)  f32
    w1 = w1_ref[...]                         # (Fp, Hp)  bf16
    w2 = w2_ref[...]                         # (Hp, Dp)  bf16
    b2 = b2_ref[...]                         # (1, Dp)   f32 (implicit broadcast)

    # ---- hoisted loop invariants ----
    inv_p = lax.rsqrt(jnp.maximum(
        jnp.sum(plv * plv, axis=-1, keepdims=True), 1e-16))
    plv_n = plv * inv_p                      # normalized pseudo-label feature

    # First-layer contribution of the clean images (does not change per step).
    h0 = jnp.dot(x0.astype(jnp.bfloat16), w1,
                 preferred_element_type=jnp.float32) + b1_ref[...]     # (TB, Hp)

    # Fused PGD projection bounds: clamp(delta,-eps,eps) then clamp(x0+delta,0,1)-x0
    # == clip(delta, max(-eps,-x0), min(eps,1-x0))  (intervals always intersect).
    lo = jnp.maximum(-epsilon, -x0)
    hi = jnp.minimum(epsilon, 1.0 - x0)

    # Half 0 (inner grid axis 1 == 0) ascends the loss, half 1 descends it.
    direction = jnp.where(pl.program_id(1) == 0, 1.0, -1.0).astype(jnp.float32)
    pos_step = direction * step_size
    neg_step = -pos_step

    nt = (((1,), (1,)), ((), ()))            # contract last dims (A @ B^T)

    def step(_, delta):
        # ---- model forward: f = relu((x0+delta) @ W1 + b1) @ W2 + b2 ----
        h_pre = h0 + jnp.dot(delta.astype(jnp.bfloat16), w1,
                             preferred_element_type=jnp.float32)
        h = jnp.maximum(h_pre, 0.0)
        f = jnp.dot(h.astype(jnp.bfloat16), w2,
                    preferred_element_type=jnp.float32) + b2

        # ---- loss = -mean_i cos(f_i, pl_i); grad w.r.t. f up to a positive
        #      per-row scale (sign of g_x is invariant to it) ----
        inv_f = lax.rsqrt(jnp.maximum(
            jnp.sum(f * f, axis=-1, keepdims=True), 1e-16))
        fn = f * inv_f
        cos = jnp.sum(fn * plv_n, axis=-1, keepdims=True)
        g_f = cos * fn - plv_n

        # ---- analytic backward to the input (NT dots on the MXU) ----
        g_h = lax.dot_general(g_f.astype(jnp.bfloat16), w2, nt,
                              preferred_element_type=jnp.float32)
        g_h = jnp.where(h_pre > 0.0, g_h, 0.0)
        g_x = lax.dot_general(g_h.astype(jnp.bfloat16), w1, nt,
                              preferred_element_type=jnp.float32)

        # ---- select-based signed step (sign(0) -> 0 preserved) + fused clip ----
        upd = jnp.where(g_x > 0.0, pos_step,
                        jnp.where(g_x < 0.0, neg_step, 0.0))
        return jnp.clip(delta + upd, lo, hi)

    # 5 fixed steps: unroll for LLO scheduler visibility.  If a bundle dump on
    # v7x shows spills at large TB, drop unroll to 2 rather than shrinking TB.
    delta = lax.fori_loop(0, num_steps, step, delta0_ref[...], unroll=True)
    adv_ref[...] = x0 + delta


def attack_pgd_cosine_inverse(images, pl_feat, params, delta0,
                              step_size=STEP_SIZE, epsilon=EPSILON,
                              num_steps=NUM_STEPS):
    """images: (n, C, H, W);  pl_feat: (2n, D);  delta0: (2n, C, H, W)."""
    n, C, H, W = images.shape
    F = C * H * W
    w1, b1, w2, b2 = params
    HID = w1.shape[1]
    D = w2.shape[1]

    # Lane-dense padded dims (exact: padded weight rows/cols, biases and
    # pl_feat columns are zero, so h, f, norms and cos are unchanged).
    Fp = _round_up(F, _LANE)
    Hp = _round_up(HID, _LANE)
    Dp = _round_up(D, _LANE)

    tb_max, vmem_limit = _tile_params()
    TB = min(tb_max, _round_up(n, _SUBLANE))
    n_pad = _round_up(n, TB)
    num_tiles = n_pad // TB

    x = images.reshape(n, F).astype(jnp.float32)
    x = jnp.pad(x, ((0, n_pad - n), (0, Fp - F)))                      # (n_pad, Fp)

    plf = jnp.pad(pl_feat.astype(jnp.float32), ((0, 0), (0, Dp - D)))
    plf = plf.reshape(2, n, Dp)
    plf = jnp.pad(plf, ((0, 0), (0, n_pad - n), (0, 0)))               # (2, n_pad, Dp)

    d0 = jnp.pad(delta0.reshape(2 * n, F).astype(jnp.float32),
                 ((0, 0), (0, Fp - F))).reshape(2, n, Fp)
    d0 = jnp.pad(d0, ((0, 0), (0, n_pad - n), (0, 0)))                 # (2, n_pad, Fp)

    w1p = jnp.pad(w1.astype(jnp.float32),
                  ((0, Fp - F), (0, Hp - HID))).astype(jnp.bfloat16)   # (Fp, Hp)
    w2p = jnp.pad(w2.astype(jnp.float32),
                  ((0, Hp - HID), (0, Dp - D))).astype(jnp.bfloat16)   # (Hp, Dp)
    b1p = jnp.pad(b1.astype(jnp.float32).reshape(1, -1),
                  ((0, 0), (0, Hp - HID)))                             # (1, Hp)
    b2p = jnp.pad(b2.astype(jnp.float32).reshape(1, -1),
                  ((0, 0), (0, Dp - D)))                               # (1, Dp)

    kernel = functools.partial(_pgd_cosine_inverse_kernel,
                               step_size=step_size, epsilon=epsilon,
                               num_steps=num_steps)

    single = pl.Buffered(1)  # constant block index -> no second pipeline buffer

    adv = pl.pallas_call(
        kernel,
        out_shape=jax.ShapeDtypeStruct((2, n_pad, Fp), jnp.float32),
        grid_spec=pltpu.PrefetchScalarGridSpec(
            num_scalar_prefetch=0,
            grid=(num_tiles, 2),                                       # half axis innermost
            in_specs=[
                # images: index ignores the half axis -> re-DMA skipped between halves
                pl.BlockSpec((TB, Fp), lambda i, h: (i, 0)),
                pl.BlockSpec((None, TB, Dp), lambda i, h: (h, i, 0)),  # pl feats
                pl.BlockSpec((None, TB, Fp), lambda i, h: (h, i, 0)),  # delta0
                pl.BlockSpec((Fp, Hp), lambda i, h: (0, 0), pipeline_mode=single),
                pl.BlockSpec((1, Hp), lambda i, h: (0, 0), pipeline_mode=single),
                pl.BlockSpec((Hp, Dp), lambda i, h: (0, 0), pipeline_mode=single),
                pl.BlockSpec((1, Dp), lambda i, h: (0, 0), pipeline_mode=single),
            ],
            out_specs=pl.BlockSpec((None, TB, Fp), lambda i, h: (h, i, 0)),
        ),
        input_output_aliases={2: 0},     # output reuses delta0's HBM buffer
        compiler_params=pltpu.CompilerParams(
            dimension_semantics=("parallel", "parallel"),
            vmem_limit_bytes=vmem_limit,
        ),
    )(x, plf, d0, w1p, b1p, w2p, b2p)

    adv = adv[:, :n, :F]
    adv1 = adv[0].reshape(n, C, H, W)
    adv2 = adv[1].reshape(n, C, H, W)
    return adv1, adv2


if __name__ == "__main__":
    key = jax.random.PRNGKey(0)
    n, C, H, W = 2, 4, 16, 16
    F = C * H * W
    HID, D = 32, 16

    k1, k2, k3, k4, k5 = jax.random.split(key, 5)
    images = jax.random.uniform(k1, (n, C, H, W), jnp.float32)          # in [0, 1)
    pl_feat = jax.random.normal(k2, (2 * n, D), jnp.float32)            # pseudo-label feats
    w1 = jax.random.normal(k3, (F, HID), jnp.float32) * 0.05
    b1 = jnp.zeros((HID,), jnp.float32)
    w2 = jax.random.normal(k4, (HID, D), jnp.float32) * 0.2
    b2 = jnp.zeros((D,), jnp.float32)
    # delta = rand_like(imagesr) * 2*eps - eps  (uniform in [-eps, eps))
    delta0 = (jax.random.uniform(k5, (2 * n, C, H, W), jnp.float32)
              * 2.0 * EPSILON - EPSILON)

    adv1, adv2 = attack_pgd_cosine_inverse(images, pl_feat,
                                           (w1, b1, w2, b2), delta0)
    jax.block_until_ready((adv1, adv2))

    assert adv1.shape == (n, C, H, W) and adv2.shape == (n, C, H, W)
    assert bool(jnp.all(jnp.isfinite(adv1))) and bool(jnp.all(jnp.isfinite(adv2)))
    assert bool(jnp.all((adv1 >= 0.0) & (adv1 <= 1.0)))
    assert bool(jnp.all((adv2 >= 0.0) & (adv2 <= 1.0)))
    assert bool(jnp.all(jnp.abs(adv1 - images) <= EPSILON + 1e-6))
    assert bool(jnp.all(jnp.abs(adv2 - images) <= EPSILON + 1e-6))
    print("KERNEL_OK")
</pallas_src>

<mosaic_0001>
module attributes {stable_mosaic.version = 11 : i64} {
  func.func @_pgd_cosine_inverse_kernel(%arg0: i32, %arg1: i32, %arg2: memref<8x1024xf32, #tpu.memory_space<vmem>>, %arg3: memref<1x8x128xf32, #tpu.memory_space<vmem>>, %arg4: memref<1x8x1024xf32, #tpu.memory_space<vmem>>, %arg5: memref<1024x128xbf16, #tpu.memory_space<vmem>>, %arg6: memref<1x128xf32, #tpu.memory_space<vmem>>, %arg7: memref<128x128xbf16, #tpu.memory_space<vmem>>, %arg8: memref<1x128xf32, #tpu.memory_space<vmem>>, %arg9: memref<1x8x1024xf32, #tpu.memory_space<vmem>>) attributes {dimension_semantics = [#tpu.dimension_semantics<parallel>, #tpu.dimension_semantics<parallel>], iteration_bounds = array<i64: 1, 2>, scalar_prefetch = 0 : i64, scratch_operands = 0 : i64, tpu.core_type = #tpu.core_type<tc>, window_params = [{transform_indices = @transform_0, window_bounds = array<i64: 8, 1024>}, {transform_indices = @transform_1, window_bounds = array<i64: 1, 8, 128>}, {transform_indices = @transform_2, window_bounds = array<i64: 1, 8, 1024>}, {pipeline_mode = #tpu.pipeline_mode<synchronous>, transform_indices = @transform_3, window_bounds = array<i64: 1024, 128>}, {pipeline_mode = #tpu.pipeline_mode<synchronous>, transform_indices = @transform_4, window_bounds = array<i64: 1, 128>}, {pipeline_mode = #tpu.pipeline_mode<synchronous>, transform_indices = @transform_5, window_bounds = array<i64: 128, 128>}, {pipeline_mode = #tpu.pipeline_mode<synchronous>, transform_indices = @transform_6, window_bounds = array<i64: 1, 128>}, {transform_indices = @transform_7, window_bounds = array<i64: 1, 8, 1024>}]} {
    %c0 = arith.constant 0 : index
    %c0_0 = arith.constant 0 : index
    %0 = vector.load %arg2[%c0, %c0_0] : memref<8x1024xf32, #tpu.memory_space<vmem>>, vector<8x1024xf32>
    %c0_1 = arith.constant 0 : index
    %c0_2 = arith.constant 0 : index
    %c0_3 = arith.constant 0 : index
    %1 = vector.load %arg3[%c0_1, %c0_2, %c0_3] : memref<1x8x128xf32, #tpu.memory_space<vmem>>, vector<1x8x128xf32>
    %2 = vector.shape_cast %1 : vector<1x8x128xf32> to vector<8x128xf32>
    %c0_4 = arith.constant 0 : index
    %c0_5 = arith.constant 0 : index
    %3 = vector.load %arg5[%c0_4, %c0_5] : memref<1024x128xbf16, #tpu.memory_space<vmem>>, vector<1024x128xbf16>
    %c0_6 = arith.constant 0 : index
    %c0_7 = arith.constant 0 : index
    %4 = vector.load %arg7[%c0_6, %c0_7] : memref<128x128xbf16, #tpu.memory_space<vmem>>, vector<128x128xbf16>
    %c0_8 = arith.constant 0 : index
    %c0_9 = arith.constant 0 : index
    %5 = vector.load %arg8[%c0_8, %c0_9] : memref<1x128xf32, #tpu.memory_space<vmem>>, vector<1x128xf32>
    %6 = arith.mulf %2, %2 : vector<8x128xf32>
    %cst = arith.constant dense<0.000000e+00> : vector<8xf32>
    %7 = vector.multi_reduction <add>, %6, %cst [1] : vector<8x128xf32> to vector<8xf32>
    %8 = vector.shape_cast %7 : vector<8xf32> to vector<8x1xf32>
    %cst_10 = arith.constant 1.000000e-16 : f32
    %9 = vector.broadcast %cst_10 : f32 to vector<8x1xf32>
    %10 = arith.maximumf %8, %9 : vector<8x1xf32>
    %11 = math.rsqrt %10 : vector<8x1xf32>
    %12 = vector.broadcast %11 : vector<8x1xf32> to vector<8x128xf32>
    %13 = arith.mulf %2, %12 : vector<8x128xf32>
    %14 = arith.truncf %0 : vector<8x1024xf32> to vector<8x1024xbf16>
    %cst_11 = arith.constant dense<0.000000e+00> : vector<8x128xf32>
    %15 = tpu.matmul %14, %3, %cst_11 {dimension_numbers = #tpu.dot_dimension_numbers<[1], [0], [0], [1], [0, 0, 1, 1], [], []>} : vector<8x1024xbf16>, vector<1024x128xbf16>, vector<8x128xf32> -> vector<8x128xf32>
    %c0_12 = arith.constant 0 : index
    %c0_13 = arith.constant 0 : index
    %16 = vector.load %arg6[%c0_12, %c0_13] : memref<1x128xf32, #tpu.memory_space<vmem>>, vector<1x128xf32>
    %17 = vector.broadcast %16 : vector<1x128xf32> to vector<8x128xf32>
    %18 = arith.addf %15, %17 : vector<8x128xf32>
    %cst_14 = arith.constant 0.000000e+00 : f32
    %19 = vector.broadcast %cst_14 : f32 to vector<8x1024xf32>
    %20 = arith.subf %19, %0 : vector<8x1024xf32>
    %cst_15 = arith.constant -0.0313725509 : f32
    %21 = vector.broadcast %cst_15 : f32 to vector<8x1024xf32>
    %22 = arith.maximumf %21, %20 : vector<8x1024xf32>
    %cst_16 = arith.constant 1.000000e+00 : f32
    %23 = vector.broadcast %cst_16 : f32 to vector<8x1024xf32>
    %24 = arith.subf %23, %0 : vector<8x1024xf32>
    %cst_17 = arith.constant 0.0313725509 : f32
    %25 = vector.broadcast %cst_17 : f32 to vector<8x1024xf32>
    %26 = arith.minimumf %25, %24 : vector<8x1024xf32>
    %c0_i32 = arith.constant 0 : i32
    %27 = arith.cmpi eq, %arg1, %c0_i32 : i32
    %cst_18 = arith.constant 1.000000e+00 : f32
    %cst_19 = arith.constant -1.000000e+00 : f32
    %28 = arith.select %27, %cst_18, %cst_19 : f32
    %cst_20 = arith.constant 0.00784313772 : f32
    %29 = arith.mulf %28, %cst_20 : f32
    %cst_21 = arith.constant 0.000000e+00 : f32
    %30 = arith.subf %cst_21, %29 : f32
    %c0_22 = arith.constant 0 : index
    %c0_23 = arith.constant 0 : index
    %c0_24 = arith.constant 0 : index
    %31 = vector.load %arg4[%c0_22, %c0_23, %c0_24] : memref<1x8x1024xf32, #tpu.memory_space<vmem>>, vector<1x8x1024xf32>
    %32 = vector.shape_cast %31 : vector<1x8x1024xf32> to vector<8x1024xf32>
    %c0_i32_25 = arith.constant 0 : i32
    %33 = arith.truncf %32 : vector<8x1024xf32> to vector<8x1024xbf16>
    %cst_26 = arith.constant dense<0.000000e+00> : vector<8x128xf32>
    %34 = tpu.matmul %33, %3, %cst_26 {dimension_numbers = #tpu.dot_dimension_numbers<[1], [0], [0], [1], [0, 0, 1, 1], [], []>} : vector<8x1024xbf16>, vector<1024x128xbf16>, vector<8x128xf32> -> vector<8x128xf32>
    %35 = arith.addf %18, %34 : vector<8x128xf32>
    %cst_27 = arith.constant 0.000000e+00 : f32
    %36 = vector.broadcast %cst_27 : f32 to vector<8x128xf32>
    %37 = arith.maximumf %35, %36 : vector<8x128xf32>
    %38 = arith.truncf %37 : vector<8x128xf32> to vector<8x128xbf16>
    %cst_28 = arith.constant dense<0.000000e+00> : vector<8x128xf32>
    %39 = tpu.matmul %38, %4, %cst_28 {dimension_numbers = #tpu.dot_dimension_numbers<[1], [0], [0], [1], [0, 0, 1, 1], [], []>} : vector<8x128xbf16>, vector<128x128xbf16>, vector<8x128xf32> -> vector<8x128xf32>
    %40 = vector.broadcast %5 : vector<1x128xf32> to vector<8x128xf32>
    %41 = arith.addf %39, %40 : vector<8x128xf32>
    %42 = arith.mulf %41, %41 : vector<8x128xf32>
    %cst_29 = arith.constant dense<0.000000e+00> : vector<8xf32>
    %43 = vector.multi_reduction <add>, %42, %cst_29 [1] : vector<8x128xf32> to vector<8xf32>
    %44 = vector.shape_cast %43 : vector<8xf32> to vector<8x1xf32>
    %cst_30 = arith.constant 1.000000e-16 : f32
    %45 = vector.broadcast %cst_30 : f32 to vector<8x1xf32>
    %46 = arith.maximumf %44, %45 : vector<8x1xf32>
    %47 = math.rsqrt %46 : vector<8x1xf32>
    %48 = vector.broadcast %47 : vector<8x1xf32> to vector<8x128xf32>
    %49 = arith.mulf %41, %48 : vector<8x128xf32>
    %50 = arith.mulf %49, %13 : vector<8x128xf32>
    %cst_31 = arith.constant dense<0.000000e+00> : vector<8xf32>
    %51 = vector.multi_reduction <add>, %50, %cst_31 [1] : vector<8x128xf32> to vector<8xf32>
    %52 = vector.shape_cast %51 : vector<8xf32> to vector<8x1xf32>
    %53 = vector.broadcast %52 : vector<8x1xf32> to vector<8x128xf32>
    %54 = arith.mulf %53, %49 : vector<8x128xf32>
    %55 = arith.subf %54, %13 : vector<8x128xf32>
    %56 = arith.truncf %55 : vector<8x128xf32> to vector<8x128xbf16>
    %cst_32 = arith.constant dense<0.000000e+00> : vector<8x128xf32>
    %57 = tpu.matmul %56, %4, %cst_32 {dimension_numbers = #tpu.dot_dimension_numbers<[1], [1], [0], [0], [0, 0, 1, 0], [], []>} : vector<8x128xbf16>, vector<128x128xbf16>, vector<8x128xf32> -> vector<8x128xf32>
    %cst_33 = arith.constant 0.000000e+00 : f32
    %58 = vector.broadcast %cst_33 : f32 to vector<8x128xf32>
    %59 = arith.cmpf ogt, %35, %58 : vector<8x128xf32>
    %cst_34 = arith.constant 0.000000e+00 : f32
    %60 = vector.broadcast %cst_34 : f32 to vector<8x128xf32>
    %61 = arith.select %59, %57, %60 : vector<8x128xi1>, vector<8x128xf32>
    %62 = arith.truncf %61 : vector<8x128xf32> to vector<8x128xbf16>
    %cst_35 = arith.constant dense<0.000000e+00> : vector<8x1024xf32>
    %63 = tpu.matmul %62, %3, %cst_35 {dimension_numbers = #tpu.dot_dimension_numbers<[1], [1], [0], [0], [0, 0, 1, 0], [], []>} : vector<8x128xbf16>, vector<1024x128xbf16>, vector<8x1024xf32> -> vector<8x1024xf32>
    %cst_36 = arith.constant 0.000000e+00 : f32
    %64 = vector.broadcast %cst_36 : f32 to vector<8x1024xf32>
    %65 = arith.cmpf ogt, %63, %64 : vector<8x1024xf32>
    %cst_37 = arith.constant 0.000000e+00 : f32
    %66 = vector.broadcast %cst_37 : f32 to vector<8x1024xf32>
    %67 = arith.cmpf olt, %63, %66 : vector<8x1024xf32>
    %cst_38 = arith.constant 0.000000e+00 : f32
    %68 = vector.broadcast %30 : f32 to vector<8x1024xf32>
    %69 = vector.broadcast %cst_38 : f32 to vector<8x1024xf32>
    %70 = arith.select %67, %68, %69 : vector<8x1024xi1>, vector<8x1024xf32>
    %71 = vector.broadcast %29 : f32 to vector<8x1024xf32>
    %72 = arith.select %65, %71, %70 : vector<8x1024xi1>, vector<8x1024xf32>
    %73 = arith.addf %32, %72 : vector<8x1024xf32>
    %74 = arith.maximumf %22, %73 : vector<8x1024xf32>
    %75 = arith.minimumf %26, %74 : vector<8x1024xf32>
    %c1_i32 = arith.constant 1 : i32
    %76 = arith.truncf %75 : vector<8x1024xf32> to vector<8x1024xbf16>
    %cst_39 = arith.constant dense<0.000000e+00> : vector<8x128xf32>
    %77 = tpu.matmul %76, %3, %cst_39 {dimension_numbers = #tpu.dot_dimension_numbers<[1], [0], [0], [1], [0, 0, 1, 1], [], []>} : vector<8x1024xbf16>, vector<1024x128xbf16>, vector<8x128xf32> -> vector<8x128xf32>
    %78 = arith.addf %18, %77 : vector<8x128xf32>
    %cst_40 = arith.constant 0.000000e+00 : f32
    %79 = vector.broadcast %cst_40 : f32 to vector<8x128xf32>
    %80 = arith.maximumf %78, %79 : vector<8x128xf32>
    %81 = arith.truncf %80 : vector<8x128xf32> to vector<8x128xbf16>
    %cst_41 = arith.constant dense<0.000000e+00> : vector<8x128xf32>
    %82 = tpu.matmul %81, %4, %cst_41 {dimension_numbers = #tpu.dot_dimension_numbers<[1], [0], [0], [1], [0, 0, 1, 1], [], []>} : vector<8x128xbf16>, vector<128x128xbf16>, vector<8x128xf32> -> vector<8x128xf32>
    %83 = vector.broadcast %5 : vector<1x128xf32> to vector<8x128xf32>
    %84 = arith.addf %82, %83 : vector<8x128xf32>
    %85 = arith.mulf %84, %84 : vector<8x128xf32>
    %cst_42 = arith.constant dense<0.000000e+00> : vector<8xf32>
    %86 = vector.multi_reduction <add>, %85, %cst_42 [1] : vector<8x128xf32> to vector<8xf32>
    %87 = vector.shape_cast %86 : vector<8xf32> to vector<8x1xf32>
    %cst_43 = arith.constant 1.000000e-16 : f32
    %88 = vector.broadcast %cst_43 : f32 to vector<8x1xf32>
    %89 = arith.maximumf %87, %88 : vector<8x1xf32>
    %90 = math.rsqrt %89 : vector<8x1xf32>
    %91 = vector.broadcast %90 : vector<8x1xf32> to vector<8x128xf32>
    %92 = arith.mulf %84, %91 : vector<8x128xf32>
    %93 = arith.mulf %92, %13 : vector<8x128xf32>
    %cst_44 = arith.constant dense<0.000000e+00> : vector<8xf32>
    %94 = vector.multi_reduction <add>, %93, %cst_44 [1] : vector<8x128xf32> to vector<8xf32>
    %95 = vector.shape_cast %94 : vector<8xf32> to vector<8x1xf32>
    %96 = vector.broadcast %95 : vector<8x1xf32> to vector<8x128xf32>
    %97 = arith.mulf %96, %92 : vector<8x128xf32>
    %98 = arith.subf %97, %13 : vector<8x128xf32>
    %99 = arith.truncf %98 : vector<8x128xf32> to vector<8x128xbf16>
    %cst_45 = arith.constant dense<0.000000e+00> : vector<8x128xf32>
    %100 = tpu.matmul %99, %4, %cst_45 {dimension_numbers = #tpu.dot_dimension_numbers<[1], [1], [0], [0], [0, 0, 1, 0], [], []>} : vector<8x128xbf16>, vector<128x128xbf16>, vector<8x128xf32> -> vector<8x128xf32>
    %cst_46 = arith.constant 0.000000e+00 : f32
    %101 = vector.broadcast %cst_46 : f32 to vector<8x128xf32>
    %102 = arith.cmpf ogt, %78, %101 : vector<8x128xf32>
    %cst_47 = arith.constant 0.000000e+00 : f32
    %103 = vector.broadcast %cst_47 : f32 to vector<8x128xf32>
    %104 = arith.select %102, %100, %103 : vector<8x128xi1>, vector<8x128xf32>
    %105 = arith.truncf %104 : vector<8x128xf32> to vector<8x128xbf16>
    %cst_48 = arith.constant dense<0.000000e+00> : vector<8x1024xf32>
    %106 = tpu.matmul %105, %3, %cst_48 {dimension_numbers = #tpu.dot_dimension_numbers<[1], [1], [0], [0], [0, 0, 1, 0], [], []>} : vector<8x128xbf16>, vector<1024x128xbf16>, vector<8x1024xf32> -> vector<8x1024xf32>
    %cst_49 = arith.constant 0.000000e+00 : f32
    %107 = vector.broadcast %cst_49 : f32 to vector<8x1024xf32>
    %108 = arith.cmpf ogt, %106, %107 : vector<8x1024xf32>
    %cst_50 = arith.constant 0.000000e+00 : f32
    %109 = vector.broadcast %cst_50 : f32 to vector<8x1024xf32>
    %110 = arith.cmpf olt, %106, %109 : vector<8x1024xf32>
    %cst_51 = arith.constant 0.000000e+00 : f32
    %111 = vector.broadcast %30 : f32 to vector<8x1024xf32>
    %112 = vector.broadcast %cst_51 : f32 to vector<8x1024xf32>
    %113 = arith.select %110, %111, %112 : vector<8x1024xi1>, vector<8x1024xf32>
    %114 = vector.broadcast %29 : f32 to vector<8x1024xf32>
    %115 = arith.select %108, %114, %113 : vector<8x1024xi1>, vector<8x1024xf32>
    %116 = arith.addf %75, %115 : vector<8x1024xf32>
    %117 = arith.maximumf %22, %116 : vector<8x1024xf32>
    %118 = arith.minimumf %26, %117 : vector<8x1024xf32>
    %c2_i32 = arith.constant 2 : i32
    %119 = arith.truncf %118 : vector<8x1024xf32> to vector<8x1024xbf16>
    %cst_52 = arith.constant dense<0.000000e+00> : vector<8x128xf32>
    %120 = tpu.matmul %119, %3, %cst_52 {dimension_numbers = #tpu.dot_dimension_numbers<[1], [0], [0], [1], [0, 0, 1, 1], [], []>} : vector<8x1024xbf16>, vector<1024x128xbf16>, vector<8x128xf32> -> vector<8x128xf32>
    %121 = arith.addf %18, %120 : vector<8x128xf32>
    %cst_53 = arith.constant 0.000000e+00 : f32
    %122 = vector.broadcast %cst_53 : f32 to vector<8x128xf32>
    %123 = arith.maximumf %121, %122 : vector<8x128xf32>
    %124 = arith.truncf %123 : vector<8x128xf32> to vector<8x128xbf16>
    %cst_54 = arith.constant dense<0.000000e+00> : vector<8x128xf32>
    %125 = tpu.matmul %124, %4, %cst_54 {dimension_numbers = #tpu.dot_dimension_numbers<[1], [0], [0], [1], [0, 0, 1, 1], [], []>} : vector<8x128xbf16>, vector<128x128xbf16>, vector<8x128xf32> -> vector<8x128xf32>
    %126 = vector.broadcast %5 : vector<1x128xf32> to vector<8x128xf32>
    %127 = arith.addf %125, %126 : vector<8x128xf32>
    %128 = arith.mulf %127, %127 : vector<8x128xf32>
    %cst_55 = arith.constant dense<0.000000e+00> : vector<8xf32>
    %129 = vector.multi_reduction <add>, %128, %cst_55 [1] : vector<8x128xf32> to vector<8xf32>
    %130 = vector.shape_cast %129 : vector<8xf32> to vector<8x1xf32>
    %cst_56 = arith.constant 1.000000e-16 : f32
    %131 = vector.broadcast %cst_56 : f32 to vector<8x1xf32>
    %132 = arith.maximumf %130, %131 : vector<8x1xf32>
    %133 = math.rsqrt %132 : vector<8x1xf32>
    %134 = vector.broadcast %133 : vector<8x1xf32> to vector<8x128xf32>
    %135 = arith.mulf %127, %134 : vector<8x128xf32>
    %136 = arith.mulf %135, %13 : vector<8x128xf32>
    %cst_57 = arith.constant dense<0.000000e+00> : vector<8xf32>
    %137 = vector.multi_reduction <add>, %136, %cst_57 [1] : vector<8x128xf32> to vector<8xf32>
    %138 = vector.shape_cast %137 : vector<8xf32> to vector<8x1xf32>
    %139 = vector.broadcast %138 : vector<8x1xf32> to vector<8x128xf32>
    %140 = arith.mulf %139, %135 : vector<8x128xf32>
    %141 = arith.subf %140, %13 : vector<8x128xf32>
    %142 = arith.truncf %141 : vector<8x128xf32> to vector<8x128xbf16>
    %cst_58 = arith.constant dense<0.000000e+00> : vector<8x128xf32>
    %143 = tpu.matmul %142, %4, %cst_58 {dimension_numbers = #tpu.dot_dimension_numbers<[1], [1], [0], [0], [0, 0, 1, 0], [], []>} : vector<8x128xbf16>, vector<128x128xbf16>, vector<8x128xf32> -> vector<8x128xf32>
    %cst_59 = arith.constant 0.000000e+00 : f32
    %144 = vector.broadcast %cst_59 : f32 to vector<8x128xf32>
    %145 = arith.cmpf ogt, %121, %144 : vector<8x128xf32>
    %cst_60 = arith.constant 0.000000e+00 : f32
    %146 = vector.broadcast %cst_60 : f32 to vector<8x128xf32>
    %147 = arith.select %145, %143, %146 : vector<8x128xi1>, vector<8x128xf32>
    %148 = arith.truncf %147 : vector<8x128xf32> to vector<8x128xbf16>
    %cst_61 = arith.constant dense<0.000000e+00> : vector<8x1024xf32>
    %149 = tpu.matmul %148, %3, %cst_61 {dimension_numbers = #tpu.dot_dimension_numbers<[1], [1], [0], [0], [0, 0, 1, 0], [], []>} : vector<8x128xbf16>, vector<1024x128xbf16>, vector<8x1024xf32> -> vector<8x1024xf32>
    %cst_62 = arith.constant 0.000000e+00 : f32
    %150 = vector.broadcast %cst_62 : f32 to vector<8x1024xf32>
    %151 = arith.cmpf ogt, %149, %150 : vector<8x1024xf32>
    %cst_63 = arith.constant 0.000000e+00 : f32
    %152 = vector.broadcast %cst_63 : f32 to vector<8x1024xf32>
    %153 = arith.cmpf olt, %149, %152 : vector<8x1024xf32>
    %cst_64 = arith.constant 0.000000e+00 : f32
    %154 = vector.broadcast %30 : f32 to vector<8x1024xf32>
    %155 = vector.broadcast %cst_64 : f32 to vector<8x1024xf32>
    %156 = arith.select %153, %154, %155 : vector<8x1024xi1>, vector<8x1024xf32>
    %157 = vector.broadcast %29 : f32 to vector<8x1024xf32>
    %158 = arith.select %151, %157, %156 : vector<8x1024xi1>, vector<8x1024xf32>
    %159 = arith.addf %118, %158 : vector<8x1024xf32>
    %160 = arith.maximumf %22, %159 : vector<8x1024xf32>
    %161 = arith.minimumf %26, %160 : vector<8x1024xf32>
    %c3_i32 = arith.constant 3 : i32
    %162 = arith.truncf %161 : vector<8x1024xf32> to vector<8x1024xbf16>
    %cst_65 = arith.constant dense<0.000000e+00> : vector<8x128xf32>
    %163 = tpu.matmul %162, %3, %cst_65 {dimension_numbers = #tpu.dot_dimension_numbers<[1], [0], [0], [1], [0, 0, 1, 1], [], []>} : vector<8x1024xbf16>, vector<1024x128xbf16>, vector<8x128xf32> -> vector<8x128xf32>
    %164 = arith.addf %18, %163 : vector<8x128xf32>
    %cst_66 = arith.constant 0.000000e+00 : f32
    %165 = vector.broadcast %cst_66 : f32 to vector<8x128xf32>
    %166 = arith.maximumf %164, %165 : vector<8x128xf32>
    %167 = arith.truncf %166 : vector<8x128xf32> to vector<8x128xbf16>
    %cst_67 = arith.constant dense<0.000000e+00> : vector<8x128xf32>
    %168 = tpu.matmul %167, %4, %cst_67 {dimension_numbers = #tpu.dot_dimension_numbers<[1], [0], [0], [1], [0, 0, 1, 1], [], []>} : vector<8x128xbf16>, vector<128x128xbf16>, vector<8x128xf32> -> vector<8x128xf32>
    %169 = vector.broadcast %5 : vector<1x128xf32> to vector<8x128xf32>
    %170 = arith.addf %168, %169 : vector<8x128xf32>
    %171 = arith.mulf %170, %170 : vector<8x128xf32>
    %cst_68 = arith.constant dense<0.000000e+00> : vector<8xf32>
    %172 = vector.multi_reduction <add>, %171, %cst_68 [1] : vector<8x128xf32> to vector<8xf32>
    %173 = vector.shape_cast %172 : vector<8xf32> to vector<8x1xf32>
    %cst_69 = arith.constant 1.000000e-16 : f32
    %174 = vector.broadcast %cst_69 : f32 to vector<8x1xf32>
    %175 = arith.maximumf %173, %174 : vector<8x1xf32>
    %176 = math.rsqrt %175 : vector<8x1xf32>
    %177 = vector.broadcast %176 : vector<8x1xf32> to vector<8x128xf32>
    %178 = arith.mulf %170, %177 : vector<8x128xf32>
    %179 = arith.mulf %178, %13 : vector<8x128xf32>
    %cst_70 = arith.constant dense<0.000000e+00> : vector<8xf32>
    %180 = vector.multi_reduction <add>, %179, %cst_70 [1] : vector<8x128xf32> to vector<8xf32>
    %181 = vector.shape_cast %180 : vector<8xf32> to vector<8x1xf32>
    %182 = vector.broadcast %181 : vector<8x1xf32> to vector<8x128xf32>
    %183 = arith.mulf %182, %178 : vector<8x128xf32>
    %184 = arith.subf %183, %13 : vector<8x128xf32>
    %185 = arith.truncf %184 : vector<8x128xf32> to vector<8x128xbf16>
    %cst_71 = arith.constant dense<0.000000e+00> : vector<8x128xf32>
    %186 = tpu.matmul %185, %4, %cst_71 {dimension_numbers = #tpu.dot_dimension_numbers<[1], [1], [0], [0], [0, 0, 1, 0], [], []>} : vector<8x128xbf16>, vector<128x128xbf16>, vector<8x128xf32> -> vector<8x128xf32>
    %cst_72 = arith.constant 0.000000e+00 : f32
    %187 = vector.broadcast %cst_72 : f32 to vector<8x128xf32>
    %188 = arith.cmpf ogt, %164, %187 : vector<8x128xf32>
    %cst_73 = arith.constant 0.000000e+00 : f32
    %189 = vector.broadcast %cst_73 : f32 to vector<8x128xf32>
    %190 = arith.select %188, %186, %189 : vector<8x128xi1>, vector<8x128xf32>
    %191 = arith.truncf %190 : vector<8x128xf32> to vector<8x128xbf16>
    %cst_74 = arith.constant dense<0.000000e+00> : vector<8x1024xf32>
    %192 = tpu.matmul %191, %3, %cst_74 {dimension_numbers = #tpu.dot_dimension_numbers<[1], [1], [0], [0], [0, 0, 1, 0], [], []>} : vector<8x128xbf16>, vector<1024x128xbf16>, vector<8x1024xf32> -> vector<8x1024xf32>
    %cst_75 = arith.constant 0.000000e+00 : f32
    %193 = vector.broadcast %cst_75 : f32 to vector<8x1024xf32>
    %194 = arith.cmpf ogt, %192, %193 : vector<8x1024xf32>
    %cst_76 = arith.constant 0.000000e+00 : f32
    %195 = vector.broadcast %cst_76 : f32 to vector<8x1024xf32>
    %196 = arith.cmpf olt, %192, %195 : vector<8x1024xf32>
    %cst_77 = arith.constant 0.000000e+00 : f32
    %197 = vector.broadcast %30 : f32 to vector<8x1024xf32>
    %198 = vector.broadcast %cst_77 : f32 to vector<8x1024xf32>
    %199 = arith.select %196, %197, %198 : vector<8x1024xi1>, vector<8x1024xf32>
    %200 = vector.broadcast %29 : f32 to vector<8x1024xf32>
    %201 = arith.select %194, %200, %199 : vector<8x1024xi1>, vector<8x1024xf32>
    %202 = arith.addf %161, %201 : vector<8x1024xf32>
    %203 = arith.maximumf %22, %202 : vector<8x1024xf32>
    %204 = arith.minimumf %26, %203 : vector<8x1024xf32>
    %c4_i32 = arith.constant 4 : i32
    %205 = arith.truncf %204 : vector<8x1024xf32> to vector<8x1024xbf16>
    %cst_78 = arith.constant dense<0.000000e+00> : vector<8x128xf32>
    %206 = tpu.matmul %205, %3, %cst_78 {dimension_numbers = #tpu.dot_dimension_numbers<[1], [0], [0], [1], [0, 0, 1, 1], [], []>} : vector<8x1024xbf16>, vector<1024x128xbf16>, vector<8x128xf32> -> vector<8x128xf32>
    %207 = arith.addf %18, %206 : vector<8x128xf32>
    %cst_79 = arith.constant 0.000000e+00 : f32
    %208 = vector.broadcast %cst_79 : f32 to vector<8x128xf32>
    %209 = arith.maximumf %207, %208 : vector<8x128xf32>
    %210 = arith.truncf %209 : vector<8x128xf32> to vector<8x128xbf16>
    %cst_80 = arith.constant dense<0.000000e+00> : vector<8x128xf32>
    %211 = tpu.matmul %210, %4, %cst_80 {dimension_numbers = #tpu.dot_dimension_numbers<[1], [0], [0], [1], [0, 0, 1, 1], [], []>} : vector<8x128xbf16>, vector<128x128xbf16>, vector<8x128xf32> -> vector<8x128xf32>
    %212 = vector.broadcast %5 : vector<1x128xf32> to vector<8x128xf32>
    %213 = arith.addf %211, %212 : vector<8x128xf32>
    %214 = arith.mulf %213, %213 : vector<8x128xf32>
    %cst_81 = arith.constant dense<0.000000e+00> : vector<8xf32>
    %215 = vector.multi_reduction <add>, %214, %cst_81 [1] : vector<8x128xf32> to vector<8xf32>
    %216 = vector.shape_cast %215 : vector<8xf32> to vector<8x1xf32>
    %cst_82 = arith.constant 1.000000e-16 : f32
    %217 = vector.broadcast %cst_82 : f32 to vector<8x1xf32>
    %218 = arith.maximumf %216, %217 : vector<8x1xf32>
    %219 = math.rsqrt %218 : vector<8x1xf32>
    %220 = vector.broadcast %219 : vector<8x1xf32> to vector<8x128xf32>
    %221 = arith.mulf %213, %220 : vector<8x128xf32>
    %222 = arith.mulf %221, %13 : vector<8x128xf32>
    %cst_83 = arith.constant dense<0.000000e+00> : vector<8xf32>
    %223 = vector.multi_reduction <add>, %222, %cst_83 [1] : vector<8x128xf32> to vector<8xf32>
    %224 = vector.shape_cast %223 : vector<8xf32> to vector<8x1xf32>
    %225 = vector.broadcast %224 : vector<8x1xf32> to vector<8x128xf32>
    %226 = arith.mulf %225, %221 : vector<8x128xf32>
    %227 = arith.subf %226, %13 : vector<8x128xf32>
    %228 = arith.truncf %227 : vector<8x128xf32> to vector<8x128xbf16>
    %cst_84 = arith.constant dense<0.000000e+00> : vector<8x128xf32>
    %229 = tpu.matmul %228, %4, %cst_84 {dimension_numbers = #tpu.dot_dimension_numbers<[1], [1], [0], [0], [0, 0, 1, 0], [], []>} : vector<8x128xbf16>, vector<128x128xbf16>, vector<8x128xf32> -> vector<8x128xf32>
    %cst_85 = arith.constant 0.000000e+00 : f32
    %230 = vector.broadcast %cst_85 : f32 to vector<8x128xf32>
    %231 = arith.cmpf ogt, %207, %230 : vector<8x128xf32>
    %cst_86 = arith.constant 0.000000e+00 : f32
    %232 = vector.broadcast %cst_86 : f32 to vector<8x128xf32>
    %233 = arith.select %231, %229, %232 : vector<8x128xi1>, vector<8x128xf32>
    %234 = arith.truncf %233 : vector<8x128xf32> to vector<8x128xbf16>
    %cst_87 = arith.constant dense<0.000000e+00> : vector<8x1024xf32>
    %235 = tpu.matmul %234, %3, %cst_87 {dimension_numbers = #tpu.dot_dimension_numbers<[1], [1], [0], [0], [0, 0, 1, 0], [], []>} : vector<8x128xbf16>, vector<1024x128xbf16>, vector<8x1024xf32> -> vector<8x1024xf32>
    %cst_88 = arith.constant 0.000000e+00 : f32
    %236 = vector.broadcast %cst_88 : f32 to vector<8x1024xf32>
    %237 = arith.cmpf ogt, %235, %236 : vector<8x1024xf32>
    %cst_89 = arith.constant 0.000000e+00 : f32
    %238 = vector.broadcast %cst_89 : f32 to vector<8x1024xf32>
    %239 = arith.cmpf olt, %235, %238 : vector<8x1024xf32>
    %cst_90 = arith.constant 0.000000e+00 : f32
    %240 = vector.broadcast %30 : f32 to vector<8x1024xf32>
    %241 = vector.broadcast %cst_90 : f32 to vector<8x1024xf32>
    %242 = arith.select %239, %240, %241 : vector<8x1024xi1>, vector<8x1024xf32>
    %243 = vector.broadcast %29 : f32 to vector<8x1024xf32>
    %244 = arith.select %237, %243, %242 : vector<8x1024xi1>, vector<8x1024xf32>
    %245 = arith.addf %204, %244 : vector<8x1024xf32>
    %246 = arith.maximumf %22, %245 : vector<8x1024xf32>
    %247 = arith.minimumf %26, %246 : vector<8x1024xf32>
    %248 = arith.addf %0, %247 : vector<8x1024xf32>
    %c0_91 = arith.constant 0 : index
    %c0_92 = arith.constant 0 : index
    %c0_93 = arith.constant 0 : index
    %249 = vector.load %arg9[%c0_91, %c0_92, %c0_93] : memref<1x8x1024xf32, #tpu.memory_space<vmem>>, vector<1x8x1024xf32>
    %250 = vector.shape_cast %249 : vector<1x8x1024xf32> to vector<8x1024xf32>
    %251 = vector.shape_cast %248 : vector<8x1024xf32> to vector<1x8x1024xf32>
    tpu.vector_store %arg9[%c0_91, %c0_92, %c0_93], %251 {strides = array<i32>} : memref<1x8x1024xf32, #tpu.memory_space<vmem>>, vector<1x8x1024xf32>,
    return
  }
  func.func @transform_0(%arg0: i32, %arg1: i32) -> (i32, i32) {
    %c0_i32 = arith.constant 0 : i32
    %c0_i32_0 = arith.constant 0 : i32
    return %arg0, %c0_i32 : i32, i32
  }
  func.func @transform_1(%arg0: i32, %arg1: i32) -> (i32, i32, i32) {
    %c0_i32 = arith.constant 0 : i32
    %c0_i32_0 = arith.constant 0 : i32
    return %arg1, %arg0, %c0_i32 : i32, i32, i32
  }
  func.func @transform_2(%arg0: i32, %arg1: i32) -> (i32, i32, i32) {
    %c0_i32 = arith.constant 0 : i32
    %c0_i32_0 = arith.constant 0 : i32
    return %arg1, %arg0, %c0_i32 : i32, i32, i32
  }
  func.func @transform_3(%arg0: i32, %arg1: i32) -> (i32, i32) {
    %c0_i32 = arith.constant 0 : i32
    %c0_i32_0 = arith.constant 0 : i32
    %c0_i32_1 = arith.constant 0 : i32
    return %c0_i32, %c0_i32_0 : i32, i32
  }
  func.func @transform_4(%arg0: i32, %arg1: i32) -> (i32, i32) {
    %c0_i32 = arith.constant 0 : i32
    %c0_i32_0 = arith.constant 0 : i32
    %c0_i32_1 = arith.constant 0 : i32
    return %c0_i32, %c0_i32_0 : i32, i32
  }
  func.func @transform_5(%arg0: i32, %arg1: i32) -> (i32, i32) {
    %c0_i32 = arith.constant 0 : i32
    %c0_i32_0 = arith.constant 0 : i32
    %c0_i32_1 = arith.constant 0 : i32
    return %c0_i32, %c0_i32_0 : i32, i32
  }
  func.func @transform_6(%arg0: i32, %arg1: i32) -> (i32, i32) {
    %c0_i32 = arith.constant 0 : i32
    %c0_i32_0 = arith.constant 0 : i32
    %c0_i32_1 = arith.constant 0 : i32
    return %c0_i32, %c0_i32_0 : i32, i32
  }
  func.func @transform_7(%arg0: i32, %arg1: i32) -> (i32, i32, i32) {
    %c0_i32 = arith.constant 0 : i32
    %c0_i32_0 = arith.constant 0 : i32
    return %arg1, %arg0, %c0_i32 : i32, i32, i32
  }
}

</mosaic_0001>

<bundles_post_ra>
// kernel: tpu_custom_call.1
= control target key start
LH: loop header
LB: loop body
LE: loop exit
PB: predicated region body
PF: predicated region fallthrough
CT: control target
= control target key end

     0   :  { %s5889_s0 = inlined_call_operand.vmem [shape: f32[8,1024], index: 0, kind: input, shape index: {}]   ;;  %s5890_s1 = inlined_call_operand.vmem [shape: f32[2,8,128], index: 1, kind: input, shape index: {}]   ;;  %s5891_s2 = inlined_call_operand.hbm [shape: f32[2,8,1024], index: 2, kind: input, shape index: {}, may-alias: {2,7}]   ;;  %s5892_s3 = inlined_call_operand.hbm [shape: bf16[1024,128], index: 3, kind: input, shape index: {}]   ;;  %s5893_s4 = inlined_call_operand.vmem [shape: f32[1,128], index: 4, kind: input, shape index: {}]   ;;  %s5894_s5 = inlined_call_operand.vmem [shape: bf16[128,128], index: 5, kind: input, shape index: {}]   ;;  %s5895_s6 = inlined_call_operand.vmem [shape: f32[1,128], index: 6, kind: input, shape index: {}]   ;;  %s5896_s7 = inlined_call_operand.hbm [shape: f32[2,8,1024], index: 7, kind: output, shape index: {}, may-alias: {2,7}]  }
   0x1   :  { %6145 = sst [smem:[#allocation74_spill]] %s5892_s3 }
   0x2   :  { %12 = vsyncpa [#allocation3], 0 }
   0x3   :  { %14 = vsyncpa [#allocation3 + $0x1], 0 }
   0x4   :  { %15 = vsyncpa [#allocation6], 0 }
   0x5   :  { %16 = vsyncpa [#allocation4], 0 }
   0x6   :  { %18 = vsyncpa [#allocation4 + $0x1], 0  ;;  %s3865_s24 = smov 0   ;;  %s3867_s25 = smov 0  }
   0x7   :  { %s3869_s26 = smov 0   ;;  %s3871_s27 = smov 0  }
   0x8   :  { %s3873_s28 = smov 0   ;;  %s3875_s29 = smov 0  }
   0x9 LB: > { %s2930_s30 = sadd.s32 4294967295, %s3820_s29   ;;  %p2932_p0 = scmp.ge.s32.totalorder %s3820_s29, 1  ;;  %s3820_s29 = sphi %s3875_s29, %s24_s29   ;;  %s3816_s28 = sphi %s3873_s28, %s6537_s28   ;;  %s3812_s27 = sphi %s3871_s27, %s6536_s27   ;;  %s3808_s26 = sphi %s3869_s26, %s6535_s26   ;;  %s3804_s25 = sphi %s3867_s25, %s6534_s25   ;;  %s3800_s24 = sphi %s3865_s24, %s6533_s24  }
   0xa   : > { %p3897_p1 = scmp.eq.s32.totalorder %s2930_s30, 0  ;;  %p235_p2 = scmp.lt.s32.totalorder %s3820_s29, 3 }
   0xb   : > { %s6147_s3 = sld [smem:[#allocation74_spill]]  ;;  %s3822_s13 = smov [#allocation5]  }
   0xc   : > { %p3905_p3 = pnand %p2932_p0, %p235_p2  ;;  %s256_s14 = sshll.u32 %s3822_s13, 4  ;;  %s257_s14 = int_to_ptr.vmem [resolvable:$true] %s256_s14 }
   0xd   : > { %p2935_p6 = scmp.ge.s32.totalorder %s3820_s29, 2  ;;  %s3823_s15 = smov 64  }
   0xe   : > { %p3439_p4 = pneg %p3905_p3  ;;  %s3824_s16 = smov 4  }
   0xf   : > { %s2931_s17 = sadd.s32 4294967294, %s3820_s29   ;;  %s33_s18 = sadd.s32 1, %s3816_s28 }
  0x10   : > { %p3440_p5 = pnand %p3439_p4, %p3897_p1  ;;  %s99_s19 = sadd.s32 1, %s3808_s26 }
  0x11   : > { %s254_s11 = sshll.u32 %s6147_s3, 4  ;;  %p34_p7 = scmp.ge.s32.totalorder %s33_s18, 2  ;;  %s255_s11 = int_to_ptr.hbm [resolvable:$true] %s254_s11 }
  0x12   : > { %3442 = dma.hbm_to_vmem [thread:$0]  (!%p3440_p5), %s255_s11, 8192, %s257_s14, [#allocation6], %s3823_s15, %s3823_s15, %s3824_s16  }
  0x13   : > { %p106_p8 = scmp.ne.s32.totalorder %s3808_s26, %s3804_s25  ;;  %p107_p9 = scmp.eq.s32.totalorder %s3820_s29, 0 }
  0x14   : > { %p112_p10 = scmp.ne.s32.totalorder %s3804_s25, %s3800_s24  ;;  %s6539_s18 = smov (%p34_p7, %s33_s18), 0 }
  0x15   : > { %6149 = sst [smem:[#allocation11_spill]] %s6539_s18  ;;  %p3924_p11 = por %p107_p9, %p106_p8 }
  0x16   : > { %p3930_p12 = por %p3897_p1, %p112_p10  ;;  %s94_s22 = ssub.s32 %s3816_s28, %s6539_s18 }
  0x17   : > { %p222_p13 = scmp.eq.s32.totalorder %s2930_s30, 1  ;;  %p97_p0 = scmp.eq.s32.totalorder %s94_s22, 0 }
  0x18   : > { %p228_p2 = scmp.eq.s32.totalorder %s2931_s17, 1  ;;  %p3452_p5 = scmp.lt.s32.totalorder %s3820_s29, 2 }
  0x19   : > { %p3936_p4 = por %p222_p13, %p106_p8  ;;  %s289_s11 = sand.u32 1, %s3808_s26  }
  0x1a   : > { %s3942_s9 = scalar_select %p97_p0, %s3808_s26, %s99_s19  }
  0x1b   : > { %p3944_p7 = por %p228_p2, %p112_p10  ;;  %s2936_s13 = sshll.u32 %s289_s11, 6 }
  0x1c   : > { %s3357_s14 = sshll.u32 %s3816_s28, 6  ;;  %s293_s22 = scalar_lea.vmem [#allocation2], %s2936_s13 }
  0x1d   : > { %s300_s30 = scalar_lea.hbm %s5891_s2, %s3357_s14  ;;  %s304_s17 = sshll.u32 %s293_s22, 4  ;;  %s305_s17 = int_to_ptr.vmem [resolvable:$true] %s304_s17 }
  0x1e   : > { %s302_s3 = sshll.u32 %s300_s30, 4  ;;  %p3444_p8 = pnand %p3452_p5, %p3924_p11  ;;  %s303_s3 = int_to_ptr.hbm [resolvable:$true] %s302_s3 }
  0x1f   : > { %s290_s19 = scalar_lea.sflag [#allocation3], %s289_s11  ;;  %313 = sbr.rel (%p3905_p3) target bundleno = 4371 (0x1113), region = 48 }
  0x20   : > { %3446 = dma.hbm_to_vmem [thread:$0]  (!%p3444_p8), %s303_s3, 1024, %s305_s17, %s290_s19  }
  0x24   : > { %s3958_s18 = sand.u32 1, %s3804_s25  }
  0x25   : > { %s2940_s14 = sshll.u32 %s3958_s18, 6  ;;  %s316_s13 = scalar_lea.sflag [#allocation3], %s3958_s18 }
  0x26   : > { %s3964_s15 = scalar_lea.vmem [#allocation2], %s2940_s14 }
  0x27   : > { %3787 = dma.done.wait (%p3930_p12), %s316_s13, 1024  }
  0x28   : > { %3789 = vsyncadd (%p3930_p12), %s316_s13, 4294966272 }
  0x29   : > { %3791 = dma.done.wait (%p3897_p1), [#allocation6], 8192  }
  0x2a   : > { %3793 = vsyncadd (%p3897_p1), [#allocation6], 4294959104  ;;  %v3974_v0 = vld [vmem:[#allocation5 + $0x78] sm:$0xff]  ;;  %v3979_v2 = vld [vmem:[#allocation5 + $0x70] sm:$0xff]  ;;  %p373_p1 = scmp.lt.s32.totalorder %s3812_s27, 1  ;;  %p1081_p3 = scmp.eq.s32.totalorder %s3812_s27, 0 }
  0x2b   : > { %v3976_v1 = vld [vmem:[#allocation5 + $0x38] sm:$0xff]  ;;  %958 = vmatpush.bf16.msra.mxu2 %v3974_v0  ;;  %6154 = vst [vmem:[#allocation12_spill] sm:$0xff] %v3979_v2  ;;  %v3982_v3 = vld [vmem:[#allocation5 + $0x30] sm:$0xff]  ;;  %v3990_v6 = vld [vmem:[#allocation5 + $0x68] sm:$0xff]  ;;  %s5799_s16 = scalar_lea.vmem [#allocation7], %s2940_s14  ;;  %s3430_s19 = sshll.u32 %s3812_s27, 6 }
  0x2c   : > { %945 = vmatpush.bf16.msra.mxu0 %v3976_v1  ;;  %6155 = vst [vmem:[#allocation13_spill] sm:$0xff] %v3982_v3  ;;  %v3984_v4 = vld [vmem:[#allocation5 + $0xf8] sm:$0xff]  ;;  %v3987_v5 = vld [vmem:[#allocation5 + $0xf0] sm:$0xff]  ;;  %v3993_v7 = vld [vmem:[#allocation5 + $0x28] sm:$0xff]  ;;  %s374_s11 = scalar_select %p373_p1, %s3812_s27, 1 }
  0x2d   : > { %984 = vmatpush.bf16.msra.mxu3 %v3984_v4  ;;  %6156 = vst [vmem:[#allocation14_spill] sm:$0xff] %v3987_v5  ;;  %v3996_v8 = vld [vmem:[#allocation5 + $0xe8] sm:$0xff]  ;;  %v3998_v9 = vld [vmem:[#allocation5 + $0x178] sm:$0xff]  ;;  %v4001_v10 = vld [vmem:[#allocation5 + $0x60] sm:$0xff]  ;;  %s1082_s20 = scalar_select %p1081_p3, 1.0, -1.0 }
  0x2e   : > { %6157 = vst [vmem:[#allocation15_spill] sm:$0xff] %v3990_v6  ;;  %v4004_v11 = vld [vmem:[#allocation5 + $0x20] sm:$0xff]  ;;  %1010 = vmatpush.bf16.msra.mxu1 %v3998_v9  ;;  %v4010_v13 = vld [vmem:[#allocation5 + $0x170] sm:$0xff]  ;;  %v4013_v14 = vld [vmem:[#allocation5 + $0x58] sm:$0xff]  ;;  %s2943_s30 = sshll.u32 %s374_s11, 3  ;;  %s3754_s12 = scalar_lea.hbm %s5896_s7, 128 }
  0x2f   : > { %959 = vmatpush.bf16.msra.mxu2 %v3979_v2  ;;  %6158 = vst [vmem:[#allocation16_spill] sm:$0xff] %v3996_v8  ;;  %v4008_v12 = vld [vmem:[#allocation5 + $0xe0] sm:$0xff]  ;;  %v4016_v15 = vld [vmem:[#allocation5 + $0x18] sm:$0xff]  ;;  %v4022_v17 = vld [vmem:[#allocation5 + $0x168] sm:$0xff]  ;;  %s379_s3 = scalar_lea.vmem %s5890_s1, %s2943_s30  ;;  %s1083_s21 = smul.f32 0.007843138, %s1082_s20 }
  0x30   : > { %946 = vmatpush.bf16.msra.mxu0 %v3982_v3  ;;  %6159 = vst [vmem:[#allocation17_spill] sm:$0xff] %v4001_v10  ;;  %v4020_v16 = vld [vmem:[#allocation5 + $0xd8] sm:$0xff]  ;;  %v4025_v18 = vld [vmem:[#allocation5 + $0x50] sm:$0xff]  ;;  %v4034_v21 = vld [vmem:[#allocation5 + $0x160] sm:$0xff] }
  0x31   : > { %985 = vmatpush.bf16.msra.mxu3 %v3987_v5  ;;  %6160 = vst [vmem:[#allocation18_spill] sm:$0xff] %v4008_v12  ;;  %v4028_v19 = vld [vmem:[#allocation5 + $0x10] sm:$0xff]  ;;  %v4037_v22 = vld [vmem:[#allocation5 + $0x48] sm:$0xff]  ;;  %v4046_v25 = vld [vmem:[#allocation5 + $0x158] sm:$0xff]  ;;  %s1084_s11 = ssub.f32 0.0, %s1083_s21 }
  0x32   : > { %6161 = vst [vmem:[#allocation19_spill] sm:$0xff] %v4010_v13  ;;  %1011 = vmatpush.bf16.msra.mxu1 %v4010_v13  ;;  %v4032_v20 = vld [vmem:[#allocation5 + $0xd0] sm:$0xff]  ;;  %v4040_v23 = vld [vmem:[#allocation5 + $0x8] sm:$0xff]  ;;  %v4049_v26 = vld [vmem:[#allocation5 + $0x40] sm:$0xff] }
  0x33   : > { %960 = vmatpush.bf16.msra.mxu2 %v3990_v6  ;;  %6162 = vst [vmem:[#allocation20_spill] sm:$0xff] %v4013_v14  ;;  %v4044_v24 = vld [vmem:[#allocation5 + $0xc8] sm:$0xff]  ;;  %v4056_v28 = vld [vmem:[#allocation5 + $0xb8] sm:$0xff]  ;;  %v4059_v29 = vld [vmem:[#allocation5] sm:$0xff] }
  0x34   : > { %947 = vmatpush.bf16.msra.mxu0 %v3993_v7  ;;  %6163 = vst [vmem:[#allocation21_spill] sm:$0xff] %v4020_v16  ;;  %v4054_v27 = vld [vmem:[%s5889_s0 + $0x8] sm:$0xff]  ;;  %v4064_v30 = vld [vmem:[%s5889_s0] sm:$0xff]  ;;  %v4067_v31 = vld [vmem:[#allocation5 + $0x138] sm:$0xff] }
  0x35   : > { %986 = vmatpush.bf16.msra.mxu3 %v3996_v8  ;;  %6164 = vst [vmem:[#allocation22_spill] sm:$0xff] %v4032_v20  ;;  %v550_v32 = vpack.c.bf16 %v4054_v27, %v4054_v27  ;;  %v4072_v33 = vld [vmem:[#allocation5 + $0xc0] sm:$0xff]  ;;  %v4074_v34 = vld [vmem:[#allocation5 + $0x150] sm:$0xff]  ;;  %v4079_v35 = vld [vmem:[%s5889_s0 + $0x18] sm:$0xff]  ;;  %v549_v37 = vpack.c.bf16 %v4064_v30, %v4064_v30 }
  0x36   : > { %1012 = vmatpush.bf16.msra.mxu1 %v4022_v17  ;;  %6165 = vst [vmem:[#allocation23_spill] sm:$0xff] %v4034_v21  ;;  %v4082_v36 = vld [vmem:[#allocation5 + $0x1f8] sm:$0xff]  ;;  %v4087_v38 = vld [vmem:[#allocation5 + $0xb0] sm:$0xff]  ;;  %v552_v40 = vpack.c.bf16 %v4079_v35, %v4079_v35  ;;  %v4097_v41 = vld [vmem:[#allocation5 + $0x148] sm:$0xff] }
  0x37   : > { %961 = vmatpush.bf16.msra.mxu2 %v4001_v10  ;;  %6166 = vst [vmem:[#allocation24_spill] sm:$0xff] %v4044_v24  ;;  %v4091_v39 = vld [vmem:[#allocation5 + $0x130] sm:$0xff]  ;;  %v4103_v43 = vld [vmem:[#allocation5 + $0xa8] sm:$0xff]  ;;  %v4109_v45 = vld [vmem:[#allocation5 + $0x140] sm:$0xff] }
  0x38   : > { %948 = vmatpush.bf16.msra.mxu0 %v4004_v11  ;;  %6167 = vst [vmem:[#allocation25_spill] sm:$0xff] %v4046_v25  ;;  %v4100_v42 = vld [vmem:[#allocation5 + $0x1f0] sm:$0xff]  ;;  %v4106_v44 = vld [vmem:[#allocation5 + $0x128] sm:$0xff]  ;;  %v4115_v47 = vld [vmem:[#allocation5 + $0xa0] sm:$0xff] }
  0x39   : > { %987 = vmatpush.bf16.msra.mxu3 %v4008_v12  ;;  %6168 = vst [vmem:[#allocation26_spill] sm:$0xff] %v4049_v26  ;;  %v4112_v46 = vld [vmem:[#allocation5 + $0x1e8] sm:$0xff]  ;;  %v4123_v49 = vld [vmem:[#allocation5 + $0x120] sm:$0xff]  ;;  %v4133_v52 = vld [vmem:[#allocation5 + $0x98] sm:$0xff] }
  0x3a   : > { %1013 = vmatpush.bf16.msra.mxu1 %v4034_v21  ;;  %6169 = vst [vmem:[#allocation27_spill] sm:$0xff] %v4054_v27  ;;  %v4120_v48 = vld [vmem:[%s5889_s0 + $0x28] sm:$0xff]  ;;  %v4129_v51 = vld [vmem:[#allocation5 + $0x1e0] sm:$0xff]  ;;  %v4136_v53 = vld [vmem:[#allocation5 + $0x118] sm:$0xff] }
  0x3b   : > { %962 = vmatpush.bf16.msra.mxu2 %v4013_v14  ;;  %6170 = vst [vmem:[#allocation28_spill] sm:$0xff] %v4064_v30  ;;  %v554_v50 = vpack.c.bf16 %v4120_v48, %v4120_v48  ;;  %v4139_v54 = vld [vmem:[#allocation5 + $0x1d8] sm:$0xff]  ;;  %v4143_v55 = vld [vmem:[#allocation5 + $0x90] sm:$0xff]  ;;  %v4153_v58 = vld [vmem:[#allocation5 + $0x88] sm:$0xff] }
  0x3c   : > { %949 = vmatpush.bf16.msra.mxu0 %v4016_v15  ;;  %6171 = vst [vmem:[#allocation29_spill] sm:$0xff] %v4072_v33  ;;  %v4146_v56 = vld [vmem:[#allocation5 + $0x110] sm:$0xff]  ;;  %v4156_v59 = vld [vmem:[#allocation5 + $0x108] sm:$0xff]  ;;  %v4163_v61 = vld [vmem:[#allocation5 + $0x80] sm:$0xff] }
  0x3d   : > { %988 = vmatpush.bf16.msra.mxu3 %v4020_v16  ;;  %6172 = vst [vmem:[#allocation30_spill] sm:$0xff] %v4074_v34  ;;  %v4149_v57 = vld [vmem:[#allocation5 + $0x1d0] sm:$0xff]  ;;  %v4159_v60 = vld [vmem:[#allocation5 + $0x1c8] sm:$0xff]  ;;  %v4170_v63 = vld [vmem:[#allocation5 + $0x1b8] sm:$0xff] }
  0x3e   : > { %1014 = vmatpush.bf16.msra.mxu1 %v4046_v25  ;;  %6173 = vst [vmem:[#allocation31_spill] sm:$0xff] %v4079_v35  ;;  %v4168_v62 = vld [vmem:[%s5889_s0 + $0x10] sm:$0xff] }
  0x3f   : > { %963 = vmatpush.bf16.msra.mxu2 %v4025_v18  ;;  %6174 = vst [vmem:[#allocation32_spill] sm:$0xff] %v4097_v41  ;;  %v4195_v27 = vld [vmem:[#allocation5 + $0x1b0] sm:$0xff] }
  0x40   : > { %950 = vmatpush.bf16.msra.mxu0 %v4028_v19  ;;  %6175 = vst [vmem:[#allocation33_spill] sm:$0xff] %v4109_v45 }
  0x41   : > { %989 = vmatpush.bf16.msra.mxu3 %v4032_v20  ;;  %6176 = vst [vmem:[#allocation34_spill] sm:$0xff] %v4120_v48  ;;  %v4188_v48 = vld [vmem:[%s5889_s0 + $0x38] sm:$0xff] }
  0x42   : > { %1015 = vmatpush.bf16.msra.mxu1 %v4074_v34  ;;  %6177 = vst [vmem:[#allocation35_spill] sm:$0xff] %v4136_v53  ;;  %v556_v30 = vpack.c.bf16 %v4188_v48, %v4188_v48 }
  0x43   : > { %964 = vmatpush.bf16.msra.mxu2 %v4037_v22  ;;  %6178 = vst [vmem:[#allocation36_spill] sm:$0xff] %v4146_v56 }
  0x44   : > { %951 = vmatpush.bf16.msra.mxu0 %v4040_v23  ;;  %6179 = vst [vmem:[#allocation37_spill] sm:$0xff] %v4156_v59 }
  0x45   : > { %990 = vmatpush.bf16.msra.mxu3 %v4044_v24  ;;  %6180 = vst [vmem:[#allocation38_spill] sm:$0xff] %v4168_v62 }
  0x46   : > { %1016 = vmatpush.bf16.msra.mxu1 %v4097_v41  ;;  %6183 = vst [vmem:[#allocation41_spill] sm:$0xff] %v4188_v48  ;;  %v4210_v48 = vld [vmem:[#allocation5 + $0x1a0] sm:$0xff] }
  0x47   : > { %965 = vmatpush.bf16.msra.mxu2 %v4049_v26 }
  0x48   : > { %952 = vmatpush.bf16.msra.mxu0 %v4059_v29 }
  0x49   : > { %991 = vmatpush.bf16.msra.mxu3 %v4072_v33 }
  0x4a   : > { %966 = vmatmul.bf16.vlgmr.msra.gmra.mxu2 %v550_v32  ;;  %1017 = vmatpush.bf16.msra.mxu1 %v4109_v45  ;;  %v4173_v32 = vld [vmem:[#allocation5 + $0x100] sm:$0xff] }
  0x4b   : > { %971 = vmatpush.bf16.msrb.mxu2 %v4056_v28  ;;  %953 = vmatmul.bf16.vlgmr.msra.gmra.mxu0 %v549_v37  ;;  %6181 = vst [vmem:[#allocation39_spill] sm:$0xff] %v4173_v32  ;;  %v4178_v37 = vld [vmem:[%s5889_s0 + $0x20] sm:$0xff] }
  0x4c   : > { %997 = vmatpush.bf16.msrb.mxu0 %v4067_v31  ;;  %992 = vmatmul.bf16.vlgmr.msra.gmra.mxu3 %v552_v40  ;;  %6182 = vst [vmem:[#allocation40_spill] sm:$0xff] %v4178_v37  ;;  %v551_v40 = vpack.c.bf16 %v4168_v62, %v4168_v62  ;;  %v553_v35 = vpack.c.bf16 %v4178_v37, %v4178_v37  ;;  %v4204_v37 = vld [vmem:[#allocation5 + $0x1a8] sm:$0xff]  ;;  %v4235_v62 = vld [vmem:[#allocation5 + $0x180] sm:$0xff] }
  0x4d   : > { %1036 = vmatpush.bf16.msrb.mxu3 %v4082_v36  ;;  %1018 = vmatmul.bf16.vlgmr.msra.gmra.mxu1 %v554_v50  ;;  %v4183_v50 = vld [vmem:[#allocation5 + $0x1c0] sm:$0xff] }
  0x4e   : > { %1114 = vmatpush.bf16.msrb.mxu1 %v3974_v0 }
  0x4f   : > { %972 = vmatpush.bf16.msrb.mxu2 %v4087_v38 }
  0x50   : > { %998 = vmatpush.bf16.msrb.mxu0 %v4091_v39 }
  0x51   : > { %1037 = vmatpush.bf16.msrb.mxu3 %v4100_v42 }
  0x52   : > { %1115 = vmatpush.bf16.msrb.mxu1 %v3979_v2 }
  0x53   : > { %973 = vmatpush.bf16.msrb.mxu2 %v4103_v43 }
  0x54   : > { %999 = vmatpush.bf16.msrb.mxu0 %v4106_v44 }
  0x55   : > { %1038 = vmatpush.bf16.msrb.mxu3 %v4112_v46 }
  0x56   : > { %1116 = vmatpush.bf16.msrb.mxu1 %v3990_v6 }
  0x57   : > { %974 = vmatpush.bf16.msrb.mxu2 %v4115_v47 }
  0x58   : > { %1000 = vmatpush.bf16.msrb.mxu0 %v4123_v49 }
  0x59   : > { %1039 = vmatpush.bf16.msrb.mxu3 %v4129_v51 }
  0x5a   : > { %1117 = vmatpush.bf16.msrb.mxu1 %v4001_v10 }
  0x5b   : > { %975 = vmatpush.bf16.msrb.mxu2 %v4133_v52 }
  0x5c   : > { %1001 = vmatpush.bf16.msrb.mxu0 %v4136_v53 }
  0x5d   : > { %1040 = vmatpush.bf16.msrb.mxu3 %v4139_v54 }
  0x5e   : > { %1118 = vmatpush.bf16.msrb.mxu1 %v4013_v14 }
  0x5f   : > { %976 = vmatpush.bf16.msrb.mxu2 %v4143_v55 }
  0x60   : > { %1002 = vmatpush.bf16.msrb.mxu0 %v4146_v56 }
  0x61   : > { %1041 = vmatpush.bf16.msrb.mxu3 %v4149_v57 }
  0x62   : > { %1119 = vmatpush.bf16.msrb.mxu1 %v4025_v18 }
  0x63   : > { %977 = vmatpush.bf16.msrb.mxu2 %v4153_v58 }
  0x64   : > { %1003 = vmatpush.bf16.msrb.mxu0 %v4156_v59 }
  0x65   : > { %1042 = vmatpush.bf16.msrb.mxu3 %v4159_v60 }
  0x66   : > { %1120 = vmatpush.bf16.msrb.mxu1 %v4037_v22 }
  0x67   : > { %978 = vmatpush.bf16.msrb.mxu2 %v4163_v61 }
  0x68   : > { %1004 = vmatpush.bf16.msrb.mxu0 %v4173_v32 }
  0x69   : > { %1043 = vmatpush.bf16.msrb.mxu3 %v4183_v50 }
  0x6a   : > { %979 = vmatmul.bf16.vlgmr.msrb.gmra.mxu2 %v551_v40  ;;  %1121 = vmatpush.bf16.msrb.mxu1 %v4049_v26  ;;  %v4229_v40 = vld [vmem:[#allocation5 + $0x188] sm:$0xff] }
  0x6b   : > { %1023 = vmatpush.bf16.msra.mxu2 %v4170_v63  ;;  %1005 = vmatmul.bf16.vlgmr.msrb.gmra.mxu0 %v553_v35  ;;  %v4216_v35 = vld [vmem:[#allocation5 + $0x198] sm:$0xff] }
  0x6c   : > { %1101 = vmatpush.bf16.msra.mxu0 %v3976_v1  ;;  %1044 = vmatmul.bf16.vlgmr.msrb.gmra.mxu3 %v556_v30  ;;  %v4223_v30 = vld [vmem:[#allocation5 + $0x190] sm:$0xff] }
  0x6d   : > { %1140 = vmatpush.bf16.msra.mxu3 %v3984_v4 }
  0x6e   : > { %1166 = vmatpush.bf16.msra.mxu1 %v3998_v9 }
  0x6f   : > { %1024 = vmatpush.bf16.msra.mxu2 %v4195_v27 }
  0x70   : > { %1102 = vmatpush.bf16.msra.mxu0 %v3982_v3 }
  0x71   : > { %1141 = vmatpush.bf16.msra.mxu3 %v3987_v5 }
  0x72   : > { %1167 = vmatpush.bf16.msra.mxu1 %v4010_v13 }
  0x73   : > { %1025 = vmatpush.bf16.msra.mxu2 %v4204_v37 }
  0x74   : > { %1103 = vmatpush.bf16.msra.mxu0 %v3993_v7 }
  0x75   : > { %1142 = vmatpush.bf16.msra.mxu3 %v3996_v8  ;;  %v4263_v8 = vld [vmem:[%s3964_s15 + $0x18] sm:$0xff] }
  0x76   : > { %1168 = vmatpush.bf16.msra.mxu1 %v4022_v17  ;;  %6187 = vst [vmem:[#allocation45_spill] sm:$0xff] %v4263_v8 }
  0x77   : > { %1026 = vmatpush.bf16.msra.mxu2 %v4210_v48 }
  0x78   : > { %1104 = vmatpush.bf16.msra.mxu0 %v4004_v11 }
  0x79   : > { %1143 = vmatpush.bf16.msra.mxu3 %v4008_v12 }
  0x7a   : > { %1169 = vmatpush.bf16.msra.mxu1 %v4034_v21 }
  0x7b   : > { %1027 = vmatpush.bf16.msra.mxu2 %v4216_v35 }
  0x7c   : > { %1105 = vmatpush.bf16.msra.mxu0 %v4016_v15 }
  0x7d   : > { %1144 = vmatpush.bf16.msra.mxu3 %v4020_v16  ;;  %v4240_v16 = vld [vmem:[%s5889_s0 + $0x30] sm:$0xff] }
  0x7e   : > { %6184 = vst [vmem:[#allocation42_spill] sm:$0xff] %v4240_v16  ;;  %v555_v12 = vpack.c.bf16 %v4240_v16, %v4240_v16  ;;  %1170 = vmatpush.bf16.msra.mxu1 %v4046_v25 }
  0x7f   : > { %1028 = vmatpush.bf16.msra.mxu2 %v4223_v30 }
  0x80   : > { %1106 = vmatpush.bf16.msra.mxu0 %v4028_v19 }
  0x81   : > { %1145 = vmatpush.bf16.msra.mxu3 %v4032_v20  ;;  %v4252_v20 = vld [vmem:[%s3964_s15] sm:$0xff] }
  0x82   : > { %6185 = vst [vmem:[#allocation43_spill] sm:$0xff] %v4252_v20  ;;  %v1093_v16 = vpack.c.bf16 %v4252_v20, %v4252_v20  ;;  %1171 = vmatpush.bf16.msra.mxu1 %v4074_v34  ;;  %v4304_v20 = vld [vmem:[%s3964_s15 + $0x38] sm:$0xff] }
  0x83   : > { %1029 = vmatpush.bf16.msra.mxu2 %v4229_v40  ;;  %6191 = vst [vmem:[#allocation49_spill] sm:$0xff] %v4304_v20 }
  0x84   : > { %1107 = vmatpush.bf16.msra.mxu0 %v4040_v23 }
  0x85   : > { %1146 = vmatpush.bf16.msra.mxu3 %v4044_v24  ;;  %v4260_v24 = vld [vmem:[%s3964_s15 + $0x8] sm:$0xff] }
  0x86   : > { %6186 = vst [vmem:[#allocation44_spill] sm:$0xff] %v4260_v24  ;;  %v1094_v5 = vpack.c.bf16 %v4260_v24, %v4260_v24  ;;  %1172 = vmatpush.bf16.msra.mxu1 %v4097_v41 }
  0x87   : > { %1030 = vmatpush.bf16.msra.mxu2 %v4235_v62 }
  0x88   : > { %1108 = vmatpush.bf16.msra.mxu0 %v4059_v29  ;;  %1122 = vmatmul.bf16.vlgmr.msrb.gmra.mxu1 %v1094_v5  ;;  %v4285_v5 = vld [vmem:[%s3964_s15 + $0x28] sm:$0xff] }
  0x89   : > { %1147 = vmatpush.bf16.msra.mxu3 %v4072_v33  ;;  %6188 = vst [vmem:[#allocation46_spill] sm:$0xff] %v4285_v5 }
  0x8a   : > { %1031 = vmatmul.bf16.vlgmr.msra.gmra.mxu2 %v555_v12  ;;  %v1096_v12 = vpack.c.bf16 %v4263_v8, %v4263_v8  ;;  %1173 = vmatpush.bf16.msra.mxu1 %v4109_v45  ;;  %v4298_v8 = vld [vmem:[%s3964_s15 + $0x20] sm:$0xff] }
  0x8b   : > { %1127 = vmatpush.bf16.msrb.mxu2 %v4056_v28  ;;  %1109 = vmatmul.bf16.vlgmr.msra.gmra.mxu0 %v1093_v16  ;;  %v1098_v16 = vpack.c.bf16 %v4285_v5, %v4285_v5  ;;  %6190 = vst [vmem:[#allocation48_spill] sm:$0xff] %v4298_v8  ;;  %v1100_v5 = vpack.c.bf16 %v4304_v20, %v4304_v20 }
  0x8c   : > { %1153 = vmatpush.bf16.msrb.mxu0 %v4067_v31  ;;  %1148 = vmatmul.bf16.vlgmr.msra.gmra.mxu3 %v1096_v12  ;;  %v4294_v12 = vld [vmem:[%s3964_s15 + $0x10] sm:$0xff] }
  0x8d   : > { %1192 = vmatpush.bf16.msrb.mxu3 %v4082_v36  ;;  %6189 = vst [vmem:[#allocation47_spill] sm:$0xff] %v4294_v12  ;;  %v1095_v24 = vpack.c.bf16 %v4294_v12, %v4294_v12 }
  0x8f   : > { %1128 = vmatpush.bf16.msrb.mxu2 %v4087_v38 }
  0x90   : > { %1154 = vmatpush.bf16.msrb.mxu0 %v4091_v39 }
  0x91   : > { %1193 = vmatpush.bf16.msrb.mxu3 %v4100_v42 }
  0x93   : > { %1129 = vmatpush.bf16.msrb.mxu2 %v4103_v43 }
  0x94   : > { %1155 = vmatpush.bf16.msrb.mxu0 %v4106_v44 }
  0x95   : > { %1194 = vmatpush.bf16.msrb.mxu3 %v4112_v46 }
  0x97   : > { %1130 = vmatpush.bf16.msrb.mxu2 %v4115_v47 }
  0x98   : > { %1156 = vmatpush.bf16.msrb.mxu0 %v4123_v49  ;;  %1174 = vmatmul.bf16.vlgmr.msra.gmra.mxu1 %v1098_v16  ;;  %v1097_v16 = vpack.c.bf16 %v4298_v8, %v4298_v8 }
  0x99   : > { %1195 = vmatpush.bf16.msrb.mxu3 %v4129_v51 }
  0x9b   : > { %1131 = vmatpush.bf16.msrb.mxu2 %v4133_v52 }
  0x9c   : > { %1157 = vmatpush.bf16.msrb.mxu0 %v4136_v53 }
  0x9d   : > { %1196 = vmatpush.bf16.msrb.mxu3 %v4139_v54 }
  0x9f   : > { %1132 = vmatpush.bf16.msrb.mxu2 %v4143_v55 }
  0xa0   : > { %1158 = vmatpush.bf16.msrb.mxu0 %v4146_v56 }
  0xa1   : > { %1197 = vmatpush.bf16.msrb.mxu3 %v4149_v57 }
  0xa3   : > { %1133 = vmatpush.bf16.msrb.mxu2 %v4153_v58 }
  0xa4   : > { %1159 = vmatpush.bf16.msrb.mxu0 %v4156_v59 }
  0xa5   : > { %1198 = vmatpush.bf16.msrb.mxu3 %v4159_v60 }
  0xa7   : > { %1134 = vmatpush.bf16.msrb.mxu2 %v4163_v61 }
  0xa8   : > { %1160 = vmatpush.bf16.msrb.mxu0 %v4173_v32 }
  0xa9   : > { %1199 = vmatpush.bf16.msrb.mxu3 %v4183_v50 }
  0xaa   : > { %1135 = vmatmul.bf16.vlgmr.msrb.gmra.mxu2 %v1095_v24  ;;  %v4324_v24 = vld [vmem:[%s3964_s15 + $0x30] sm:$0xff] }
  0xab   : > { %1179 = vmatpush.bf16.msra.mxu2 %v4170_v63  ;;  %1161 = vmatmul.bf16.vlgmr.msrb.gmra.mxu0 %v1097_v16  ;;  %6192 = vst [vmem:[#allocation50_spill] sm:$0xff] %v4324_v24  ;;  %v1099_v16 = vpack.c.bf16 %v4324_v24, %v4324_v24 }
  0xac   : > { %1200 = vmatmul.bf16.vlgmr.msrb.gmra.mxu3 %v1100_v5  ;;  %v3506_v5 = vld [vmem:[%s5893_s4] ss:$0 sm:$0xff] }
  0xad   : > { %1322 = vmatpush.bf16.xpose.msra.mxu3 %v3974_v0 }
  0xaf   : > { %1180 = vmatpush.bf16.msra.mxu2 %v4195_v27 }
  0xb3   : > { %1181 = vmatpush.bf16.msra.mxu2 %v4204_v37 }
  0xb5   : > { %1323 = vmatpush.bf16.xpose.msra.mxu3 %v3979_v2 }
  0xb7   : > { %1182 = vmatpush.bf16.msra.mxu2 %v4210_v48 }
  0xbb   : > { %1183 = vmatpush.bf16.msra.mxu2 %v4216_v35 }
  0xbd   : > { %1324 = vmatpush.bf16.xpose.msra.mxu3 %v3990_v6 }
  0xbf   : > { %1184 = vmatpush.bf16.msra.mxu2 %v4223_v30 }
  0xc3   : > { %1185 = vmatpush.bf16.msra.mxu2 %v4229_v40 }
  0xc5   : > { %1325 = vmatpush.bf16.xpose.msra.mxu3 %v4001_v10 }
  0xc7   : > { %1186 = vmatpush.bf16.msra.mxu2 %v4235_v62 }
  0xc8   : > { %v954_v20 = vpop.f32.mrf.mxu0 }
  0xc9   : > { %v955_v8 = vadd.f32 %v3506_v5, %v954_v20 }
  0xca   : > { %1187 = vmatmul.bf16.vlgmr.msra.gmra.mxu2 %v1099_v16  ;;  %v1019_v2 = vpop.f32.mrf.mxu1 }
  0xcb   : > { %1309 = vmatpush.bf16.xpose.msrb.mxu2 %v3976_v1 }
  0xcd   : > { %1326 = vmatpush.bf16.xpose.msra.mxu3 %v4013_v14  ;;  %v967_v24 = vpop.f32.mrf.mxu2 }
  0xce   : > { %v968_v12 = vadd.f32 %v967_v24, %v955_v8 }
  0xcf   : > { %v993_v6 = vpop.f32.mrf.mxu3 }
  0xd0   : > { %v956_v10 = vpop.f32.mrf.mxu0 }
  0xd3   : > { %1310 = vmatpush.bf16.xpose.msrb.mxu2 %v3982_v3  ;;  %v1021_v3 = vpop.f32.mrf.mxu1 }
  0xd5   : > { %1327 = vmatpush.bf16.xpose.msra.mxu3 %v4025_v18  ;;  %v969_v16 = vpop.f32.mrf.mxu2 }
  0xd7   : > { %v995_v14 = vpop.f32.mrf.mxu3 }
  0xdb   : > { %1311 = vmatpush.bf16.xpose.msrb.mxu2 %v3993_v7 }
  0xdd   : > { %1328 = vmatpush.bf16.xpose.msra.mxu3 %v4037_v22 }
  0xe3   : > { %1312 = vmatpush.bf16.xpose.msrb.mxu2 %v4004_v11 }
  0xe5   : > { %1329 = vmatpush.bf16.xpose.msra.mxu3 %v4049_v26 }
  0xe8   : > { %v1006_v8 = vpop.f32.mrf.mxu0 }
  0xeb   : > { %1313 = vmatpush.bf16.xpose.msrb.mxu2 %v4016_v15 }
  0xed   : > { %1374 = vmatpush.bf16.xpose.msrb.mxu3 %v3998_v9  ;;  %v980_v10 = vpop.f32.mrf.mxu2 }
  0xee   : > { %v981_v20 = vadd.f32 %v980_v10, %v968_v12 }
  0xef   : > { %v1045_v14 = vpop.f32.mrf.mxu3 }
  0xf0   : > { %v994_v24 = vadd.f32 %v993_v6, %v981_v20  ;;  %v1008_v3 = vpop.f32.mrf.mxu0 }
  0xf2   : > { %v1007_v5 = vadd.f32 %v1006_v8, %v994_v24  ;;  %v4367_v24 = vld [vmem:[%s5894_s5 + $0x30] sm:$0xff] }
  0xf3   : > { %1314 = vmatpush.bf16.xpose.msrb.mxu2 %v4028_v19  ;;  %6195 = vst [vmem:[#allocation53_spill] sm:$0xff] %v4367_v24 }
  0xf4   : > { %v1020_v16 = vadd.f32 %v1019_v2, %v1007_v5  ;;  %v4357_v2 = vld [vmem:[%s5894_s5 + $0x38] sm:$0xff] }
  0xf5   : > { %1375 = vmatpush.bf16.xpose.msrb.mxu3 %v4010_v13  ;;  %v982_v26 = vpop.f32.mrf.mxu2  ;;  %6193 = vst [vmem:[#allocation51_spill] sm:$0xff] %v4357_v2  ;;  %1259 = vmatpush.bf16.msra.mxu0 %v4357_v2 }
  0xf6   : > { %1293 = vmatpush.bf16.xpose.msrb.mxu1 %v4357_v2 }
  0xf7   : > { %v1047_v13 = vpop.f32.mrf.mxu3 }
  0xf9   : > { %1260 = vmatpush.bf16.msra.mxu0 %v4367_v24 }
  0xfb   : > { %1315 = vmatpush.bf16.xpose.msrb.mxu2 %v4040_v23 }
  0xfd   : > { %1376 = vmatpush.bf16.xpose.msrb.mxu3 %v4022_v17 }
  0xfe   : > { %1294 = vmatpush.bf16.xpose.msrb.mxu1 %v4367_v24 }
 0x103   : > { %1316 = vmatpush.bf16.xpose.msrb.mxu2 %v4059_v29 }
 0x105   : > { %1377 = vmatpush.bf16.xpose.msrb.mxu3 %v4034_v21  ;;  %v1123_v6 = vpop.f32.mrf.mxu1 }
 0x108   : > { %v1110_v12 = vpop.f32.mrf.mxu0 }
 0x10b   : > { %1361 = vmatpush.bf16.xpose.msra.mxu2 %v4067_v31 }
 0x10d   : > { %1378 = vmatpush.bf16.xpose.msrb.mxu3 %v4046_v25  ;;  %v1032_v8 = vpop.f32.mrf.mxu2  ;;  %v1125_v3 = vpop.f32.mrf.mxu1 }
 0x10e   : > { %v1033_v26 = vadd.f32 %v1032_v8, %v1020_v16  ;;  %v4381_v16 = vld [vmem:[%s5894_s5 + $0x20] sm:$0xff] }
 0x10f   : > { %v1149_v20 = vpop.f32.mrf.mxu3  ;;  %6197 = vst [vmem:[#allocation55_spill] sm:$0xff] %v4381_v16 }
 0x110   : > { %v4361_v13 = vadd.f32 %v1045_v14, %v1033_v26  ;;  %v1112_v10 = vpop.f32.mrf.mxu0  ;;  %v4374_v14 = vld [vmem:[%s5894_s5 + $0x28] sm:$0xff] }
 0x111   : > { %6196 = vst [vmem:[#allocation54_spill] sm:$0xff] %v4374_v14  ;;  %1261 = vmatpush.bf16.msra.mxu0 %v4374_v14  ;;  %v4389_v10 = vld [vmem:[%s5894_s5 + $0x18] sm:$0xff]  ;;  %1295 = vmatpush.bf16.xpose.msrb.mxu1 %v4374_v14  ;;  %v4406_v14 = vld [vmem:[%s5894_s5 + $0x8] sm:$0xff] }
 0x112   : > { %6194 = vst [vmem:[#allocation52_spill] sm:$0xff] %v4361_v13 }
 0x113   : > { %1362 = vmatpush.bf16.xpose.msra.mxu2 %v4091_v39  ;;  %6198 = vst [vmem:[#allocation56_spill] sm:$0xff] %v4389_v10 }
 0x114   : > { %6200 = vst [vmem:[#allocation58_spill] sm:$0xff] %v4406_v14 }
 0x115   : > { %1379 = vmatpush.bf16.xpose.msrb.mxu3 %v4074_v34  ;;  %v1034_v5 = vpop.f32.mrf.mxu2  ;;  %v1175_v26 = vpop.f32.mrf.mxu1  ;;  %1262 = vmatpush.bf16.msra.mxu0 %v4381_v16  ;;  %v1124_v34 = vadd.f32 %v1123_v6, %v1110_v12 }
 0x117   : > { %v1151_v8 = vpop.f32.mrf.mxu3 }
 0x118   : > { %v4398_v8 = vld [vmem:[%s5894_s5 + $0x10] sm:$0xff] }
 0x119   : > { %1263 = vmatpush.bf16.msra.mxu0 %v4389_v10  ;;  %6199 = vst [vmem:[#allocation57_spill] sm:$0xff] %v4398_v8  ;;  %1296 = vmatpush.bf16.xpose.msrb.mxu1 %v4381_v16 }
 0x11b   : > { %1363 = vmatpush.bf16.xpose.msra.mxu2 %v4106_v44 }
 0x11d   : > { %1380 = vmatpush.bf16.xpose.msrb.mxu3 %v4097_v41  ;;  %v1177_v3 = vpop.f32.mrf.mxu1  ;;  %1264 = vmatpush.bf16.msra.mxu0 %v4398_v8  ;;  %v4421_v41 = vld [vmem:[%s379_s3] sm:$0xff] }
 0x121   : > { %1265 = vmatpush.bf16.msra.mxu0 %v4406_v14  ;;  %1297 = vmatpush.bf16.xpose.msrb.mxu1 %v4389_v10 }
 0x123   : > { %1364 = vmatpush.bf16.xpose.msra.mxu2 %v4123_v49 }
 0x125   : > { %1381 = vmatpush.bf16.xpose.msrb.mxu3 %v4109_v45  ;;  %v4413_v45 = vld [vmem:[%s5894_s5] sm:$0xff] }
 0x126   : > { %6201 = vst [vmem:[#allocation59_spill] sm:$0xff] %v4413_v45  ;;  %1266 = vmatpush.bf16.msra.mxu0 %v4413_v45 }
 0x128   : > { %v1162_v5 = vpop.f32.mrf.mxu0 }
 0x129   : > { %1298 = vmatpush.bf16.xpose.msrb.mxu1 %v4398_v8 }
 0x12a   : > { %1335 = vmatpush.bf16.xpose.msrb.mxu0 %v4056_v28 }
 0x12b   : > { %1365 = vmatpush.bf16.xpose.msra.mxu2 %v4136_v53 }
 0x12d   : > { %v1136_v3 = vpop.f32.mrf.mxu2 }
 0x12f   : > { %v1201_v24 = vpop.f32.mrf.mxu3 }
 0x130   : > { %v1164_v2 = vpop.f32.mrf.mxu0 }
 0x131   : > { %v534_v2 = vmul.f32 %v4421_v41, %v4421_v41  ;;  %1299 = vmatpush.bf16.xpose.msrb.mxu1 %v4406_v14 }
 0x132   : > { %1336 = vmatpush.bf16.xpose.msrb.mxu0 %v4087_v38 }
 0x133   : > { %1366 = vmatpush.bf16.xpose.msra.mxu2 %v4146_v56  ;;  %535 = vadd.xlane.f32.xlu0 %v534_v2  ;;  %v1137_v56 = vadd.f32 %v1136_v3, %v1124_v34 }
 0x135   : > { %v1138_v16 = vpop.f32.mrf.mxu2  ;;  %v1150_v25 = vadd.f32 %v1149_v20, %v1137_v56  ;;  %v6202_v20 = vld [vmem:[#allocation14_spill] sm:$0xff] }
 0x137   : > { %v1163_v16 = vadd.f32 %v1162_v5, %v1150_v25  ;;  %v6203_v25 = vld [vmem:[#allocation16_spill] sm:$0xff] }
 0x139   : > { %v1176_v10 = vadd.f32 %v1175_v26, %v1163_v16  ;;  %1300 = vmatpush.bf16.xpose.msrb.mxu1 %v4413_v45  ;;  %v6207_v26 = vld [vmem:[#allocation24_spill] sm:$0xff] }
 0x13a   : > { %1337 = vmatpush.bf16.xpose.msrb.mxu0 %v4103_v43 }
 0x13b   : > { %1367 = vmatpush.bf16.xpose.msra.mxu2 %v4156_v59  ;;  %v1203_v59 = vpop.f32.mrf.mxu3 }
 0x141   : > { %1348 = vmatpush.bf16.xpose.msra.mxu1 %v3984_v4 }
 0x142   : > { %1338 = vmatpush.bf16.xpose.msrb.mxu0 %v4115_v47 }
 0x143   : > { %1368 = vmatpush.bf16.xpose.msra.mxu2 %v4173_v32 }
 0x149   : > { %1349 = vmatpush.bf16.xpose.msra.mxu1 %v6202_v20 }
 0x14a   : > { %1339 = vmatpush.bf16.xpose.msrb.mxu0 %v4133_v52 }
 0x14d   : > { %v1188_v53 = vpop.f32.mrf.mxu2 }
 0x14e   : > { %v1189_v21 = vadd.f32 %v1188_v53, %v1176_v10  ;;  %v6204_v53 = vld [vmem:[#allocation18_spill] sm:$0xff]  ;;  %v4459_v10 = vld [vmem:[%s5895_s6] ss:$0 sm:$0xff] }
 0x14f   : > { %6208 = vst [vmem:[#allocation14_spill] sm:$0xff] %v4459_v10 }
 0x150   : > { %v1202_v59 = vadd.f32 %v1201_v24, %v1189_v21  ;;  %v6205_v21 = vld [vmem:[#allocation21_spill] sm:$0xff]  ;;  %v6206_v24 = vld [vmem:[#allocation22_spill] sm:$0xff] }
 0x151   : > { %1350 = vmatpush.bf16.xpose.msra.mxu1 %v6203_v25 }
 0x152   : > { %v4434_v12 = vadd.f32 %v1202_v59, %v4361_v13  ;;  %1340 = vmatpush.bf16.xpose.msrb.mxu0 %v4143_v55 }
 0x154   : > { %v1206_v34 = vmax.f32 %v4434_v12, 0.0  ;;  %vm1306_vm6 = vcmp.gt.f32.partialorder %v4434_v12, 0.0 }
 0x155   : > { %v1190_v56 = vpop.f32.mrf.mxu2  ;;  %vm4476_vm7 = vmpackc.low %vm1306_vm6, %vm1306_vm6 }
 0x156   : > { %v1207_v6 = vpack.c.bf16 %v1206_v34, %v1206_v34 }
 0x158   : > { %1267 = vmatmul.bf16.vlgmr.msra.gmra.mxu0 %v1207_v6 }
 0x159   : > { %1351 = vmatpush.bf16.xpose.msra.mxu1 %v6204_v53 }
 0x15a   : > { %1341 = vmatpush.bf16.xpose.msrb.mxu0 %v4153_v58 }
 0x161   : > { %1352 = vmatpush.bf16.xpose.msra.mxu1 %v6205_v21 }
 0x162   : > { %1342 = vmatpush.bf16.xpose.msrb.mxu0 %v4163_v61 }
 0x169   : > { %1353 = vmatpush.bf16.xpose.msra.mxu1 %v6206_v24 }
 0x16a   : > { %1387 = vmatpush.bf16.xpose.msra.mxu0 %v4170_v63 }
 0x171   : > { %1354 = vmatpush.bf16.xpose.msra.mxu1 %v6207_v26 }
 0x172   : > { %1388 = vmatpush.bf16.xpose.msra.mxu0 %v4195_v27 }
 0x179   : > { %1355 = vmatpush.bf16.xpose.msra.mxu1 %v4072_v33 }
 0x17a   : > { %1389 = vmatpush.bf16.xpose.msra.mxu0 %v4204_v37 }
 0x182   : > { %1390 = vmatpush.bf16.xpose.msra.mxu0 %v4210_v48 }
 0x18a   : > { %1391 = vmatpush.bf16.xpose.msra.mxu0 %v4216_v35 }
 0x192   : > { %1392 = vmatpush.bf16.xpose.msra.mxu0 %v4223_v30 }
 0x19a   : > { %1393 = vmatpush.bf16.xpose.msra.mxu0 %v4229_v40 }
 0x1a2   : > { %1394 = vmatpush.bf16.xpose.msra.mxu0 %v4235_v62 }
 0x1a6   : > { %v536_v59 = vpop.xlane.xlu0 %535 }
 0x1a7   : > { %v537_v34 = vmax.f32 %v536_v59, 1e-16 }
 0x1a9   : > { %3508 = vrsqrt.f32 %v537_v34  ;;  %vm544_vm0 = vweird.f32 %v537_v34 }
 0x1af   : > { %v3509_v56 = vpop.eup %3508 }
 0x1b0   : > { %v539_v6 = vmul.f32 %v3509_v56, %v537_v34  ;;  %vm545_vm1 = vweird.f32 %v3509_v56 }
 0x1b1   : > { %vm546_vm2 = vmor %vm544_vm0, %vm545_vm1 }
 0x1b2   : > { %v540_v14 = vmul.f32 %v3509_v56, %v539_v6 }
 0x1b4   : > { %v541_v8 = vmul.f32 0.5, %v540_v14 }
 0x1b6   : > { %v542_v33 = vsub.f32 1.5, %v541_v8 }
 0x1d5   : > { %v1268_v5 = vpop.f32.mrf.mxu0 }
 0x1d6   : > { %v1269_v3 = vadd.f32 %v4459_v10, %v1268_v5  ;;  %v543_v5 = vmul.f32 %v3509_v56, %v542_v33 }
 0x1d8   : > { %v1272_v2 = vmul.f32 %v1269_v3, %v1269_v3 }
 0x1da   : > { %1273 = vadd.xlane.f32.xlu0 %v1272_v2 }
 0x1dd   : > { %v1270_v16 = vpop.f32.mrf.mxu0 }
 0x1de   : > { %v547_v16 = vsel %vm546_vm2, %v3509_v56, %v543_v5 }
 0x24d   : > { %v1274_v13 = vpop.xlane.xlu0 %1273 }
 0x24e   : > { %v1275_v45 = vmax.f32 %v1274_v13, 1e-16  ;;  %v4463_v13 = vmul.f32 %v547_v16, %v4421_v41 }
 0x250   : > { %3510 = vrsqrt.f32 %v1275_v45  ;;  %vm1282_vm4 = vweird.f32 %v1275_v45  ;;  %6209 = vst [vmem:[#allocation16_spill] sm:$0xff] %v4463_v13 }
 0x256   : > { %v3511_v32 = vpop.eup %3510 }
 0x257   : > { %v1277_v26 = vmul.f32 %v3511_v32, %v1275_v45  ;;  %vm1283_vm3 = vweird.f32 %v3511_v32 }
 0x258   : > { %vm1284_vm5 = vmor %vm1282_vm4, %vm1283_vm3 }
 0x259   : > { %v1278_v24 = vmul.f32 %v3511_v32, %v1277_v26 }
 0x25b   : > { %v1279_v10 = vmul.f32 0.5, %v1278_v24 }
 0x25d   : > { %v1280_v2 = vsub.f32 1.5, %v1279_v10 }
 0x25f   : > { %v1281_v59 = vmul.f32 %v3511_v32, %v1280_v2 }
 0x261   : > { %v1285_v21 = vsel %vm1284_vm5, %v3511_v32, %v1281_v59  ;;  %v6244_v59 = vld [vmem:[#allocation43_spill] sm:$0xff] }
 0x262   : > { %v1286_v14 = vmul.f32 %v1285_v21, %v1269_v3 }
 0x264   : > { %v1287_v8 = vmul.f32 %v1286_v14, %v4463_v13 }
 0x266   : > { %1288 = vadd.xlane.f32.xlu1 %v1287_v8 }
 0x2d9   : > { %v1289_v34 = vpop.xlane.xlu1 %1288 }
 0x2da   : > { %v1290_v6 = vmul.f32 %v1289_v34, %v1286_v14 }
 0x2dc   : > { %v1291_v33 = vsub.f32 %v1290_v6, %v4463_v13  ;;  %v6246_v6 = vld [vmem:[#allocation44_spill] sm:$0xff] }
 0x2de   : > { %v1292_v24 = vpack.c.bf16 %v1291_v33, %v1291_v33 }
 0x2e0   : > { %1301 = vmatmul.bf16.vlgmr.msrb.gmra.mxu1 %v1292_v24 }
 0x2e1   : > { %1400 = vmatpush.bf16.xpose.msrb.mxu1 %v4082_v36 }
 0x2e9   : > { %1401 = vmatpush.bf16.xpose.msrb.mxu1 %v4100_v42 }
 0x2f1   : > { %1402 = vmatpush.bf16.xpose.msrb.mxu1 %v4112_v46  ;;  %v6212_v46 = vld [vmem:[#allocation13_spill] sm:$0xff] }
 0x2f9   : > { %1403 = vmatpush.bf16.xpose.msrb.mxu1 %v4129_v51  ;;  %v6213_v51 = vld [vmem:[#allocation12_spill] sm:$0xff] }
 0x301   : > { %1404 = vmatpush.bf16.xpose.msrb.mxu1 %v4139_v54  ;;  %v6214_v54 = vld [vmem:[#allocation15_spill] sm:$0xff] }
 0x309   : > { %1405 = vmatpush.bf16.xpose.msrb.mxu1 %v4149_v57 }
 0x311   : > { %1406 = vmatpush.bf16.xpose.msrb.mxu1 %v4159_v60 }
 0x319   : > { %1407 = vmatpush.bf16.xpose.msrb.mxu1 %v4183_v50  ;;  %v6239_v50 = vld [vmem:[#allocation47_spill] sm:$0xff] }
 0x35d   : > { %v1302_v41 = vpop.f32.mrf.mxu1 }
 0x35e   : > { %v3233_v45 = vpack.c.bf16 %v1302_v41, %v1302_v41 }
 0x360   : > { %3234 = vmatmul.msk.bf16.vlgmr.msrb.gmra.mxu2 %vm4476_vm7, %v3233_v45  ;;  %3237 = vmatmul.msk.bf16.vlgmr.msra.gmra.mxu3 %vm4476_vm7, %v3233_v45 }
 0x361   : > { %3240 = vmatmul.msk.bf16.vlgmr.msrb.gmra.mxu0 %vm4476_vm7, %v3233_v45  ;;  %3243 = vmatmul.msk.bf16.vlgmr.msra.gmra.mxu1 %vm4476_vm7, %v3233_v45 }
 0x362   : > { %1479 = vmatpush.bf16.msrb.mxu2 %v3976_v1  ;;  %1492 = vmatpush.bf16.msra.mxu3 %v3974_v0  ;;  %v6215_v0 = vld [vmem:[#allocation17_spill] sm:$0xff] }
 0x363   : > { %1505 = vmatpush.bf16.msrb.mxu0 %v4056_v28  ;;  %1557 = vmatpush.bf16.msra.mxu1 %v4170_v63  ;;  %v6217_v28 = vld [vmem:[#allocation26_spill] sm:$0xff] }
 0x365   : > { %v1304_v42 = vpop.f32.mrf.mxu1 }
 0x366   : > { %1480 = vmatpush.bf16.msrb.mxu2 %v6212_v46  ;;  %1493 = vmatpush.bf16.msra.mxu3 %v6213_v51 }
 0x367   : > { %1506 = vmatpush.bf16.msrb.mxu0 %v4087_v38  ;;  %1558 = vmatpush.bf16.msra.mxu1 %v4195_v27  ;;  %v6216_v27 = vld [vmem:[#allocation20_spill] sm:$0xff]  ;;  %v6225_v38 = vld [vmem:[#allocation30_spill] sm:$0xff] }
 0x36a   : > { %1481 = vmatpush.bf16.msrb.mxu2 %v3993_v7  ;;  %1494 = vmatpush.bf16.msra.mxu3 %v6214_v54  ;;  %v6248_v54 = vld [vmem:[#allocation51_spill] sm:$0xff] }
 0x36b   : > { %1507 = vmatpush.bf16.msrb.mxu0 %v4103_v43  ;;  %1559 = vmatpush.bf16.msra.mxu1 %v4204_v37  ;;  %v6227_v43 = vld [vmem:[#allocation37_spill] sm:$0xff] }
 0x36e   : > { %1482 = vmatpush.bf16.msrb.mxu2 %v4004_v11  ;;  %1495 = vmatpush.bf16.msra.mxu3 %v6215_v0  ;;  %v6249_v0 = vld [vmem:[#allocation42_spill] sm:$0xff] }
 0x36f   : > { %1508 = vmatpush.bf16.msrb.mxu0 %v4115_v47  ;;  %1560 = vmatpush.bf16.msra.mxu1 %v4210_v48  ;;  %v6229_v47 = vld [vmem:[#allocation29_spill] sm:$0xff]  ;;  %v6230_v48 = vld [vmem:[#allocation39_spill] sm:$0xff] }
 0x370   : > { %3246 = vmatmul.msk.bf16.vlgmr.msra.gmra.mxu2 %vm4476_vm7, %v3233_v45  ;;  %3249 = vmatmul.msk.bf16.vlgmr.msrb.gmra.mxu3 %vm4476_vm7, %v3233_v45 }
 0x371   : > { %3252 = vmatmul.msk.bf16.vlgmr.msra.gmra.mxu0 %vm4476_vm7, %v3233_v45  ;;  %3255 = vmatmul.msk.bf16.vlgmr.msrb.gmra.mxu1 %vm4476_vm7, %v3233_v45 }
 0x372   : > { %1483 = vmatpush.bf16.msrb.mxu2 %v4016_v15  ;;  %1496 = vmatpush.bf16.msra.mxu3 %v6216_v27  ;;  %v1055_v27 = vsub.f32 0.0, %v6249_v0 }
 0x373   : > { %1509 = vmatpush.bf16.msrb.mxu0 %v4133_v52  ;;  %1561 = vmatpush.bf16.msra.mxu1 %v4216_v35  ;;  %v4562_v52 = vstv %s1084_s11  ;;  %s2803_s11 = sshll.u32 %s5799_s16, 4  ;;  %s2804_s11 = int_to_ptr.vmem [resolvable:$true] %s2803_s11 }
 0x374   : > { %6233 = vst [vmem:[#allocation18_spill] sm:$0xff] %v4562_v52 }
 0x376   : > { %1484 = vmatpush.bf16.msrb.mxu2 %v4028_v19  ;;  %1497 = vmatpush.bf16.msra.mxu3 %v4025_v18  ;;  %v6218_v18 = vld [vmem:[#allocation19_spill] sm:$0xff] }
 0x377   : > { %1510 = vmatpush.bf16.msrb.mxu0 %v4143_v55  ;;  %1562 = vmatpush.bf16.msra.mxu1 %v4223_v30 }
 0x37a   : > { %1485 = vmatpush.bf16.msrb.mxu2 %v4040_v23  ;;  %1498 = vmatpush.bf16.msra.mxu3 %v4037_v22  ;;  %v6222_v22 = vld [vmem:[#allocation25_spill] sm:$0xff] }
 0x37b   : > { %1511 = vmatpush.bf16.msrb.mxu0 %v4153_v58  ;;  %1563 = vmatpush.bf16.msra.mxu1 %v4229_v40  ;;  %v4565_v58 = vstv %s1083_s21  ;;  %s2801_s21 = scalar_lea.hbm %s5896_s7, %s3430_s19  ;;  %s2788_s19 = scalar_lea.sflag [#allocation4], %s3958_s18 }
 0x37c   : > { %6234 = vst [vmem:[#allocation13_spill] sm:$0xff] %v4565_v58  ;;  %s2805_s15 = sshll.u32 %s2801_s21, 4  ;;  %s2806_s15 = int_to_ptr.hbm [resolvable:$true] %s2805_s15 }
 0x37d   : > { %s3748_s13 = sshra.s32 %s2806_s15, 4  ;;  %s3749_s13 = int_to_ptr.hbm [resolvable:$true] %s3748_s13 }
 0x37e   : > { %1486 = vmatpush.bf16.msrb.mxu2 %v4059_v29  ;;  %1499 = vmatpush.bf16.msra.mxu3 %v6217_v28  ;;  %s3750_s3 = scalar_lea.hbm %s3749_s13, 64  ;;  %p3755_p12 = scmp.lt.s32.totalorder %s3749_s13, %s5896_s7 }
 0x37f   : > { %1512 = vmatpush.bf16.msrb.mxu0 %v4163_v61  ;;  %1564 = vmatpush.bf16.msra.mxu1 %v4235_v62  ;;  %v6237_v62 = vld [vmem:[#allocation27_spill] sm:$0xff]  ;;  %p3751_p9 = scmp.ne.s32.totalorder %s3749_s13, %s3750_s3  ;;  %p3756_p13 = scmp.lt.s32.totalorder %s3754_s12, %s3750_s3 }
 0x380   : > { %v1050_v63 = vsub.f32 0.0, %v6237_v62 }
 0x381   : > { %p3752_p10 = pnand %p3751_p9, %p3936_p4  ;;  %p3757_p0 = por %p3756_p13, %p3755_p12 }
 0x382   : > { %1518 = vmatpush.bf16.msra.mxu2 %v3984_v4  ;;  %1531 = vmatpush.bf16.msrb.mxu3 %v4067_v31  ;;  %v6219_v4 = vld [vmem:[#allocation23_spill] sm:$0xff]  ;;  %v6223_v31 = vld [vmem:[#allocation22_spill] sm:$0xff]  ;;  %v4582_v26 = vmax.f32 %v1050_v63, -0.03137255 }
 0x383   : > { %1544 = vmatpush.bf16.msra.mxu0 %v3998_v9  ;;  %1636 = vmatpush.bf16.xpose.msrb.mxu1 %v3976_v1  ;;  %v6220_v1 = vld [vmem:[#allocation21_spill] sm:$0xff]  ;;  %v6221_v9 = vld [vmem:[#allocation35_spill] sm:$0xff]  ;;  %p3753_p11 = pneg %p3752_p10 }
 0x384   : > { %6241 = vst [vmem:[#allocation20_spill] sm:$0xff] %v4582_v26 }
 0x385   : > { %p3758_p2 = pnand %p3757_p0, %p3753_p11 }
 0x386   : > { %1519 = vmatpush.bf16.msra.mxu2 %v6202_v20  ;;  %1532 = vmatpush.bf16.msrb.mxu3 %v4091_v39  ;;  %v6226_v39 = vld [vmem:[#allocation24_spill] sm:$0xff]  ;;  %v1066_v20 = vsub.f32 1.0, %v6237_v62 }
 0x387   : > { %1545 = vmatpush.bf16.msra.mxu0 %v6218_v18  ;;  %v6251_v18 = vld [vmem:[#allocation31_spill] sm:$0xff] }
 0x388   : > { %v4593_v34 = vmin.f32 %v1066_v20, 0.03137255 }
 0x38a   : > { %1520 = vmatpush.bf16.msra.mxu2 %v6203_v25  ;;  %1533 = vmatpush.bf16.msrb.mxu3 %v4106_v44  ;;  %v6228_v44 = vld [vmem:[#allocation32_spill] sm:$0xff]  ;;  %6245 = vst [vmem:[#allocation23_spill] sm:$0xff] %v4593_v34 }
 0x38b   : > { %1546 = vmatpush.bf16.msra.mxu0 %v4022_v17  ;;  %1637 = vmatpush.bf16.xpose.msrb.mxu1 %v6212_v46  ;;  %v6224_v17 = vld [vmem:[#allocation36_spill] sm:$0xff] }
 0x38e   : > { %1521 = vmatpush.bf16.msra.mxu2 %v6204_v53  ;;  %1534 = vmatpush.bf16.msrb.mxu3 %v4123_v49  ;;  %v6231_v49 = vld [vmem:[#allocation33_spill] sm:$0xff] }
 0x38f   : > { %1547 = vmatpush.bf16.msra.mxu0 %v6219_v4  ;;  %v1052_v4 = vsub.f32 0.0, %v6251_v18 }
 0x392   : > { %1522 = vmatpush.bf16.msra.mxu2 %v6220_v1  ;;  %1535 = vmatpush.bf16.msrb.mxu3 %v6221_v9  ;;  %v1071_v9 = vsub.f32 1.0, %v6249_v0  ;;  %v6269_v0 = vld [vmem:[#allocation54_spill] sm:$0xff] }
 0x393   : > { %1548 = vmatpush.bf16.msra.mxu0 %v6222_v22  ;;  %1638 = vmatpush.bf16.xpose.msrb.mxu1 %v3993_v7  ;;  %v6232_v7 = vld [vmem:[#allocation38_spill] sm:$0xff] }
 0x394   : > { %v1067_v55 = vsub.f32 1.0, %v6232_v7 }
 0x396   : > { %1523 = vmatpush.bf16.msra.mxu2 %v6223_v31  ;;  %1536 = vmatpush.bf16.msrb.mxu3 %v6224_v17  ;;  %v4573_v37 = vmin.f32 %v1067_v55, 0.03137255 }
 0x397   : > { %1549 = vmatpush.bf16.msra.mxu0 %v6225_v38 }
 0x398   : > { %6238 = vst [vmem:[#allocation15_spill] sm:$0xff] %v4573_v37 }
 0x39a   : > { %1524 = vmatpush.bf16.msra.mxu2 %v6226_v39  ;;  %1537 = vmatpush.bf16.msrb.mxu3 %v6227_v43  ;;  %v1068_v39 = vsub.f32 1.0, %v6251_v18  ;;  %v6252_v43 = vld [vmem:[#allocation40_spill] sm:$0xff] }
 0x39b   : > { %1550 = vmatpush.bf16.msra.mxu0 %v6228_v44  ;;  %1639 = vmatpush.bf16.xpose.msrb.mxu1 %v4004_v11  ;;  %v1051_v11 = vsub.f32 0.0, %v6232_v7  ;;  %v1053_v44 = vsub.f32 0.0, %v6252_v43  ;;  %v6255_v7 = vld [vmem:[#allocation45_spill] sm:$0xff] }
 0x39d   : > { %v4635_v62 = vmax.f32 %v1053_v44, -0.03137255  ;;  %v6272_v44 = vld [vmem:[#allocation55_spill] sm:$0xff] }
 0x39e   : > { %1525 = vmatpush.bf16.msra.mxu2 %v6229_v47  ;;  %1538 = vmatpush.bf16.msrb.mxu3 %v6230_v48  ;;  %v4620_v47 = vmax.f32 %v1055_v27, -0.03137255 }
 0x39f   : > { %1551 = vmatpush.bf16.msra.mxu0 %v6231_v49  ;;  %v4624_v49 = vmax.f32 %v1052_v4, -0.03137255  ;;  %6260 = vst [vmem:[#allocation24_spill] sm:$0xff] %v4635_v62 }
 0x3a0   : > { %6253 = vst [vmem:[#allocation25_spill] sm:$0xff] %v4620_v47 }
 0x3a1   : > { %6254 = vst [vmem:[#allocation22_spill] sm:$0xff] %v4624_v49 }
 0x3a3   : > { %1640 = vmatpush.bf16.xpose.msrb.mxu1 %v4016_v15 }
 0x3ab   : > { %1641 = vmatpush.bf16.xpose.msrb.mxu1 %v4028_v19  ;;  %v4567_v19 = vmax.f32 %v1051_v11, -0.03137255 }
 0x3ad   : > { %6235 = vst [vmem:[#allocation12_spill] sm:$0xff] %v4567_v19 }
 0x3b3   : > { %1642 = vmatpush.bf16.xpose.msrb.mxu1 %v4040_v23 }
 0x3bb   : > { %1643 = vmatpush.bf16.xpose.msrb.mxu1 %v4059_v29  ;;  %v6236_v29 = vld [vmem:[#allocation28_spill] sm:$0xff] }
 0x3bc   : > { %v1049_v60 = vsub.f32 0.0, %v6236_v29  ;;  %v1065_v30 = vsub.f32 1.0, %v6236_v29  ;;  %v6258_v29 = vld [vmem:[#allocation50_spill] sm:$0xff] }
 0x3be   : > { %v4579_v53 = vmax.f32 %v1049_v60, -0.03137255  ;;  %v4589_v16 = vmin.f32 %v1065_v30, 0.03137255 }
 0x3c0   : > { %6240 = vst [vmem:[#allocation17_spill] sm:$0xff] %v4579_v53 }
 0x3c1   : > { %6243 = vst [vmem:[#allocation19_spill] sm:$0xff] %v4589_v16 }
 0x3de   : > { %v1344_v57 = vpop.f32.mrf.mxu0  ;;  %v1357_v15 = vpop.f32.mrf.mxu1 }
 0x3df   : > { %vm1415_vm8 = vcmp.gt.f32.partialorder %v1344_v57, 0.0  ;;  %vm1423_vm9 = vcmp.lt.f32.partialorder %v1344_v57, 0.0  ;;  %vm1424_vm14 = vcmp.lt.f32.partialorder %v1357_v15, 0.0  ;;  %vm1416_vm15 = vcmp.gt.f32.partialorder %v1357_v15, 0.0  ;;  %v6256_v57 = vld [vmem:[#allocation34_spill] sm:$0xff] }
 0x3e0   : > { %v1432_v23 = vsel %vm1423_vm9, %v4562_v52, 0.0  ;;  %v1433_v32 = vsel %vm1424_vm14, %v4562_v52, 0.0  ;;  %v1054_v15 = vsub.f32 0.0, %v6256_v57  ;;  %v1070_v30 = vsub.f32 1.0, %v6256_v57  ;;  %v6274_v57 = vld [vmem:[#allocation56_spill] sm:$0xff] }
 0x3e1   : > { %v1441_v61 = vsel %vm1415_vm8, %v4565_v58, %v1432_v23  ;;  %v1442_v22 = vsel %vm1416_vm15, %v4565_v58, %v1433_v32  ;;  %v4630_v23 = vmin.f32 %v1071_v9, 0.03137255  ;;  %v4661_v32 = vld [vmem:[#allocation5 + $0x1e8] sm:$0xff]  ;;  %v4677_v9 = vld [vmem:[#allocation5 + $0x138] sm:$0xff] }
 0x3e2   : > { %v1449_v35 = vadd.f32 %v1441_v61, %v6239_v50  ;;  %v1450_v11 = vadd.f32 %v1442_v22, %v6255_v7  ;;  %v4633_v61 = vmin.f32 %v1068_v39, 0.03137255 }
 0x3e3   : > { %v1318_v40 = vpop.f32.mrf.mxu2  ;;  %v1331_v12 = vpop.f32.mrf.mxu3  ;;  %6257 = vst [vmem:[#allocation36_spill] sm:$0xff] %v4630_v23 }
 0x3e4   : > { %v1457_v25 = vmax.f32 %v4567_v19, %v1449_v35  ;;  %vm1413_vm10 = vcmp.gt.f32.partialorder %v1318_v40, 0.0  ;;  %vm1421_vm11 = vcmp.lt.f32.partialorder %v1318_v40, 0.0  ;;  %vm1414_vm12 = vcmp.gt.f32.partialorder %v1331_v12, 0.0  ;;  %6259 = vst [vmem:[#allocation30_spill] sm:$0xff] %v4633_v61  ;;  %v6261_v35 = vld [vmem:[#allocation53_spill] sm:$0xff] }
 0x3e5   : > { %v1430_v21 = vsel %vm1421_vm11, %v4562_v52, 0.0  ;;  %vm1422_vm13 = vcmp.lt.f32.partialorder %v1331_v12, 0.0  ;;  %v4641_v12 = vld [vmem:[#allocation5 + $0x1f0] sm:$0xff]  ;;  %v1458_v20 = vmax.f32 %v4624_v49, %v1450_v11  ;;  %v4841_v49 = vld [vmem:[#allocation5 + $0x148] sm:$0xff] }
 0x3e6   : > { %v4585_v10 = vmin.f32 %v4573_v37, %v1457_v25  ;;  %v1439_v3 = vsel %vm1413_vm10, %v4565_v58, %v1430_v21  ;;  %v1431_v56 = vsel %vm1422_vm13, %v4562_v52, 0.0  ;;  %v1346_v5 = vpop.f32.mrf.mxu0  ;;  %v1359_v2 = vpop.f32.mrf.mxu1  ;;  %v4647_v21 = vmax.f32 %v1054_v15, -0.03137255  ;;  %6290 = vst [vmem:[#allocation53_spill] sm:$0xff] %v4841_v49 }
 0x3e7   : > { %v1447_v14 = vadd.f32 %v1439_v3, %v6244_v59  ;;  %v1440_v8 = vsel %vm1414_vm12, %v4565_v58, %v1431_v56 }
 0x3e8   : > { %6242 = vst [vmem:[#allocation26_spill] sm:$0xff] %v4585_v10  ;;  %v1448_v33 = vadd.f32 %v1440_v8, %v6246_v6  ;;  %v1473_v24 = vpack.c.bf16 %v4585_v10, %v4585_v10  ;;  %v6265_v8 = vld [vmem:[#allocation48_spill] sm:$0xff] }
 0x3e9   : > { %v1455_v41 = vmax.f32 %v4579_v53, %v1447_v14  ;;  %6262 = vst [vmem:[#allocation37_spill] sm:$0xff] %v4647_v21 }
 0x3ea   : > { %v1456_v45 = vmax.f32 %v4582_v26, %v1448_v33  ;;  %1513 = vmatmul.bf16.vlgmr.msrb.gmra.mxu0 %v1473_v24  ;;  %v4658_v24 = vmin.f32 %v1070_v30, 0.03137255  ;;  %v4844_v26 = vld [vmem:[#allocation5 + $0x140] sm:$0xff] }
 0x3eb   : > { %v4602_v42 = vmin.f32 %v4589_v16, %v1455_v41  ;;  %v1320_v46 = vpop.f32.mrf.mxu2  ;;  %v1333_v51 = vpop.f32.mrf.mxu3  ;;  %1620 = vmatpush.bf16.xpose.msrb.mxu0 %v6248_v54  ;;  %v6267_v41 = vld [vmem:[#allocation46_spill] sm:$0xff]  ;;  %6291 = vst [vmem:[#allocation48_spill] sm:$0xff] %v4844_v26 }
 0x3ec   : > { %v4607_v28 = vmin.f32 %v4593_v34, %v1456_v45  ;;  %6266 = vst [vmem:[#allocation39_spill] sm:$0xff] %v4658_v24  ;;  %v4667_v51 = vmin.f32 %v4633_v61, %v1458_v20  ;;  %v4716_v20 = vld [vmem:[#allocation5 + $0x1c8] sm:$0xff] }
 0x3ed   : > { %6247 = vst [vmem:[#allocation21_spill] sm:$0xff] %v4602_v42  ;;  %v1471_v1 = vpack.c.bf16 %v4602_v42, %v4602_v42 }
 0x3ee   : > { %6250 = vst [vmem:[#allocation35_spill] sm:$0xff] %v4607_v28  ;;  %v1396_v31 = vpop.f32.mrf.mxu0  ;;  %v4614_v17 = vpop.f32.mrf.mxu1  ;;  %v1472_v38 = vpack.c.bf16 %v4607_v28, %v4607_v28  ;;  %v1474_v39 = vpack.c.bf16 %v4667_v51, %v4667_v51 }
 0x3ef   : > { %vm1419_vm0 = vcmp.gt.f32.partialorder %v1396_v31, 0.0  ;;  %vm1427_vm1 = vcmp.lt.f32.partialorder %v1396_v31, 0.0  ;;  %1487 = vmatmul.bf16.vlgmr.msrb.gmra.mxu2 %v1471_v1  ;;  %6268 = vst [vmem:[#allocation33_spill] sm:$0xff] %v4667_v51  ;;  %vm1428_vm6 = vcmp.lt.f32.partialorder %v4614_v17, 0.0  ;;  %vm1420_vm7 = vcmp.gt.f32.partialorder %v4614_v17, 0.0 }
 0x3f0   : > { %v1436_v48 = vsel %vm1427_vm1, %v4562_v52, 0.0  ;;  %1500 = vmatmul.bf16.vlgmr.msra.gmra.mxu3 %v1472_v38  ;;  %1570 = vmatpush.bf16.msrb.mxu2 %v4082_v36  ;;  %v1069_v36 = vsub.f32 1.0, %v6252_v43  ;;  %v1437_v22 = vsel %vm1428_vm6, %v4562_v52, 0.0  ;;  %v4685_v38 = vld [vmem:[#allocation5 + $0x1e0] sm:$0xff] }
 0x3f1   : > { %v1445_v55 = vsel %vm1419_vm0, %v4565_v58, %v1436_v48  ;;  %1586 = vmatpush.bf16.msra.mxu3 %v6248_v54  ;;  %v6273_v48 = vld [vmem:[#allocation41_spill] sm:$0xff]  ;;  %v1446_v11 = vsel %vm1420_vm7, %v4565_v58, %v1437_v22  ;;  %v4766_v22 = vld [vmem:[#allocation5 + $0x60] sm:$0xff] }
 0x3f2   : > { %v1453_v60 = vadd.f32 %v1445_v55, %v6258_v29  ;;  %v4654_v14 = vmin.f32 %v1069_v36, 0.03137255  ;;  %v1056_v7 = vsub.f32 0.0, %v6273_v48  ;;  %v4697_v55 = vld [vmem:[#allocation5 + $0x1d8] sm:$0xff]  ;;  %v1072_v29 = vsub.f32 1.0, %v6273_v48 }
 0x3f3   : > { %v1370_v63 = vpop.f32.mrf.mxu2  ;;  %v1383_v50 = vpop.f32.mrf.mxu3  ;;  %1621 = vmatpush.bf16.xpose.msrb.mxu0 %v6261_v35  ;;  %v4778_v48 = vld [vmem:[#allocation5 + $0x58] sm:$0xff] }
 0x3f4   : > { %v1461_v40 = vmax.f32 %v4620_v47, %v1453_v60  ;;  %vm1417_vm2 = vcmp.gt.f32.partialorder %v1370_v63, 0.0  ;;  %vm1425_vm3 = vcmp.lt.f32.partialorder %v1370_v63, 0.0  ;;  %1571 = vmatpush.bf16.msrb.mxu2 %v4641_v12  ;;  %vm1418_vm4 = vcmp.gt.f32.partialorder %v1383_v50, 0.0  ;;  %6264 = vst [vmem:[#allocation29_spill] sm:$0xff] %v4654_v14  ;;  %v6276_v60 = vld [vmem:[#allocation49_spill] sm:$0xff]  ;;  %v4706_v63 = vld [vmem:[#allocation5 + $0x130] sm:$0xff] }
 0x3f5   : > { %v1434_v25 = vsel %vm1425_vm3, %v4562_v52, 0.0  ;;  %vm1426_vm5 = vcmp.lt.f32.partialorder %v1383_v50, 0.0  ;;  %1587 = vmatpush.bf16.msra.mxu3 %v6261_v35  ;;  %v4701_v15 = vmax.f32 %v1056_v7, -0.03137255  ;;  %v1454_v36 = vadd.f32 %v1446_v11, %v6276_v60  ;;  %v4709_v50 = vld [vmem:[#allocation5 + $0x1d0] sm:$0xff]  ;;  %v6277_v35 = vld [vmem:[#allocation57_spill] sm:$0xff] }
 0x3f6   : > { %v4650_v3 = vmin.f32 %v4630_v23, %v1461_v40  ;;  %v1443_v56 = vsel %vm1417_vm2, %v4565_v58, %v1434_v25  ;;  %v1435_v5 = vsel %vm1426_vm5, %v4562_v52, 0.0  ;;  %v1398_v2 = vpop.f32.mrf.mxu0  ;;  %v1411_v59 = vpop.f32.mrf.mxu1  ;;  %v4713_v30 = vmin.f32 %v1072_v29, 0.03137255  ;;  %v6279_v25 = vld [vmem:[#allocation58_spill] sm:$0xff]  ;;  %v4781_v7 = vld [vmem:[#allocation5 + $0x98] sm:$0xff]  ;;  %v4787_v11 = vld [vmem:[#allocation5 + $0xe8] sm:$0xff] }
 0x3f7   : > { %v1451_v6 = vadd.f32 %v1443_v56, %v6265_v8  ;;  %v1444_v33 = vsel %vm1418_vm4, %v4565_v58, %v1435_v5  ;;  %6275 = vst [vmem:[#allocation27_spill] sm:$0xff] %v4701_v15  ;;  %v1462_v40 = vmax.f32 %v4701_v15, %v1454_v36  ;;  %v4724_v5 = vld [vmem:[#allocation5 + $0x128] sm:$0xff]  ;;  %v4727_v2 = vld [vmem:[#allocation5 + $0x1c0] sm:$0xff]  ;;  %v6281_v59 = vld [vmem:[#allocation59_spill] sm:$0xff] }
 0x3f8   : > { %6263 = vst [vmem:[#allocation32_spill] sm:$0xff] %v4650_v3  ;;  %v1452_v45 = vadd.f32 %v1444_v33, %v6267_v41  ;;  %1572 = vmatpush.bf16.msrb.mxu2 %v4661_v32  ;;  %v1477_v46 = vpack.c.bf16 %v4650_v3, %v4650_v3  ;;  %v4736_v33 = vld [vmem:[#allocation5 + $0xb8] sm:$0xff]  ;;  %v4740_v41 = vld [vmem:[#allocation5 + $0x120] sm:$0xff]  ;;  %v4793_v29 = vld [vmem:[#allocation5 + $0x90] sm:$0xff] }
 0x3f9   : > { %v1459_v54 = vmax.f32 %v4635_v62, %v1451_v6  ;;  %1588 = vmatpush.bf16.msra.mxu3 %v6269_v0  ;;  %6278 = vst [vmem:[#allocation47_spill] sm:$0xff] %v4713_v30  ;;  %v4721_v56 = vmin.f32 %v4713_v30, %v1462_v40  ;;  %v4733_v6 = vld [vmem:[#allocation5 + $0x78] sm:$0xff]  ;;  %v4796_v60 = vld [vmem:[#allocation5 + $0xe0] sm:$0xff]  ;;  %v4799_v36 = vld [vmem:[#allocation5 + $0x48] sm:$0xff] }
 0x3fa   : > { %v1460_v27 = vmax.f32 %v4647_v21, %v1452_v45  ;;  %1565 = vmatmul.bf16.vlgmr.msra.gmra.mxu1 %v1477_v46  ;;  %v4743_v45 = vld [vmem:[#allocation5 + $0x70] sm:$0xff]  ;;  %v4805_v40 = vld [vmem:[#allocation5 + $0xd8] sm:$0xff]  ;;  %v4823_v23 = vld [vmem:[#allocation5 + $0xc8] sm:$0xff] }
 0x3fb   : > { %v4674_v18 = vmin.f32 %v4654_v14, %v1459_v54  ;;  %v1372_v4 = vpop.f32.mrf.mxu2  ;;  %v1385_v1 = vpop.f32.mrf.mxu3  ;;  %1622 = vmatpush.bf16.xpose.msrb.mxu0 %v6269_v0  ;;  %1688 = vmatpush.bf16.xpose.msra.mxu1 %v4677_v9  ;;  %6280 = vst [vmem:[#allocation43_spill] sm:$0xff] %v4721_v56  ;;  %v1478_v8 = vpack.c.bf16 %v4721_v56, %v4721_v56  ;;  %v4746_v46 = vld [vmem:[#allocation5 + $0xb0] sm:$0xff]  ;;  %v4750_v54 = vld [vmem:[#allocation5 + $0x118] sm:$0xff]  ;;  %v4753_v0 = vld [vmem:[#allocation5 + $0x68] sm:$0xff] }
 0x3fc   : > { %v4683_v31 = vmin.f32 %v4658_v24, %v1460_v27  ;;  %1573 = vmatpush.bf16.msrb.mxu2 %v4685_v38  ;;  %v4756_v27 = vld [vmem:[#allocation5 + $0xa8] sm:$0xff]  ;;  %v4760_v4 = vld [vmem:[#allocation5 + $0x110] sm:$0xff]  ;;  %v4763_v1 = vld [vmem:[#allocation5 + $0xf8] sm:$0xff]  ;;  %6286 = vst [vmem:[#allocation40_spill] sm:$0xff] %v4823_v23 }
 0x3fd   : > { %6270 = vst [vmem:[#allocation38_spill] sm:$0xff] %v4674_v18  ;;  %v1475_v43 = vpack.c.bf16 %v4674_v18, %v4674_v18  ;;  %1589 = vmatpush.bf16.msra.mxu3 %v6272_v44  ;;  %v4817_v30 = vld [vmem:[#allocation5 + $0xd0] sm:$0xff]  ;;  %v4826_v24 = vld [vmem:[#allocation5 + $0x168] sm:$0xff]  ;;  %v4829_v56 = vld [vmem:[#allocation5 + $0xc0] sm:$0xff] }
 0x3fe   : > { %6271 = vst [vmem:[#allocation28_spill] sm:$0xff] %v4683_v31  ;;  %v1476_v17 = vpack.c.bf16 %v4683_v31, %v4683_v31  ;;  %v4820_v15 = vld [vmem:[#allocation5 + $0x170] sm:$0xff]  ;;  %v4832_v47 = vld [vmem:[#allocation5 + $0x160] sm:$0xff]  ;;  %v4835_v14 = vld [vmem:[#allocation5 + $0x158] sm:$0xff] }
 0x3ff   : > { %1526 = vmatmul.bf16.vlgmr.msra.gmra.mxu2 %v1474_v39  ;;  %6282 = vst [vmem:[#allocation44_spill] sm:$0xff] %v4760_v4  ;;  %v4769_v39 = vld [vmem:[#allocation5 + $0xa0] sm:$0xff]  ;;  %v4838_v31 = vld [vmem:[#allocation5 + $0x150] sm:$0xff] }
 0x400   : > { %1539 = vmatmul.bf16.vlgmr.msrb.gmra.mxu3 %v1475_v43  ;;  %1552 = vmatmul.bf16.vlgmr.msra.gmra.mxu0 %v1476_v17  ;;  %v4772_v43 = vld [vmem:[#allocation5 + $0x108] sm:$0xff]  ;;  %v4784_v17 = vld [vmem:[#allocation5 + $0x100] sm:$0xff]  ;;  %6285 = vst [vmem:[#allocation31_spill] sm:$0xff] %v4817_v30 }
 0x401   : > { %1574 = vmatpush.bf16.msrb.mxu2 %v4697_v55  ;;  %1590 = vmatpush.bf16.msra.mxu3 %v6274_v57  ;;  %6283 = vst [vmem:[#allocation51_spill] sm:$0xff] %v4772_v43 }
 0x402   : > { %6284 = vst [vmem:[#allocation42_spill] sm:$0xff] %v4784_v17 }
 0x403   : > { %1623 = vmatpush.bf16.xpose.msrb.mxu0 %v6272_v44  ;;  %1689 = vmatpush.bf16.xpose.msra.mxu1 %v4706_v63  ;;  %v4775_v44 = vld [vmem:[#allocation5 + $0xf0] sm:$0xff]  ;;  %6287 = vst [vmem:[#allocation45_spill] sm:$0xff] %v4829_v56 }
 0x404   : > { %6288 = vst [vmem:[#allocation34_spill] sm:$0xff] %v4835_v14 }
 0x405   : > { %1575 = vmatpush.bf16.msrb.mxu2 %v4709_v50  ;;  %1591 = vmatpush.bf16.msra.mxu3 %v6277_v35  ;;  %6289 = vst [vmem:[#allocation50_spill] sm:$0xff] %v4838_v31 }
 0x409   : > { %1576 = vmatpush.bf16.msrb.mxu2 %v4716_v20  ;;  %1592 = vmatpush.bf16.msra.mxu3 %v6279_v25 }
 0x40b   : > { %1624 = vmatpush.bf16.xpose.msrb.mxu0 %v6274_v57  ;;  %1690 = vmatpush.bf16.xpose.msra.mxu1 %v4724_v5  ;;  %v4790_v57 = vld [vmem:[#allocation5 + $0x50] sm:$0xff] }
 0x40d   : > { %1577 = vmatpush.bf16.msrb.mxu2 %v4727_v2  ;;  %1593 = vmatpush.bf16.msra.mxu3 %v6281_v59 }
 0x410   : > { %1578 = vmatmul.bf16.vlgmr.msrb.gmra.mxu2 %v1478_v8  ;;  %v4814_v8 = vld [vmem:[#allocation5 + $0x178] sm:$0xff] }
 0x411   : > { %1649 = vmatpush.bf16.xpose.msra.mxu2 %v4733_v6  ;;  %1662 = vmatpush.bf16.xpose.msrb.mxu3 %v4736_v33 }
 0x413   : > { %1625 = vmatpush.bf16.xpose.msrb.mxu0 %v6277_v35  ;;  %1691 = vmatpush.bf16.xpose.msra.mxu1 %v4740_v41  ;;  %v4802_v35 = vld [vmem:[#allocation5 + $0x88] sm:$0xff] }
 0x419   : > { %1650 = vmatpush.bf16.xpose.msra.mxu2 %v4743_v45  ;;  %1663 = vmatpush.bf16.xpose.msrb.mxu3 %v4746_v46 }
 0x41b   : > { %1626 = vmatpush.bf16.xpose.msrb.mxu0 %v6279_v25  ;;  %1692 = vmatpush.bf16.xpose.msra.mxu1 %v4750_v54  ;;  %v4808_v25 = vld [vmem:[#allocation5 + $0x40] sm:$0xff] }
 0x421   : > { %1651 = vmatpush.bf16.xpose.msra.mxu2 %v4753_v0  ;;  %1664 = vmatpush.bf16.xpose.msrb.mxu3 %v4756_v27 }
 0x423   : > { %1627 = vmatpush.bf16.xpose.msrb.mxu0 %v6281_v59  ;;  %1693 = vmatpush.bf16.xpose.msra.mxu1 %v4760_v4  ;;  %v4811_v59 = vld [vmem:[#allocation5 + $0x80] sm:$0xff] }
 0x429   : > { %1652 = vmatpush.bf16.xpose.msra.mxu2 %v4766_v22  ;;  %1665 = vmatpush.bf16.xpose.msrb.mxu3 %v4769_v39 }
 0x42b   : > { %1675 = vmatpush.bf16.xpose.msra.mxu0 %v4763_v1  ;;  %1694 = vmatpush.bf16.xpose.msra.mxu1 %v4772_v43 }
 0x431   : > { %1653 = vmatpush.bf16.xpose.msra.mxu2 %v4778_v48  ;;  %1666 = vmatpush.bf16.xpose.msrb.mxu3 %v4781_v7 }
 0x433   : > { %1676 = vmatpush.bf16.xpose.msra.mxu0 %v4775_v44  ;;  %1695 = vmatpush.bf16.xpose.msra.mxu1 %v4784_v17 }
 0x439   : > { %1654 = vmatpush.bf16.xpose.msra.mxu2 %v4790_v57  ;;  %1667 = vmatpush.bf16.xpose.msrb.mxu3 %v4793_v29 }
 0x43b   : > { %1677 = vmatpush.bf16.xpose.msra.mxu0 %v4787_v11 }
 0x441   : > { %1655 = vmatpush.bf16.xpose.msra.mxu2 %v4799_v36  ;;  %1668 = vmatpush.bf16.xpose.msrb.mxu3 %v4802_v35 }
 0x443   : > { %1678 = vmatpush.bf16.xpose.msra.mxu0 %v4796_v60 }
 0x449   : > { %1656 = vmatpush.bf16.xpose.msra.mxu2 %v4808_v25  ;;  %1669 = vmatpush.bf16.xpose.msrb.mxu3 %v4811_v59 }
 0x44b   : > { %1679 = vmatpush.bf16.xpose.msra.mxu0 %v4805_v40 }
 0x451   : > { %1701 = vmatpush.bf16.xpose.msrb.mxu2 %v4814_v8 }
 0x453   : > { %1680 = vmatpush.bf16.xpose.msra.mxu0 %v4817_v30 }
 0x459   : > { %1702 = vmatpush.bf16.xpose.msrb.mxu2 %v4820_v15 }
 0x45b   : > { %1681 = vmatpush.bf16.xpose.msra.mxu0 %v4823_v23 }
 0x461   : > { %1703 = vmatpush.bf16.xpose.msrb.mxu2 %v4826_v24 }
 0x463   : > { %1682 = vmatpush.bf16.xpose.msra.mxu0 %v4829_v56 }
 0x467   : > { %v1514_v21 = vpop.f32.mrf.mxu0 }
 0x469   : > { %1704 = vmatpush.bf16.xpose.msrb.mxu2 %v4832_v47 }
 0x46f   : > { %v1516_v3 = vpop.f32.mrf.mxu0 }
 0x471   : > { %1705 = vmatpush.bf16.xpose.msrb.mxu2 %v4835_v14 }
 0x472   : > { %v1488_v62 = vpop.f32.mrf.mxu2 }
 0x473   : > { %v1501_v61 = vpop.f32.mrf.mxu3 }
 0x474   : > { %v1502_v3 = vadd.f32 %v1501_v61, %v1488_v62  ;;  %v4851_v61 = vld [vmem:[#allocation5 + $0x1b0] sm:$0xff] }
 0x475   : > { %6294 = vst [vmem:[#allocation54_spill] sm:$0xff] %v4851_v61 }
 0x476   : > { %v1515_v16 = vadd.f32 %v1514_v21, %v1502_v3 }
 0x477   : > { %v1566_v18 = vpop.f32.mrf.mxu1 }
 0x479   : > { %1706 = vmatpush.bf16.xpose.msrb.mxu2 %v4838_v31 }
 0x47a   : > { %v1490_v37 = vpop.f32.mrf.mxu2 }
 0x47b   : > { %v1503_v34 = vpop.f32.mrf.mxu3 }
 0x47c   : > { %v6292_v34 = vld [vmem:[#allocation52_spill] sm:$0xff] }
 0x47d   : > { %v1553_v51 = vpop.f32.mrf.mxu0 }
 0x47f   : > { %v1568_v19 = vpop.f32.mrf.mxu1 }
 0x481   : > { %1707 = vmatpush.bf16.xpose.msrb.mxu2 %v4841_v49 }
 0x482   : > { %v1527_v10 = vpop.f32.mrf.mxu2 }
 0x483   : > { %v1540_v28 = vpop.f32.mrf.mxu3  ;;  %v1528_v42 = vadd.f32 %v1527_v10, %v1515_v16  ;;  %v4863_v10 = vld [vmem:[#allocation5 + $0x190] sm:$0xff]  ;;  %v4866_v16 = vld [vmem:[#allocation5 + $0x188] sm:$0xff] }
 0x484   : > { %6298 = vst [vmem:[#allocation49_spill] sm:$0xff] %v4863_v10 }
 0x485   : > { %v1555_v53 = vpop.f32.mrf.mxu0  ;;  %v1541_v58 = vadd.f32 %v1540_v28, %v1528_v42  ;;  %6299 = vst [vmem:[#allocation57_spill] sm:$0xff] %v4866_v16  ;;  %v4869_v42 = vld [vmem:[#allocation5 + $0x180] sm:$0xff] }
 0x486   : > { %v4860_v53 = vld [vmem:[#allocation5 + $0x198] sm:$0xff]  ;;  %6300 = vst [vmem:[#allocation58_spill] sm:$0xff] %v4869_v42 }
 0x487   : > { %v1554_v56 = vadd.f32 %v1553_v51, %v1541_v58  ;;  %v4857_v58 = vld [vmem:[#allocation5 + $0x1a0] sm:$0xff]  ;;  %6297 = vst [vmem:[#allocation56_spill] sm:$0xff] %v4860_v53 }
 0x488   : > { %6296 = vst [vmem:[#allocation41_spill] sm:$0xff] %v4857_v58 }
 0x489   : > { %1708 = vmatpush.bf16.xpose.msrb.mxu2 %v4844_v26  ;;  %v1567_v43 = vadd.f32 %v1566_v18, %v1554_v56  ;;  %v4848_v26 = vld [vmem:[#allocation5 + $0x1b8] sm:$0xff] }
 0x48a   : > { %v1529_v52 = vpop.f32.mrf.mxu2  ;;  %6293 = vst [vmem:[#allocation46_spill] sm:$0xff] %v4848_v26 }
 0x48b   : > { %v1542_v17 = vpop.f32.mrf.mxu3  ;;  %v4854_v52 = vld [vmem:[#allocation5 + $0x1a8] sm:$0xff] }
 0x48c   : > { %6295 = vst [vmem:[#allocation55_spill] sm:$0xff] %v4854_v52 }
 0x493   : > { %v1579_v49 = vpop.f32.mrf.mxu2 }
 0x494   : > { %v1580_v37 = vadd.f32 %v1579_v49, %v1567_v43  ;;  %v6301_v49 = vld [vmem:[#allocation14_spill] sm:$0xff] }
 0x496   : > { %v1583_v23 = vadd.f32 %v1580_v37, %v6292_v34 }
 0x498   : > { %v1584_v19 = vmax.f32 %v1583_v23, 0.0  ;;  %vm1633_vm11 = vcmp.gt.f32.partialorder %v1583_v23, 0.0 }
 0x499   : > { %vm4885_vm12 = vmpackc.low %vm1633_vm11, %vm1633_vm11 }
 0x49a   : > { %v1585_v31 = vpack.c.bf16 %v1584_v19, %v1584_v19 }
 0x49b   : > { %v1581_v4 = vpop.f32.mrf.mxu2 }
 0x49c   : > { %1594 = vmatmul.bf16.vlgmr.msra.gmra.mxu3 %v1585_v31 }
 0x49d   : > { %1714 = vmatpush.bf16.xpose.msra.mxu3 %v4848_v26 }
 0x4a5   : > { %1715 = vmatpush.bf16.xpose.msra.mxu3 %v4851_v61 }
 0x4ad   : > { %1716 = vmatpush.bf16.xpose.msra.mxu3 %v4854_v52 }
 0x4b5   : > { %1717 = vmatpush.bf16.xpose.msra.mxu3 %v4857_v58 }
 0x4bd   : > { %1718 = vmatpush.bf16.xpose.msra.mxu3 %v4860_v53 }
 0x4c5   : > { %1719 = vmatpush.bf16.xpose.msra.mxu3 %v4863_v10 }
 0x4cd   : > { %1720 = vmatpush.bf16.xpose.msra.mxu3 %v4866_v16 }
 0x4d5   : > { %1721 = vmatpush.bf16.xpose.msra.mxu3 %v4869_v42 }
 0x51f   : > { %v1595_v28 = vpop.f32.mrf.mxu3 }
 0x520   : > { %v1596_v62 = vadd.f32 %v6301_v49, %v1595_v28 }
 0x522   : > { %v1599_v21 = vmul.f32 %v1596_v62, %v1596_v62 }
 0x524   : > { %1600 = vadd.xlane.f32.xlu1 %v1599_v21 }
 0x527   : > { %v1597_v51 = vpop.f32.mrf.mxu3 }
 0x597   : > { %v1601_v18 = vpop.xlane.xlu1 %1600 }
 0x598   : > { %v1602_v31 = vmax.f32 %v1601_v18, 1e-16  ;;  %v4875_v18 = vld [vmem:[#allocation5 + $0x1f8] sm:$0xff] }
 0x59a   : > { %3512 = vrsqrt.f32 %v1602_v31  ;;  %vm1609_vm9 = vweird.f32 %v1602_v31 }
 0x5a0   : > { %v3513_v56 = vpop.eup %3512 }
 0x5a1   : > { %v1604_v4 = vmul.f32 %v3513_v56, %v1602_v31  ;;  %vm1610_vm8 = vweird.f32 %v3513_v56  ;;  %v4897_v31 = vld [vmem:[#allocation5 + $0x38] sm:$0xff] }
 0x5a2   : > { %vm1611_vm10 = vmor %vm1609_vm9, %vm1610_vm8  ;;  %6304 = vst [vmem:[#allocation59_spill] sm:$0xff] %v4897_v31 }
 0x5a3   : > { %v1605_v43 = vmul.f32 %v3513_v56, %v1604_v4  ;;  %v4909_v4 = vld [vmem:[#allocation5 + $0x28] sm:$0xff] }
 0x5a4   : > { %6306 = vst [vmem:[#allocation60_spill] sm:$0xff] %v4909_v4 }
 0x5a5   : > { %v1606_v17 = vmul.f32 0.5, %v1605_v43  ;;  %v4915_v43 = vld [vmem:[#allocation5 + $0x20] sm:$0xff] }
 0x5a6   : > { %6307 = vst [vmem:[#allocation61_spill] sm:$0xff] %v4915_v43 }
 0x5a7   : > { %v1607_v3 = vsub.f32 1.5, %v1606_v17  ;;  %v4929_v17 = vld [vmem:[#allocation5 + $0x18] sm:$0xff] }
 0x5a8   : > { %6308 = vst [vmem:[#allocation62_spill] sm:$0xff] %v4929_v17 }
 0x5a9   : > { %v1608_v37 = vmul.f32 %v3513_v56, %v1607_v3  ;;  %v4935_v3 = vld [vmem:[#allocation5 + $0x10] sm:$0xff] }
 0x5aa   : > { %6309 = vst [vmem:[#allocation63_spill] sm:$0xff] %v4935_v3 }
 0x5ab   : > { %v1612_v19 = vsel %vm1611_vm10, %v3513_v56, %v1608_v37  ;;  %v4903_v56 = vld [vmem:[#allocation5 + $0x30] sm:$0xff]  ;;  %v4941_v37 = vld [vmem:[#allocation5 + $0x8] sm:$0xff] }
 0x5ac   : > { %v1613_v34 = vmul.f32 %v1612_v19, %v1596_v62  ;;  %6305 = vst [vmem:[#allocation14_spill] sm:$0xff] %v4903_v56  ;;  %v4947_v19 = vld [vmem:[#allocation5] sm:$0xff]  ;;  %v6318_v62 = vld [vmem:[#allocation45_spill] sm:$0xff] }
 0x5ad   : > { %6310 = vst [vmem:[#allocation64_spill] sm:$0xff] %v4941_v37 }
 0x5ae   : > { %v1614_v30 = vmul.f32 %v1613_v34, %v4463_v13  ;;  %6311 = vst [vmem:[#allocation65_spill] sm:$0xff] %v4947_v19 }
 0x5b0   : > { %1615 = vadd.xlane.f32.xlu2 %v1614_v30 }
 0x623   : > { %v1616_v28 = vpop.xlane.xlu2 %1615 }
 0x624   : > { %v1617_v49 = vmul.f32 %v1616_v28, %v1613_v34  ;;  %v6312_v28 = vld [vmem:[#allocation31_spill] sm:$0xff] }
 0x626   : > { %v1618_v21 = vsub.f32 %v1617_v49, %v4463_v13  ;;  %v6313_v49 = vld [vmem:[#allocation44_spill] sm:$0xff]  ;;  %v6321_v13 = vld [vmem:[#allocation18_spill] sm:$0xff] }
 0x628   : > { %v1619_v51 = vpack.c.bf16 %v1618_v21, %v1618_v21  ;;  %v6314_v21 = vld [vmem:[#allocation50_spill] sm:$0xff] }
 0x62a   : > { %1628 = vmatmul.bf16.vlgmr.msrb.gmra.mxu0 %v1619_v51  ;;  %v6315_v51 = vld [vmem:[#allocation40_spill] sm:$0xff] }
 0x62b   : > { %1727 = vmatpush.bf16.xpose.msrb.mxu0 %v4875_v18 }
 0x633   : > { %1728 = vmatpush.bf16.xpose.msrb.mxu0 %v4641_v12 }
 0x63b   : > { %1729 = vmatpush.bf16.xpose.msrb.mxu0 %v4661_v32 }
 0x643   : > { %1730 = vmatpush.bf16.xpose.msrb.mxu0 %v4685_v38 }
 0x64b   : > { %1731 = vmatpush.bf16.xpose.msrb.mxu0 %v4697_v55 }
 0x653   : > { %1732 = vmatpush.bf16.xpose.msrb.mxu0 %v4709_v50 }
 0x65b   : > { %1733 = vmatpush.bf16.xpose.msrb.mxu0 %v4716_v20 }
 0x663   : > { %1734 = vmatpush.bf16.xpose.msrb.mxu0 %v4727_v2 }
 0x6a7   : > { %v1629_v30 = vpop.f32.mrf.mxu0 }
 0x6a8   : > { %v3257_v34 = vpack.c.bf16 %v1629_v30, %v1629_v30  ;;  %v6316_v30 = vld [vmem:[#allocation51_spill] sm:$0xff] }
 0x6aa   : > { %3258 = vmatmul.msk.bf16.vlgmr.msrb.gmra.mxu1 %vm4885_vm12, %v3257_v34  ;;  %3261 = vmatmul.msk.bf16.vlgmr.msra.gmra.mxu2 %vm4885_vm12, %v3257_v34 }
 0x6ab   : > { %3264 = vmatmul.msk.bf16.vlgmr.msrb.gmra.mxu3 %vm4885_vm12, %v3257_v34  ;;  %3267 = vmatmul.msk.bf16.vlgmr.msra.gmra.mxu0 %vm4885_vm12, %v3257_v34 }
 0x6ac   : > { %1804 = vmatpush.bf16.msrb.mxu1 %v4897_v31  ;;  %1817 = vmatpush.bf16.msra.mxu2 %v4733_v6 }
 0x6ad   : > { %1830 = vmatpush.bf16.msrb.mxu3 %v4736_v33  ;;  %1882 = vmatpush.bf16.msra.mxu0 %v4848_v26 }
 0x6af   : > { %v1631_v23 = vpop.f32.mrf.mxu0 }
 0x6b0   : > { %1805 = vmatpush.bf16.msrb.mxu1 %v4903_v56  ;;  %1818 = vmatpush.bf16.msra.mxu2 %v4743_v45  ;;  %v6319_v23 = vld [vmem:[#allocation42_spill] sm:$0xff] }
 0x6b1   : > { %1831 = vmatpush.bf16.msrb.mxu3 %v4746_v46  ;;  %1883 = vmatpush.bf16.msra.mxu0 %v4851_v61 }
 0x6b4   : > { %1806 = vmatpush.bf16.msrb.mxu1 %v4909_v4  ;;  %1819 = vmatpush.bf16.msra.mxu2 %v4753_v0 }
 0x6b5   : > { %1832 = vmatpush.bf16.msrb.mxu3 %v4756_v27  ;;  %1884 = vmatpush.bf16.msra.mxu0 %v4854_v52 }
 0x6b8   : > { %1807 = vmatpush.bf16.msrb.mxu1 %v4915_v43  ;;  %1820 = vmatpush.bf16.msra.mxu2 %v4766_v22 }
 0x6b9   : > { %1833 = vmatpush.bf16.msrb.mxu3 %v4769_v39  ;;  %1885 = vmatpush.bf16.msra.mxu0 %v4857_v58  ;;  %v6324_v58 = vld [vmem:[#allocation17_spill] sm:$0xff] }
 0x6ba   : > { %3270 = vmatmul.msk.bf16.vlgmr.msra.gmra.mxu1 %vm4885_vm12, %v3257_v34  ;;  %3273 = vmatmul.msk.bf16.vlgmr.msrb.gmra.mxu2 %vm4885_vm12, %v3257_v34 }
 0x6bb   : > { %3276 = vmatmul.msk.bf16.vlgmr.msra.gmra.mxu3 %vm4885_vm12, %v3257_v34  ;;  %3279 = vmatmul.msk.bf16.vlgmr.msrb.gmra.mxu0 %vm4885_vm12, %v3257_v34  ;;  %v6317_v34 = vld [vmem:[#allocation53_spill] sm:$0xff] }
 0x6bc   : > { %1808 = vmatpush.bf16.msrb.mxu1 %v4929_v17  ;;  %1821 = vmatpush.bf16.msra.mxu2 %v4778_v48 }
 0x6bd   : > { %1834 = vmatpush.bf16.msrb.mxu3 %v4781_v7  ;;  %1886 = vmatpush.bf16.msra.mxu0 %v4860_v53 }
 0x6c0   : > { %1809 = vmatpush.bf16.msrb.mxu1 %v4935_v3  ;;  %1822 = vmatpush.bf16.msra.mxu2 %v4790_v57 }
 0x6c1   : > { %1835 = vmatpush.bf16.msrb.mxu3 %v4793_v29  ;;  %1887 = vmatpush.bf16.msra.mxu0 %v4863_v10  ;;  %v6323_v10 = vld [vmem:[#allocation21_spill] sm:$0xff] }
 0x6c4   : > { %1810 = vmatpush.bf16.msrb.mxu1 %v4941_v37  ;;  %1823 = vmatpush.bf16.msra.mxu2 %v4799_v36 }
 0x6c5   : > { %1836 = vmatpush.bf16.msrb.mxu3 %v4802_v35  ;;  %1888 = vmatpush.bf16.msra.mxu0 %v4866_v16 }
 0x6c8   : > { %1811 = vmatpush.bf16.msrb.mxu1 %v4947_v19  ;;  %1824 = vmatpush.bf16.msra.mxu2 %v4808_v25 }
 0x6c9   : > { %1837 = vmatpush.bf16.msrb.mxu3 %v4811_v59  ;;  %1889 = vmatpush.bf16.msra.mxu0 %v4869_v42  ;;  %v6322_v42 = vld [vmem:[#allocation13_spill] sm:$0xff] }
 0x6cc   : > { %1843 = vmatpush.bf16.msra.mxu1 %v4763_v1  ;;  %1856 = vmatpush.bf16.msrb.mxu2 %v4677_v9 }
 0x6cd   : > { %1869 = vmatpush.bf16.msra.mxu3 %v4814_v8  ;;  %1961 = vmatpush.bf16.xpose.msrb.mxu0 %v4897_v31 }
 0x6d0   : > { %1844 = vmatpush.bf16.msra.mxu1 %v4775_v44  ;;  %1857 = vmatpush.bf16.msrb.mxu2 %v4706_v63 }
 0x6d1   : > { %1870 = vmatpush.bf16.msra.mxu3 %v4820_v15 }
 0x6d4   : > { %1845 = vmatpush.bf16.msra.mxu1 %v4787_v11  ;;  %1858 = vmatpush.bf16.msrb.mxu2 %v4724_v5 }
 0x6d5   : > { %1871 = vmatpush.bf16.msra.mxu3 %v4826_v24  ;;  %1962 = vmatpush.bf16.xpose.msrb.mxu0 %v4903_v56  ;;  %v6320_v56 = vld [vmem:[#allocation48_spill] sm:$0xff] }
 0x6d8   : > { %1846 = vmatpush.bf16.msra.mxu1 %v4796_v60  ;;  %1859 = vmatpush.bf16.msrb.mxu2 %v4740_v41 }
 0x6d9   : > { %1872 = vmatpush.bf16.msra.mxu3 %v4832_v47 }
 0x6dc   : > { %1847 = vmatpush.bf16.msra.mxu1 %v4805_v40  ;;  %1860 = vmatpush.bf16.msrb.mxu2 %v4750_v54 }
 0x6dd   : > { %1873 = vmatpush.bf16.msra.mxu3 %v4835_v14  ;;  %1963 = vmatpush.bf16.xpose.msrb.mxu0 %v4909_v4  ;;  %v6334_v14 = vld [vmem:[#allocation15_spill] sm:$0xff] }
 0x6e0   : > { %1848 = vmatpush.bf16.msra.mxu1 %v6312_v28  ;;  %1861 = vmatpush.bf16.msrb.mxu2 %v6313_v49 }
 0x6e1   : > { %1874 = vmatpush.bf16.msra.mxu3 %v6314_v21  ;;  %v6329_v21 = vld [vmem:[#allocation20_spill] sm:$0xff] }
 0x6e4   : > { %1849 = vmatpush.bf16.msra.mxu1 %v6315_v51  ;;  %1862 = vmatpush.bf16.msrb.mxu2 %v6316_v30 }
 0x6e5   : > { %1875 = vmatpush.bf16.msra.mxu3 %v6317_v34  ;;  %1964 = vmatpush.bf16.xpose.msrb.mxu0 %v4915_v43 }
 0x6e8   : > { %1850 = vmatpush.bf16.msra.mxu1 %v6318_v62  ;;  %1863 = vmatpush.bf16.msrb.mxu2 %v6319_v23 }
 0x6e9   : > { %1876 = vmatpush.bf16.msra.mxu3 %v6320_v56 }
 0x6ed   : > { %1965 = vmatpush.bf16.xpose.msrb.mxu0 %v4929_v17 }
 0x6f5   : > { %1966 = vmatpush.bf16.xpose.msrb.mxu0 %v4935_v3 }
 0x6fd   : > { %1967 = vmatpush.bf16.xpose.msrb.mxu0 %v4941_v37  ;;  %v6325_v37 = vld [vmem:[#allocation19_spill] sm:$0xff] }
 0x705   : > { %1968 = vmatpush.bf16.xpose.msrb.mxu0 %v4947_v19 }
 0x727   : > { %v1645_v4 = vpop.f32.mrf.mxu1 }
 0x728   : > { %vm1740_vm13 = vcmp.gt.f32.partialorder %v1645_v4, 0.0  ;;  %vm1748_vm14 = vcmp.lt.f32.partialorder %v1645_v4, 0.0  ;;  %v1684_v31 = vpop.f32.mrf.mxu0 }
 0x729   : > { %v1756_v43 = vsel %vm1748_vm14, %v6321_v13, 0.0  ;;  %vm1751_vm15 = vcmp.lt.f32.partialorder %v1684_v31, 0.0  ;;  %vm1743_vm0 = vcmp.gt.f32.partialorder %v1684_v31, 0.0 }
 0x72a   : > { %v1764_v16 = vsel %vm1740_vm13, %v6322_v42, %v1756_v43  ;;  %v1759_v3 = vsel %vm1751_vm15, %v6321_v13, 0.0 }
 0x72b   : > { %v1772_v53 = vadd.f32 %v1764_v16, %v6323_v10 }
 0x72d   : > { %v1780_v52 = vmax.f32 %v6324_v58, %v1772_v53  ;;  %v1658_v17 = vpop.f32.mrf.mxu2  ;;  %v6327_v58 = vld [vmem:[#allocation35_spill] sm:$0xff] }
 0x72e   : > { %vm1741_vm1 = vcmp.gt.f32.partialorder %v1658_v17, 0.0  ;;  %vm1749_vm2 = vcmp.lt.f32.partialorder %v1658_v17, 0.0  ;;  %v1671_v19 = vpop.f32.mrf.mxu3 }
 0x72f   : > { %v4991_v61 = vmin.f32 %v6325_v37, %v1780_v52  ;;  %v1757_v4 = vsel %vm1749_vm2, %v6321_v13, 0.0  ;;  %vm1742_vm3 = vcmp.gt.f32.partialorder %v1671_v19, 0.0  ;;  %vm1750_vm4 = vcmp.lt.f32.partialorder %v1671_v19, 0.0  ;;  %v1647_v43 = vpop.f32.mrf.mxu1  ;;  %v6328_v37 = vld [vmem:[#allocation26_spill] sm:$0xff] }
 0x730   : > { %v1765_v10 = vsel %vm1741_vm1, %v6322_v42, %v1757_v4  ;;  %v1758_v16 = vsel %vm1750_vm4, %v6321_v13, 0.0  ;;  %v1686_v53 = vpop.f32.mrf.mxu0  ;;  %v1767_v52 = vsel %vm1743_vm0, %v6322_v42, %v1759_v3  ;;  %v6330_v43 = vld [vmem:[#allocation12_spill] sm:$0xff] }
 0x731   : > { %6326 = vst [vmem:[#allocation21_spill] sm:$0xff] %v4991_v61  ;;  %v1773_v26 = vadd.f32 %v1765_v10, %v6327_v58  ;;  %v1766_v56 = vsel %vm1742_vm3, %v6322_v42, %v1758_v16  ;;  %v1796_v17 = vpack.c.bf16 %v4991_v61, %v4991_v61  ;;  %v6331_v53 = vld [vmem:[#allocation33_spill] sm:$0xff]  ;;  %v6332_v58 = vld [vmem:[#allocation23_spill] sm:$0xff] }
 0x732   : > { %v1774_v34 = vadd.f32 %v1766_v56, %v6328_v37  ;;  %v1775_v62 = vadd.f32 %v1767_v52, %v6331_v53  ;;  %v6338_v53 = vld [vmem:[#allocation38_spill] sm:$0xff] }
 0x733   : > { %v1781_v19 = vmax.f32 %v6329_v21, %v1773_v26  ;;  %1812 = vmatmul.bf16.vlgmr.msrb.gmra.mxu1 %v1796_v17 }
 0x734   : > { %v1782_v4 = vmax.f32 %v6330_v43, %v1774_v34  ;;  %1895 = vmatpush.bf16.msrb.mxu1 %v4875_v18  ;;  %v6336_v34 = vld [vmem:[#allocation22_spill] sm:$0xff] }
 0x735   : > { %v5008_v10 = vmin.f32 %v6332_v58, %v1781_v19  ;;  %v1660_v16 = vpop.f32.mrf.mxu2  ;;  %v1783_v17 = vmax.f32 %v6336_v34, %v1775_v62  ;;  %v6339_v62 = vld [vmem:[#allocation30_spill] sm:$0xff] }
 0x736   : > { %v5011_v61 = vmin.f32 %v6334_v14, %v1782_v4  ;;  %v1673_v31 = vpop.f32.mrf.mxu3  ;;  %v5024_v4 = vld [vmem:[%s5894_s5 + $0x38] sm:$0xff] }
 0x737   : > { %6333 = vst [vmem:[#allocation35_spill] sm:$0xff] %v5008_v10  ;;  %v1797_v56 = vpack.c.bf16 %v5008_v10, %v5008_v10  ;;  %v1697_v3 = vpop.f32.mrf.mxu1  ;;  %v5031_v31 = vmin.f32 %v6339_v62, %v1783_v17  ;;  %v6353_v10 = vld [vmem:[#allocation36_spill] sm:$0xff] }
 0x738   : > { %6335 = vst [vmem:[#allocation26_spill] sm:$0xff] %v5011_v61  ;;  %vm1744_vm5 = vcmp.gt.f32.partialorder %v1697_v3, 0.0  ;;  %vm1752_vm6 = vcmp.lt.f32.partialorder %v1697_v3, 0.0  ;;  %v1736_v26 = vpop.f32.mrf.mxu0  ;;  %1896 = vmatpush.bf16.msrb.mxu1 %v4641_v12  ;;  %v1798_v37 = vpack.c.bf16 %v5011_v61, %v5011_v61 }
 0x739   : > { %v1760_v52 = vsel %vm1752_vm6, %v6321_v13, 0.0  ;;  %1825 = vmatmul.bf16.vlgmr.msra.gmra.mxu2 %v1797_v56  ;;  %6337 = vst [vmem:[#allocation33_spill] sm:$0xff] %v5024_v4  ;;  %vm1755_vm7 = vcmp.lt.f32.partialorder %v1736_v26, 0.0  ;;  %vm1747_vm8 = vcmp.gt.f32.partialorder %v1736_v26, 0.0  ;;  %v1799_v58 = vpack.c.bf16 %v5031_v31, %v5031_v31 }
 0x73a   : > { %v1768_v19 = vsel %vm1744_vm5, %v6322_v42, %v1760_v52  ;;  %1838 = vmatmul.bf16.vlgmr.msrb.gmra.mxu3 %v1798_v37  ;;  %1911 = vmatpush.bf16.msra.mxu2 %v5024_v4  ;;  %6340 = vst [vmem:[#allocation38_spill] sm:$0xff] %v5031_v31  ;;  %v1763_v3 = vsel %vm1755_vm7, %v6321_v13, 0.0  ;;  %v5037_v52 = vld [vmem:[%s5894_s5 + $0x30] sm:$0xff] }
 0x73b   : > { %v1776_v16 = vadd.f32 %v1768_v19, %v6338_v53  ;;  %1945 = vmatpush.bf16.xpose.msrb.mxu3 %v5024_v4  ;;  %6341 = vst [vmem:[#allocation66_spill] sm:$0xff] %v5037_v52  ;;  %v6342_v19 = vld [vmem:[#allocation24_spill] sm:$0xff] }
 0x73c   : > { %1897 = vmatpush.bf16.msrb.mxu1 %v4661_v32  ;;  %v6343_v4 = vld [vmem:[#allocation28_spill] sm:$0xff] }
 0x73d   : > { %v1710_v56 = vpop.f32.mrf.mxu2  ;;  %v1784_v53 = vmax.f32 %v6342_v19, %v1776_v16  ;;  %v1771_v16 = vsel %vm1747_vm8, %v6322_v42, %v1763_v3  ;;  %v6344_v19 = vld [vmem:[#allocation32_spill] sm:$0xff] }
 0x73e   : > { %vm1745_vm9 = vcmp.gt.f32.partialorder %v1710_v56, 0.0  ;;  %vm1753_vm10 = vcmp.lt.f32.partialorder %v1710_v56, 0.0  ;;  %v1723_v37 = vpop.f32.mrf.mxu3  ;;  %1912 = vmatpush.bf16.msra.mxu2 %v5037_v52 }
 0x73f   : > { %v1761_v34 = vsel %vm1753_vm10, %v6321_v13, 0.0  ;;  %vm1746_vm11 = vcmp.gt.f32.partialorder %v1723_v37, 0.0  ;;  %vm1754_vm12 = vcmp.lt.f32.partialorder %v1723_v37, 0.0  ;;  %v1699_v17 = vpop.f32.mrf.mxu1 }
 0x740   : > { %v1769_v62 = vsel %vm1745_vm9, %v6322_v42, %v1761_v34  ;;  %v1762_v14 = vsel %vm1754_vm12, %v6321_v13, 0.0  ;;  %v1738_v56 = vpop.f32.mrf.mxu0  ;;  %1898 = vmatpush.bf16.msrb.mxu1 %v4685_v38  ;;  %v5055_v34 = vld [vmem:[%s5894_s5 + $0x28] sm:$0xff] }
 0x741   : > { %v1777_v43 = vadd.f32 %v1769_v62, %v6343_v4  ;;  %v1770_v61 = vsel %vm1746_vm11, %v6322_v42, %v1762_v14  ;;  %6345 = vst [vmem:[#allocation28_spill] sm:$0xff] %v5055_v34  ;;  %v6346_v17 = vld [vmem:[#allocation29_spill] sm:$0xff] }
 0x742   : > { %v1778_v37 = vadd.f32 %v1770_v61, %v6344_v19  ;;  %1913 = vmatpush.bf16.msra.mxu2 %v5055_v34  ;;  %v5059_v56 = vmin.f32 %v6346_v17, %v1784_v53  ;;  %v6348_v4 = vld [vmem:[#allocation37_spill] sm:$0xff]  ;;  %v6350_v61 = vld [vmem:[#allocation43_spill] sm:$0xff] }
 0x743   : > { %v1785_v14 = vmax.f32 %v6348_v4, %v1777_v43  ;;  %1851 = vmatmul.bf16.vlgmr.msra.gmra.mxu1 %v1799_v58  ;;  %1946 = vmatpush.bf16.xpose.msrb.mxu3 %v5037_v52  ;;  %v6349_v62 = vld [vmem:[#allocation25_spill] sm:$0xff]  ;;  %v1779_v3 = vadd.f32 %v1771_v16, %v6350_v61  ;;  %v6351_v19 = vld [vmem:[#allocation39_spill] sm:$0xff]  ;;  %v5075_v43 = vld [vmem:[%s5894_s5 + $0x20] sm:$0xff] }
 0x744   : > { %6347 = vst [vmem:[#allocation32_spill] sm:$0xff] %v5059_v56  ;;  %v1786_v26 = vmax.f32 %v6349_v62, %v1778_v37  ;;  %1899 = vmatpush.bf16.msrb.mxu1 %v4697_v55  ;;  %v1800_v58 = vpack.c.bf16 %v5059_v56, %v5059_v56  ;;  %v6356_v37 = vld [vmem:[#allocation27_spill] sm:$0xff] }
 0x745   : > { %v5067_v31 = vmin.f32 %v6351_v19, %v1785_v14  ;;  %v1712_v21 = vpop.f32.mrf.mxu2  ;;  %6355 = vst [vmem:[#allocation68_spill] sm:$0xff] %v5075_v43  ;;  %v1787_v14 = vmax.f32 %v6356_v37, %v1779_v3  ;;  %v6358_v61 = vld [vmem:[#allocation47_spill] sm:$0xff]  ;;  %v5101_v3 = vld [vmem:[%s5894_s5 + $0x10] sm:$0xff]  ;;  %v6366_v37 = vld [vmem:[#allocation53_spill] sm:$0xff] }
 0x746   : > { %v5070_v42 = vmin.f32 %v6353_v10, %v1786_v26  ;;  %v1725_v53 = vpop.f32.mrf.mxu3  ;;  %1914 = vmatpush.bf16.msra.mxu2 %v5075_v43  ;;  %v5089_v26 = vld [vmem:[%s5894_s5 + $0x18] sm:$0xff]  ;;  %6360 = vst [vmem:[#allocation71_spill] sm:$0xff] %v5101_v3 }
 0x747   : > { %6352 = vst [vmem:[#allocation43_spill] sm:$0xff] %v5067_v31  ;;  %v1801_v16 = vpack.c.bf16 %v5067_v31, %v5067_v31  ;;  %v5096_v53 = vmin.f32 %v6358_v61, %v1787_v14  ;;  %v6363_v14 = vld [vmem:[#allocation34_spill] sm:$0xff] }
 0x748   : > { %6354 = vst [vmem:[#allocation67_spill] sm:$0xff] %v5070_v42  ;;  %v1802_v21 = vpack.c.bf16 %v5070_v42, %v5070_v42  ;;  %1900 = vmatpush.bf16.msrb.mxu1 %v4709_v50  ;;  %v6365_v61 = vld [vmem:[#allocation50_spill] sm:$0xff] }
 0x749   : > { %1864 = vmatmul.bf16.vlgmr.msrb.gmra.mxu2 %v1800_v58  ;;  %6357 = vst [vmem:[#allocation69_spill] sm:$0xff] %v5089_v26  ;;  %v1803_v58 = vpack.c.bf16 %v5096_v53, %v5096_v53 }
 0x74a   : > { %1877 = vmatmul.bf16.vlgmr.msra.gmra.mxu3 %v1801_v16  ;;  %1890 = vmatmul.bf16.vlgmr.msra.gmra.mxu0 %v1802_v21  ;;  %6359 = vst [vmem:[#allocation70_spill] sm:$0xff] %v5096_v53  ;;  %v5111_v16 = vld [vmem:[%s5894_s5 + $0x8] sm:$0xff]  ;;  %v5119_v21 = vld [vmem:[%s5894_s5] sm:$0xff] }
 0x74b   : > { %1915 = vmatpush.bf16.msra.mxu2 %v5089_v26  ;;  %1947 = vmatpush.bf16.xpose.msrb.mxu3 %v5055_v34  ;;  %6361 = vst [vmem:[#allocation72_spill] sm:$0xff] %v5111_v16 }
 0x74c   : > { %1901 = vmatpush.bf16.msrb.mxu1 %v4716_v20  ;;  %2013 = vmatpush.bf16.xpose.msra.mxu0 %v4677_v9  ;;  %6362 = vst [vmem:[#allocation73_spill] sm:$0xff] %v5119_v21 }
 0x74f   : > { %1916 = vmatpush.bf16.msra.mxu2 %v5101_v3 }
 0x750   : > { %1902 = vmatpush.bf16.msrb.mxu1 %v4727_v2 }
 0x753   : > { %1903 = vmatmul.bf16.vlgmr.msrb.gmra.mxu1 %v1803_v58  ;;  %1917 = vmatpush.bf16.msra.mxu2 %v5111_v16  ;;  %v6364_v58 = vld [vmem:[#allocation45_spill] sm:$0xff] }
 0x754   : > { %1974 = vmatpush.bf16.xpose.msra.mxu1 %v4733_v6  ;;  %1948 = vmatpush.bf16.xpose.msrb.mxu3 %v5075_v43 }
 0x755   : > { %2014 = vmatpush.bf16.xpose.msra.mxu0 %v4706_v63 }
 0x757   : > { %1918 = vmatpush.bf16.msra.mxu2 %v5119_v21 }
 0x75b   : > { %1987 = vmatpush.bf16.xpose.msrb.mxu2 %v4736_v33 }
 0x75c   : > { %1975 = vmatpush.bf16.xpose.msra.mxu1 %v4743_v45  ;;  %1949 = vmatpush.bf16.xpose.msrb.mxu3 %v5089_v26  ;;  %v6367_v26 = vld [vmem:[#allocation48_spill] sm:$0xff] }
 0x75d   : > { %2015 = vmatpush.bf16.xpose.msra.mxu0 %v4724_v5 }
 0x763   : > { %1988 = vmatpush.bf16.xpose.msrb.mxu2 %v4746_v46 }
 0x764   : > { %1976 = vmatpush.bf16.xpose.msra.mxu1 %v4753_v0  ;;  %1950 = vmatpush.bf16.xpose.msrb.mxu3 %v5101_v3 }
 0x765   : > { %2016 = vmatpush.bf16.xpose.msra.mxu0 %v4740_v41 }
 0x76b   : > { %1989 = vmatpush.bf16.xpose.msrb.mxu2 %v4756_v27 }
 0x76c   : > { %1977 = vmatpush.bf16.xpose.msra.mxu1 %v4766_v22  ;;  %1951 = vmatpush.bf16.xpose.msrb.mxu3 %v5111_v16 }
 0x76d   : > { %2017 = vmatpush.bf16.xpose.msra.mxu0 %v4750_v54 }
 0x773   : > { %1990 = vmatpush.bf16.xpose.msrb.mxu2 %v4769_v39 }
 0x774   : > { %1978 = vmatpush.bf16.xpose.msra.mxu1 %v4778_v48  ;;  %1952 = vmatpush.bf16.xpose.msrb.mxu3 %v5119_v21 }
 0x775   : > { %2018 = vmatpush.bf16.xpose.msra.mxu0 %v6313_v49 }
 0x77b   : > { %1991 = vmatpush.bf16.xpose.msrb.mxu2 %v4781_v7 }
 0x77c   : > { %2000 = vmatpush.bf16.xpose.msra.mxu3 %v4763_v1  ;;  %1979 = vmatpush.bf16.xpose.msra.mxu1 %v4790_v57 }
 0x77d   : > { %2019 = vmatpush.bf16.xpose.msra.mxu0 %v6316_v30 }
 0x783   : > { %1992 = vmatpush.bf16.xpose.msrb.mxu2 %v4793_v29 }
 0x784   : > { %2001 = vmatpush.bf16.xpose.msra.mxu3 %v4775_v44  ;;  %1980 = vmatpush.bf16.xpose.msra.mxu1 %v4799_v36 }
 0x785   : > { %2020 = vmatpush.bf16.xpose.msra.mxu0 %v6319_v23 }
 0x78b   : > { %1993 = vmatpush.bf16.xpose.msrb.mxu2 %v4802_v35 }
 0x78c   : > { %2002 = vmatpush.bf16.xpose.msra.mxu3 %v4787_v11  ;;  %1981 = vmatpush.bf16.xpose.msra.mxu1 %v4808_v25 }
 0x793   : > { %1994 = vmatpush.bf16.xpose.msrb.mxu2 %v4811_v59 }
 0x794   : > { %2026 = vmatpush.bf16.xpose.msrb.mxu1 %v4814_v8  ;;  %2003 = vmatpush.bf16.xpose.msra.mxu3 %v4796_v60 }
 0x79c   : > { %2027 = vmatpush.bf16.xpose.msrb.mxu1 %v4820_v15  ;;  %2004 = vmatpush.bf16.xpose.msra.mxu3 %v4805_v40 }
 0x7a4   : > { %2028 = vmatpush.bf16.xpose.msrb.mxu1 %v4826_v24  ;;  %2005 = vmatpush.bf16.xpose.msra.mxu3 %v6312_v28  ;;  %v6377_v28 = vld [vmem:[#allocation16_spill] sm:$0xff] }
 0x7ac   : > { %2029 = vmatpush.bf16.xpose.msrb.mxu1 %v4832_v47  ;;  %2006 = vmatpush.bf16.xpose.msra.mxu3 %v6315_v51  ;;  %v6368_v51 = vld [vmem:[#allocation52_spill] sm:$0xff] }
 0x7b0   : > { %v1813_v21 = vpop.f32.mrf.mxu1 }
 0x7b4   : > { %2030 = vmatpush.bf16.xpose.msrb.mxu1 %v6363_v14  ;;  %2007 = vmatpush.bf16.xpose.msra.mxu3 %v6364_v58 }
 0x7b8   : > { %v1815_v16 = vpop.f32.mrf.mxu1 }
 0x7bc   : > { %2031 = vmatpush.bf16.xpose.msrb.mxu1 %v6365_v61  ;;  %v1826_v3 = vpop.f32.mrf.mxu2 }
 0x7bd   : > { %v1839_v10 = vpop.f32.mrf.mxu3  ;;  %v1827_v62 = vadd.f32 %v1826_v3, %v1813_v21 }
 0x7bf   : > { %v1840_v43 = vadd.f32 %v1839_v10, %v1827_v62  ;;  %v6370_v10 = vld [vmem:[#allocation54_spill] sm:$0xff] }
 0x7c0   : > { %v1852_v53 = vpop.f32.mrf.mxu1 }
 0x7c1   : > { %v1853_v34 = vadd.f32 %v1852_v53, %v1840_v43 }
 0x7c4   : > { %2032 = vmatpush.bf16.xpose.msrb.mxu1 %v6366_v37  ;;  %v1828_v19 = vpop.f32.mrf.mxu2 }
 0x7c5   : > { %v1841_v42 = vpop.f32.mrf.mxu3 }
 0x7c6   : > { %v6369_v42 = vld [vmem:[#allocation46_spill] sm:$0xff] }
 0x7c7   : > { %v1891_v4 = vpop.f32.mrf.mxu0 }
 0x7c8   : > { %v1854_v17 = vpop.f32.mrf.mxu1 }
 0x7c9   : > { %v6371_v17 = vld [vmem:[#allocation55_spill] sm:$0xff] }
 0x7cc   : > { %2033 = vmatpush.bf16.xpose.msrb.mxu1 %v6367_v26  ;;  %v1865_v31 = vpop.f32.mrf.mxu2 }
 0x7cd   : > { %v1866_v56 = vadd.f32 %v1865_v31, %v1853_v34  ;;  %v1878_v52 = vpop.f32.mrf.mxu3  ;;  %v6372_v31 = vld [vmem:[#allocation41_spill] sm:$0xff]  ;;  %v5175_v34 = vld [vmem:[%s5895_s6] ss:$0 sm:$0xff] }
 0x7cf   : > { %v1879_v13 = vadd.f32 %v1878_v52, %v1866_v56  ;;  %v1893_v23 = vpop.f32.mrf.mxu0  ;;  %v6376_v52 = vld [vmem:[#allocation58_spill] sm:$0xff] }
 0x7d0   : > { %v1904_v16 = vpop.f32.mrf.mxu1  ;;  %v6373_v23 = vld [vmem:[#allocation56_spill] sm:$0xff] }
 0x7d1   : > { %v1892_v58 = vadd.f32 %v1891_v4, %v1879_v13  ;;  %v6374_v13 = vld [vmem:[#allocation49_spill] sm:$0xff] }
 0x7d3   : > { %v1905_v37 = vadd.f32 %v1904_v16, %v1892_v58 }
 0x7d4   : > { %v1867_v30 = vpop.f32.mrf.mxu2 }
 0x7d5   : > { %v1908_v61 = vadd.f32 %v1905_v37, %v6368_v51  ;;  %v1880_v49 = vpop.f32.mrf.mxu3  ;;  %v6375_v30 = vld [vmem:[#allocation57_spill] sm:$0xff] }
 0x7d7   : > { %v1909_v26 = vmax.f32 %v1908_v61, 0.0  ;;  %vm1958_vm0 = vcmp.gt.f32.partialorder %v1908_v61, 0.0  ;;  %v6404_v61 = vld [vmem:[#allocation19_spill] sm:$0xff] }
 0x7d8   : > { %v1906_v3 = vpop.f32.mrf.mxu1  ;;  %vm5188_vm1 = vmpackc.low %vm1958_vm0, %vm1958_vm0 }
 0x7d9   : > { %v1910_v19 = vpack.c.bf16 %v1909_v26, %v1909_v26 }
 0x7db   : > { %1919 = vmatmul.bf16.vlgmr.msra.gmra.mxu2 %v1910_v19 }
 0x7dc   : > { %2039 = vmatpush.bf16.xpose.msra.mxu2 %v6369_v42 }
 0x7e4   : > { %2040 = vmatpush.bf16.xpose.msra.mxu2 %v6370_v10 }
 0x7ec   : > { %2041 = vmatpush.bf16.xpose.msra.mxu2 %v6371_v17 }
 0x7f4   : > { %2042 = vmatpush.bf16.xpose.msra.mxu2 %v6372_v31 }
 0x7fc   : > { %2043 = vmatpush.bf16.xpose.msra.mxu2 %v6373_v23 }
 0x804   : > { %2044 = vmatpush.bf16.xpose.msra.mxu2 %v6374_v13 }
 0x80c   : > { %2045 = vmatpush.bf16.xpose.msra.mxu2 %v6375_v30 }
 0x814   : > { %2046 = vmatpush.bf16.xpose.msra.mxu2 %v6376_v52 }
 0x85e   : > { %v1920_v49 = vpop.f32.mrf.mxu2 }
 0x85f   : > { %v1921_v56 = vadd.f32 %v5175_v34, %v1920_v49 }
 0x861   : > { %v1924_v4 = vmul.f32 %v1921_v56, %v1921_v56 }
 0x863   : > { %1925 = vadd.xlane.f32.xlu2 %v1924_v4 }
 0x866   : > { %v1922_v62 = vpop.f32.mrf.mxu2 }
 0x8d6   : > { %v1926_v43 = vpop.xlane.xlu2 %1925 }
 0x8d7   : > { %v1927_v37 = vmax.f32 %v1926_v43, 1e-16 }
 0x8d9   : > { %3514 = vrsqrt.f32 %v1927_v37  ;;  %vm1934_vm14 = vweird.f32 %v1927_v37 }
 0x8df   : > { %v3515_v26 = vpop.eup %3514 }
 0x8e0   : > { %v1929_v53 = vmul.f32 %v3515_v26, %v1927_v37  ;;  %vm1935_vm13 = vweird.f32 %v3515_v26 }
 0x8e1   : > { %vm1936_vm15 = vmor %vm1934_vm14, %vm1935_vm13 }
 0x8e2   : > { %v1930_v21 = vmul.f32 %v3515_v26, %v1929_v53  ;;  %v6408_v53 = vld [vmem:[#allocation26_spill] sm:$0xff] }
 0x8e4   : > { %v1931_v58 = vmul.f32 0.5, %v1930_v21 }
 0x8e6   : > { %v1932_v16 = vsub.f32 1.5, %v1931_v58 }
 0x8e8   : > { %v1933_v3 = vmul.f32 %v3515_v26, %v1932_v16  ;;  %v6409_v16 = vld [vmem:[#allocation12_spill] sm:$0xff] }
 0x8ea   : > { %v1937_v19 = vsel %vm1936_vm15, %v3515_v26, %v1933_v3 }
 0x8eb   : > { %v1938_v51 = vmul.f32 %v1937_v19, %v1921_v56  ;;  %v6410_v19 = vld [vmem:[#allocation33_spill] sm:$0xff] }
 0x8ed   : > { %v1939_v14 = vmul.f32 %v1938_v51, %v6377_v28 }
 0x8ef   : > { %1940 = vadd.xlane.f32.xlu0 %v1939_v14 }
 0x962   : > { %v1941_v49 = vpop.xlane.xlu0 %1940 }
 0x963   : > { %v1942_v4 = vmul.f32 %v1941_v49, %v1938_v51  ;;  %v6411_v49 = vld [vmem:[#allocation38_spill] sm:$0xff] }
 0x965   : > { %v1943_v62 = vsub.f32 %v1942_v4, %v6377_v28 }
 0x967   : > { %v1944_v43 = vpack.c.bf16 %v1943_v62, %v1943_v62  ;;  %v6412_v62 = vld [vmem:[#allocation15_spill] sm:$0xff] }
 0x969   : > { %1953 = vmatmul.bf16.vlgmr.msrb.gmra.mxu3 %v1944_v43 }
 0x96a   : > { %2052 = vmatpush.bf16.xpose.msrb.mxu3 %v4875_v18 }
 0x972   : > { %2053 = vmatpush.bf16.xpose.msrb.mxu3 %v4641_v12  ;;  %v6380_v12 = vld [vmem:[#allocation59_spill] sm:$0xff] }
 0x97a   : > { %2054 = vmatpush.bf16.xpose.msrb.mxu3 %v4661_v32 }
 0x982   : > { %2055 = vmatpush.bf16.xpose.msrb.mxu3 %v4685_v38  ;;  %v6381_v38 = vld [vmem:[#allocation14_spill] sm:$0xff] }
 0x98a   : > { %2056 = vmatpush.bf16.xpose.msrb.mxu3 %v4697_v55  ;;  %v6382_v55 = vld [vmem:[#allocation60_spill] sm:$0xff] }
 0x992   : > { %2057 = vmatpush.bf16.xpose.msrb.mxu3 %v4709_v50  ;;  %v6383_v50 = vld [vmem:[#allocation61_spill] sm:$0xff] }
 0x99a   : > { %2058 = vmatpush.bf16.xpose.msrb.mxu3 %v4716_v20  ;;  %v6384_v20 = vld [vmem:[#allocation62_spill] sm:$0xff] }
 0x9a2   : > { %2059 = vmatpush.bf16.xpose.msrb.mxu3 %v4727_v2  ;;  %v6385_v2 = vld [vmem:[#allocation63_spill] sm:$0xff] }
 0x9ec   : > { %v1954_v51 = vpop.f32.mrf.mxu3 }
 0x9ed   : > { %v3281_v14 = vpack.c.bf16 %v1954_v51, %v1954_v51 }
 0x9ef   : > { %3282 = vmatmul.msk.bf16.vlgmr.msrb.gmra.mxu0 %vm5188_vm1, %v3281_v14  ;;  %3285 = vmatmul.msk.bf16.vlgmr.msra.gmra.mxu1 %vm5188_vm1, %v3281_v14 }
 0x9f0   : > { %3288 = vmatmul.msk.bf16.vlgmr.msrb.gmra.mxu2 %vm5188_vm1, %v3281_v14  ;;  %3291 = vmatmul.msk.bf16.vlgmr.msra.gmra.mxu3 %vm5188_vm1, %v3281_v14 }
 0x9f1   : > { %2129 = vmatpush.bf16.msrb.mxu0 %v6380_v12  ;;  %2142 = vmatpush.bf16.msra.mxu1 %v4733_v6  ;;  %v6386_v6 = vld [vmem:[#allocation64_spill] sm:$0xff] }
 0x9f2   : > { %2155 = vmatpush.bf16.msrb.mxu2 %v4736_v33  ;;  %2207 = vmatpush.bf16.msra.mxu3 %v6369_v42  ;;  %v6387_v33 = vld [vmem:[#allocation65_spill] sm:$0xff] }
 0x9f4   : > { %v1956_v32 = vpop.f32.mrf.mxu3 }
 0x9f5   : > { %2130 = vmatpush.bf16.msrb.mxu0 %v6381_v38  ;;  %2143 = vmatpush.bf16.msra.mxu1 %v4743_v45  ;;  %v6393_v45 = vld [vmem:[#allocation51_spill] sm:$0xff] }
 0x9f6   : > { %2156 = vmatpush.bf16.msrb.mxu2 %v4746_v46  ;;  %2208 = vmatpush.bf16.msra.mxu3 %v6370_v10  ;;  %v6396_v46 = vld [vmem:[#allocation42_spill] sm:$0xff]  ;;  %v6406_v10 = vld [vmem:[#allocation23_spill] sm:$0xff] }
 0x9f9   : > { %2131 = vmatpush.bf16.msrb.mxu0 %v6382_v55  ;;  %2144 = vmatpush.bf16.msra.mxu1 %v4753_v0 }
 0x9fa   : > { %2157 = vmatpush.bf16.msrb.mxu2 %v4756_v27  ;;  %2209 = vmatpush.bf16.msra.mxu3 %v6371_v17 }
 0x9fd   : > { %2132 = vmatpush.bf16.msrb.mxu0 %v6383_v50  ;;  %2145 = vmatpush.bf16.msra.mxu1 %v4766_v22 }
 0x9fe   : > { %2158 = vmatpush.bf16.msrb.mxu2 %v4769_v39  ;;  %2210 = vmatpush.bf16.msra.mxu3 %v6372_v31 }
 0x9ff   : > { %3294 = vmatmul.msk.bf16.vlgmr.msra.gmra.mxu0 %vm5188_vm1, %v3281_v14  ;;  %3297 = vmatmul.msk.bf16.vlgmr.msrb.gmra.mxu1 %vm5188_vm1, %v3281_v14 }
 0xa00   : > { %3300 = vmatmul.msk.bf16.vlgmr.msra.gmra.mxu2 %vm5188_vm1, %v3281_v14  ;;  %3303 = vmatmul.msk.bf16.vlgmr.msrb.gmra.mxu3 %vm5188_vm1, %v3281_v14 }
 0xa01   : > { %2133 = vmatpush.bf16.msrb.mxu0 %v6384_v20  ;;  %2146 = vmatpush.bf16.msra.mxu1 %v4778_v48 }
 0xa02   : > { %2159 = vmatpush.bf16.msrb.mxu2 %v4781_v7  ;;  %2211 = vmatpush.bf16.msra.mxu3 %v6373_v23 }
 0xa05   : > { %2134 = vmatpush.bf16.msrb.mxu0 %v6385_v2  ;;  %2147 = vmatpush.bf16.msra.mxu1 %v4790_v57 }
 0xa06   : > { %2160 = vmatpush.bf16.msrb.mxu2 %v4793_v29  ;;  %2212 = vmatpush.bf16.msra.mxu3 %v6374_v13  ;;  %v6401_v29 = vld [vmem:[#allocation35_spill] sm:$0xff] }
 0xa09   : > { %2135 = vmatpush.bf16.msrb.mxu0 %v6386_v6  ;;  %2148 = vmatpush.bf16.msra.mxu1 %v4799_v36  ;;  %v6402_v36 = vld [vmem:[#allocation17_spill] sm:$0xff] }
 0xa0a   : > { %2161 = vmatpush.bf16.msrb.mxu2 %v4802_v35  ;;  %2213 = vmatpush.bf16.msra.mxu3 %v6375_v30 }
 0xa0d   : > { %2136 = vmatpush.bf16.msrb.mxu0 %v6387_v33  ;;  %2149 = vmatpush.bf16.msra.mxu1 %v4808_v25 }
 0xa0e   : > { %2162 = vmatpush.bf16.msrb.mxu2 %v4811_v59  ;;  %2214 = vmatpush.bf16.msra.mxu3 %v6376_v52 }
 0xa11   : > { %2168 = vmatpush.bf16.msra.mxu0 %v4763_v1  ;;  %2181 = vmatpush.bf16.msrb.mxu1 %v4677_v9  ;;  %v6388_v9 = vld [vmem:[#allocation34_spill] sm:$0xff] }
 0xa12   : > { %2194 = vmatpush.bf16.msra.mxu2 %v4814_v8  ;;  %2286 = vmatpush.bf16.xpose.msrb.mxu3 %v6380_v12  ;;  %v6398_v1 = vld [vmem:[#allocation18_spill] sm:$0xff] }
 0xa15   : > { %2169 = vmatpush.bf16.msra.mxu0 %v4775_v44  ;;  %2182 = vmatpush.bf16.msrb.mxu1 %v4706_v63  ;;  %v6390_v63 = vld [vmem:[#allocation44_spill] sm:$0xff]  ;;  %v6399_v44 = vld [vmem:[#allocation13_spill] sm:$0xff] }
 0xa16   : > { %2195 = vmatpush.bf16.msra.mxu2 %v4820_v15  ;;  %v6389_v15 = vld [vmem:[#allocation31_spill] sm:$0xff] }
 0xa19   : > { %2170 = vmatpush.bf16.msra.mxu0 %v4787_v11  ;;  %2183 = vmatpush.bf16.msrb.mxu1 %v4724_v5  ;;  %v6392_v5 = vld [vmem:[#allocation40_spill] sm:$0xff]  ;;  %v6400_v11 = vld [vmem:[#allocation21_spill] sm:$0xff] }
 0xa1a   : > { %2196 = vmatpush.bf16.msra.mxu2 %v4826_v24  ;;  %2287 = vmatpush.bf16.xpose.msrb.mxu3 %v6381_v38  ;;  %v6391_v24 = vld [vmem:[#allocation50_spill] sm:$0xff] }
 0xa1b   : > { %v5304_v38 = vld [vmem:[#allocation5 + $0x1f0] sm:$0xff] }
 0xa1d   : > { %2171 = vmatpush.bf16.msra.mxu0 %v4796_v60  ;;  %2184 = vmatpush.bf16.msrb.mxu1 %v4740_v41  ;;  %v6394_v41 = vld [vmem:[#allocation53_spill] sm:$0xff] }
 0xa1e   : > { %2197 = vmatpush.bf16.msra.mxu2 %v4832_v47  ;;  %v6395_v47 = vld [vmem:[#allocation45_spill] sm:$0xff] }
 0xa21   : > { %2172 = vmatpush.bf16.msra.mxu0 %v4805_v40  ;;  %2185 = vmatpush.bf16.msrb.mxu1 %v4750_v54  ;;  %v6397_v54 = vld [vmem:[#allocation48_spill] sm:$0xff] }
 0xa22   : > { %2198 = vmatpush.bf16.msra.mxu2 %v6388_v9  ;;  %2288 = vmatpush.bf16.xpose.msrb.mxu3 %v6382_v55  ;;  %v6403_v40 = vld [vmem:[#allocation20_spill] sm:$0xff]  ;;  %v6415_v55 = vld [vmem:[#allocation22_spill] sm:$0xff] }
 0xa25   : > { %2173 = vmatpush.bf16.msra.mxu0 %v6389_v15  ;;  %2186 = vmatpush.bf16.msrb.mxu1 %v6390_v63  ;;  %v6417_v63 = vld [vmem:[#allocation43_spill] sm:$0xff] }
 0xa26   : > { %2199 = vmatpush.bf16.msra.mxu2 %v6391_v24 }
 0xa29   : > { %2174 = vmatpush.bf16.msra.mxu0 %v6392_v5  ;;  %2187 = vmatpush.bf16.msrb.mxu1 %v6393_v45  ;;  %v5316_v5 = vld [vmem:[#allocation5 + $0x1e8] sm:$0xff]  ;;  %v6418_v45 = vld [vmem:[#allocation28_spill] sm:$0xff] }
 0xa2a   : > { %2200 = vmatpush.bf16.msra.mxu2 %v6394_v41  ;;  %2289 = vmatpush.bf16.xpose.msrb.mxu3 %v6383_v50  ;;  %v6419_v41 = vld [vmem:[#allocation30_spill] sm:$0xff] }
 0xa2d   : > { %2175 = vmatpush.bf16.msra.mxu0 %v6395_v47  ;;  %2188 = vmatpush.bf16.msrb.mxu1 %v6396_v46  ;;  %v6421_v46 = vld [vmem:[#allocation24_spill] sm:$0xff] }
 0xa2e   : > { %2201 = vmatpush.bf16.msra.mxu2 %v6397_v54 }
 0xa32   : > { %2290 = vmatpush.bf16.xpose.msrb.mxu3 %v6384_v20 }
 0xa3a   : > { %2291 = vmatpush.bf16.xpose.msrb.mxu3 %v6385_v2 }
 0xa42   : > { %2292 = vmatpush.bf16.xpose.msrb.mxu3 %v6386_v6 }
 0xa4a   : > { %2293 = vmatpush.bf16.xpose.msrb.mxu3 %v6387_v33  ;;  %v6416_v33 = vld [vmem:[#allocation32_spill] sm:$0xff] }
 0xa6c   : > { %v1970_v0 = vpop.f32.mrf.mxu0  ;;  %v1983_v27 = vpop.f32.mrf.mxu1 }
 0xa6d   : > { %vm2065_vm2 = vcmp.gt.f32.partialorder %v1970_v0, 0.0  ;;  %vm2073_vm3 = vcmp.lt.f32.partialorder %v1970_v0, 0.0  ;;  %vm2066_vm4 = vcmp.gt.f32.partialorder %v1983_v27, 0.0  ;;  %vm2074_vm5 = vcmp.lt.f32.partialorder %v1983_v27, 0.0 }
 0xa6e   : > { %v2081_v22 = vsel %vm2073_vm3, %v6398_v1, 0.0  ;;  %v2082_v39 = vsel %vm2074_vm5, %v6398_v1, 0.0 }
 0xa6f   : > { %v2089_v48 = vsel %vm2065_vm2, %v6399_v44, %v2081_v22  ;;  %v2090_v7 = vsel %vm2066_vm4, %v6399_v44, %v2082_v39  ;;  %v6422_v22 = vld [vmem:[#allocation29_spill] sm:$0xff] }
 0xa70   : > { %v2097_v57 = vadd.f32 %v2089_v48, %v6400_v11  ;;  %v2098_v60 = vadd.f32 %v2090_v7, %v6401_v29  ;;  %v6424_v11 = vld [vmem:[#allocation37_spill] sm:$0xff] }
 0xa72   : > { %v2105_v35 = vmax.f32 %v6402_v36, %v2097_v57  ;;  %v2106_v25 = vmax.f32 %v6403_v40, %v2098_v60  ;;  %v5329_v60 = vld [vmem:[#allocation5 + $0x1e0] sm:$0xff] }
 0xa73   : > { %v1996_v59 = vpop.f32.mrf.mxu2  ;;  %v2009_v8 = vpop.f32.mrf.mxu3 }
 0xa74   : > { %v5281_v42 = vmin.f32 %v6404_v61, %v2105_v35  ;;  %v5284_v17 = vmin.f32 %v6406_v10, %v2106_v25  ;;  %vm2067_vm6 = vcmp.gt.f32.partialorder %v1996_v59, 0.0  ;;  %vm2075_vm7 = vcmp.lt.f32.partialorder %v1996_v59, 0.0  ;;  %v1972_v31 = vpop.f32.mrf.mxu0  ;;  %v1985_v23 = vpop.f32.mrf.mxu1  ;;  %v6425_v35 = vld [vmem:[#allocation68_spill] sm:$0xff] }
 0xa75   : > { %v2083_v13 = vsel %vm2075_vm7, %v6398_v1, 0.0  ;;  %vm2068_vm8 = vcmp.gt.f32.partialorder %v2009_v8, 0.0  ;;  %vm2076_vm9 = vcmp.lt.f32.partialorder %v2009_v8, 0.0  ;;  %v6426_v23 = vld [vmem:[#allocation67_spill] sm:$0xff] }
 0xa76   : > { %6405 = vst [vmem:[#allocation46_spill] sm:$0xff] %v5281_v42  ;;  %v2121_v30 = vpack.c.bf16 %v5281_v42, %v5281_v42  ;;  %v2122_v52 = vpack.c.bf16 %v5284_v17, %v5284_v17  ;;  %v2091_v37 = vsel %vm2067_vm6, %v6399_v44, %v2083_v13  ;;  %v2084_v26 = vsel %vm2076_vm9, %v6398_v1, 0.0  ;;  %v5499_v42 = vld [vmem:[#allocation5 + $0x140] sm:$0xff] }
 0xa77   : > { %6407 = vst [vmem:[#allocation54_spill] sm:$0xff] %v5284_v17  ;;  %v2099_v21 = vadd.f32 %v2091_v37, %v6408_v53  ;;  %v2092_v58 = vsel %vm2068_vm8, %v6399_v44, %v2084_v26  ;;  %v6429_v26 = vld [vmem:[#allocation25_spill] sm:$0xff] }
 0xa78   : > { %2137 = vmatmul.bf16.vlgmr.msrb.gmra.mxu0 %v2121_v30  ;;  %2150 = vmatmul.bf16.vlgmr.msra.gmra.mxu1 %v2122_v52  ;;  %v2100_v4 = vadd.f32 %v2092_v58, %v6411_v49  ;;  %v6427_v52 = vld [vmem:[#allocation39_spill] sm:$0xff]  ;;  %v6430_v58 = vld [vmem:[#allocation69_spill] sm:$0xff]  ;;  %v6432_v49 = vld [vmem:[#allocation36_spill] sm:$0xff]  ;;  %6450 = vst [vmem:[#allocation44_spill] sm:$0xff] %v5499_v42 }
 0xa79   : > { %v2107_v3 = vmax.f32 %v6409_v16, %v2099_v21  ;;  %2220 = vmatpush.bf16.msrb.mxu0 %v4875_v18  ;;  %2236 = vmatpush.bf16.msra.mxu1 %v6410_v19  ;;  %v6414_v18 = vld [vmem:[#allocation66_spill] sm:$0xff]  ;;  %v5345_v21 = vld [vmem:[#allocation5 + $0x1d8] sm:$0xff] }
 0xa7a   : > { %v2108_v50 = vmax.f32 %v6415_v55, %v2100_v4 }
 0xa7b   : > { %v5300_v43 = vmin.f32 %v6412_v62, %v2107_v3  ;;  %v1998_v51 = vpop.f32.mrf.mxu2  ;;  %v2011_v14 = vpop.f32.mrf.mxu3  ;;  %v6431_v3 = vld [vmem:[#allocation70_spill] sm:$0xff] }
 0xa7c   : > { %v2022_v56 = vpop.f32.mrf.mxu0  ;;  %v2035_v12 = vpop.f32.mrf.mxu1  ;;  %v5321_v47 = vmin.f32 %v6419_v41, %v2108_v50  ;;  %v6434_v50 = vld [vmem:[#allocation71_spill] sm:$0xff]  ;;  %v5484_v41 = vld [vmem:[#allocation5 + $0xc8] sm:$0xff] }
 0xa7d   : > { %6413 = vst [vmem:[#allocation55_spill] sm:$0xff] %v5300_v43  ;;  %v2123_v32 = vpack.c.bf16 %v5300_v43, %v5300_v43  ;;  %vm2069_vm10 = vcmp.gt.f32.partialorder %v2022_v56, 0.0  ;;  %vm2077_vm11 = vcmp.lt.f32.partialorder %v2022_v56, 0.0  ;;  %vm2070_vm12 = vcmp.gt.f32.partialorder %v2035_v12, 0.0  ;;  %2221 = vmatpush.bf16.msrb.mxu0 %v5304_v38  ;;  %2237 = vmatpush.bf16.msra.mxu1 %v6414_v18 }
 0xa7e   : > { %v2085_v20 = vsel %vm2077_vm11, %v6398_v1, 0.0  ;;  %vm2078_vm13 = vcmp.lt.f32.partialorder %v2035_v12, 0.0  ;;  %6420 = vst [vmem:[#allocation41_spill] sm:$0xff] %v5321_v47  ;;  %v2124_v25 = vpack.c.bf16 %v5321_v47, %v5321_v47 }
 0xa7f   : > { %v2093_v2 = vsel %vm2069_vm10, %v6399_v44, %v2085_v20  ;;  %v2086_v6 = vsel %vm2078_vm13, %v6398_v1, 0.0  ;;  %2163 = vmatmul.bf16.vlgmr.msrb.gmra.mxu2 %v2123_v32  ;;  %v5358_v32 = vld [vmem:[#allocation5 + $0x1d0] sm:$0xff]  ;;  %v6435_v20 = vld [vmem:[#allocation27_spill] sm:$0xff]  ;;  %6445 = vst [vmem:[#allocation63_spill] sm:$0xff] %v5484_v41 }
 0xa80   : > { %v2101_v9 = vadd.f32 %v2093_v2, %v6416_v33  ;;  %v2094_v15 = vsel %vm2070_vm12, %v6399_v44, %v2086_v6  ;;  %2270 = vmatpush.bf16.xpose.msrb.mxu2 %v6410_v19  ;;  %v5366_v6 = vld [vmem:[#allocation5 + $0x1c8] sm:$0xff]  ;;  %v6436_v33 = vld [vmem:[#allocation72_spill] sm:$0xff] }
 0xa81   : > { %v2102_v24 = vadd.f32 %v2094_v15, %v6417_v63  ;;  %2222 = vmatpush.bf16.msrb.mxu0 %v5316_v5  ;;  %2238 = vmatpush.bf16.msra.mxu1 %v6418_v45  ;;  %v5374_v63 = vld [vmem:[#allocation5 + $0x1c0] sm:$0xff] }
 0xa82   : > { %v2109_v54 = vmax.f32 %v6421_v46, %v2101_v9  ;;  %v6437_v9 = vld [vmem:[#allocation47_spill] sm:$0xff]  ;;  %v5481_v46 = vld [vmem:[#allocation5 + $0x160] sm:$0xff] }
 0xa83   : > { %v2048_v0 = vpop.f32.mrf.mxu2  ;;  %v2061_v27 = vpop.f32.mrf.mxu3  ;;  %v2110_v57 = vmax.f32 %v6424_v11, %v2102_v24  ;;  %v6439_v24 = vld [vmem:[#allocation73_spill] sm:$0xff] }
 0xa84   : > { %v5325_v39 = vmin.f32 %v6422_v22, %v2109_v54  ;;  %vm2071_vm14 = vcmp.gt.f32.partialorder %v2048_v0, 0.0  ;;  %vm2079_vm15 = vcmp.lt.f32.partialorder %v2048_v0, 0.0  ;;  %vm2072_vm0 = vcmp.gt.f32.partialorder %v2061_v27, 0.0  ;;  %v2024_v48 = vpop.f32.mrf.mxu0  ;;  %v2037_v7 = vpop.f32.mrf.mxu1  ;;  %v5380_v0 = vld [vmem:[#allocation5 + $0x78] sm:$0xff]  ;;  %v5478_v22 = vld [vmem:[#allocation5 + $0xd0] sm:$0xff] }
 0xa85   : > { %v2087_v29 = vsel %vm2079_vm15, %v6398_v1, 0.0  ;;  %vm2080_vm1 = vcmp.lt.f32.partialorder %v2061_v27, 0.0  ;;  %2223 = vmatpush.bf16.msrb.mxu0 %v5329_v60  ;;  %2239 = vmatpush.bf16.msra.mxu1 %v6425_v35  ;;  %v5342_v37 = vmin.f32 %v6427_v52, %v2110_v57  ;;  %v5383_v27 = vld [vmem:[#allocation5 + $0xb8] sm:$0xff]  ;;  %v5386_v48 = vld [vmem:[#allocation5 + $0x130] sm:$0xff]  ;;  %v5396_v57 = vld [vmem:[#allocation5 + $0x128] sm:$0xff]  ;;  %6444 = vst [vmem:[#allocation62_spill] sm:$0xff] %v5478_v22 }
 0xa86   : > { %6423 = vst [vmem:[#allocation56_spill] sm:$0xff] %v5325_v39  ;;  %v2125_v59 = vpack.c.bf16 %v5325_v39, %v5325_v39  ;;  %v2095_v8 = vsel %vm2071_vm14, %v6399_v44, %v2087_v29  ;;  %v2088_v31 = vsel %vm2080_vm1, %v6398_v1, 0.0  ;;  %v5393_v7 = vld [vmem:[#allocation5 + $0xb0] sm:$0xff]  ;;  %v5400_v29 = vld [vmem:[#allocation5 + $0x68] sm:$0xff]  ;;  %v5487_v39 = vld [vmem:[#allocation5 + $0x158] sm:$0xff] }
 0xa87   : > { %v2103_v13 = vadd.f32 %v2095_v8, %v6426_v23  ;;  %v2096_v30 = vsel %vm2072_vm0, %v6399_v44, %v2088_v31  ;;  %6428 = vst [vmem:[#allocation49_spill] sm:$0xff] %v5342_v37  ;;  %v2126_v56 = vpack.c.bf16 %v5342_v37, %v5342_v37  ;;  %v5413_v8 = vld [vmem:[#allocation5 + $0xa0] sm:$0xff]  ;;  %v5416_v31 = vld [vmem:[#allocation5 + $0x118] sm:$0xff]  ;;  %v5496_v37 = vld [vmem:[#allocation5 + $0x148] sm:$0xff] }
 0xa88   : > { %2176 = vmatmul.bf16.vlgmr.msra.gmra.mxu0 %v2124_v25  ;;  %2189 = vmatmul.bf16.vlgmr.msrb.gmra.mxu1 %v2125_v59  ;;  %v2104_v19 = vadd.f32 %v2096_v30, %v6431_v3  ;;  %v5403_v25 = vld [vmem:[#allocation5 + $0xa8] sm:$0xff]  ;;  %v5410_v59 = vld [vmem:[#allocation5 + $0x60] sm:$0xff]  ;;  %6440 = vst [vmem:[#allocation59_spill] sm:$0xff] %v5416_v31  ;;  %v5420_v23 = vld [vmem:[#allocation5 + $0x58] sm:$0xff] }
 0xa89   : > { %v2111_v53 = vmax.f32 %v6429_v26, %v2103_v13  ;;  %2224 = vmatpush.bf16.msrb.mxu0 %v5345_v21  ;;  %2240 = vmatpush.bf16.msra.mxu1 %v6430_v58  ;;  %v5423_v13 = vld [vmem:[#allocation5 + $0x98] sm:$0xff]  ;;  %v5426_v30 = vld [vmem:[#allocation5 + $0x110] sm:$0xff]  ;;  %6446 = vst [vmem:[#allocation64_spill] sm:$0xff] %v5487_v39 }
 0xa8a   : > { %2271 = vmatpush.bf16.xpose.msrb.mxu2 %v6414_v18  ;;  %v2112_v2 = vmax.f32 %v6435_v20, %v2104_v19  ;;  %v5363_v18 = vld [vmem:[#allocation5 + $0x138] sm:$0xff]  ;;  %6441 = vst [vmem:[#allocation14_spill] sm:$0xff] %v5426_v30  ;;  %v5436_v3 = vld [vmem:[#allocation5 + $0x90] sm:$0xff]  ;;  %v5439_v19 = vld [vmem:[#allocation5 + $0x108] sm:$0xff] }
 0xa8b   : > { %v5352_v4 = vmin.f32 %v6432_v49, %v2111_v53  ;;  %v2050_v51 = vpop.f32.mrf.mxu2  ;;  %v2063_v14 = vpop.f32.mrf.mxu3  ;;  %v5430_v53 = vld [vmem:[#allocation5 + $0xf8] sm:$0xff]  ;;  %6442 = vst [vmem:[#allocation60_spill] sm:$0xff] %v5439_v19  ;;  %v5490_v49 = vld [vmem:[#allocation5 + $0xc0] sm:$0xff]  ;;  %v5493_v26 = vld [vmem:[#allocation5 + $0x150] sm:$0xff] }
 0xa8c   : > { %v5371_v15 = vmin.f32 %v6437_v9, %v2112_v2  ;;  %v5442_v51 = vld [vmem:[#allocation5 + $0xf0] sm:$0xff]  ;;  %v5445_v14 = vld [vmem:[#allocation5 + $0x48] sm:$0xff]  ;;  %v5457_v2 = vld [vmem:[#allocation5 + $0x40] sm:$0xff]  ;;  %6447 = vst [vmem:[#allocation65_spill] sm:$0xff] %v5490_v49 }
 0xa8d   : > { %6433 = vst [vmem:[#allocation57_spill] sm:$0xff] %v5352_v4  ;;  %v2127_v12 = vpack.c.bf16 %v5352_v4, %v5352_v4  ;;  %2225 = vmatpush.bf16.msrb.mxu0 %v5358_v32  ;;  %2241 = vmatpush.bf16.msra.mxu1 %v6434_v50  ;;  %v5469_v9 = vld [vmem:[#allocation5 + $0x170] sm:$0xff]  ;;  %v5472_v20 = vld [vmem:[#allocation5 + $0xd8] sm:$0xff] }
 0xa8e   : > { %6438 = vst [vmem:[#allocation58_spill] sm:$0xff] %v5371_v15  ;;  %v2128_v54 = vpack.c.bf16 %v5371_v15, %v5371_v15  ;;  %v5475_v15 = vld [vmem:[#allocation5 + $0x168] sm:$0xff] }
 0xa8f   : > { %2202 = vmatmul.bf16.vlgmr.msra.gmra.mxu2 %v2126_v56  ;;  %2215 = vmatmul.bf16.vlgmr.msra.gmra.mxu3 %v2127_v12  ;;  %v5448_v56 = vld [vmem:[#allocation5 + $0x88] sm:$0xff]  ;;  %v5451_v12 = vld [vmem:[#allocation5 + $0x100] sm:$0xff]  ;;  %6448 = vst [vmem:[#allocation34_spill] sm:$0xff] %v5493_v26 }
 0xa90   : > { %2338 = vmatpush.bf16.xpose.msra.mxu3 %v5363_v18  ;;  %6443 = vst [vmem:[#allocation61_spill] sm:$0xff] %v5451_v12 }
 0xa91   : > { %2226 = vmatpush.bf16.msrb.mxu0 %v5366_v6  ;;  %2242 = vmatpush.bf16.msra.mxu1 %v6436_v33  ;;  %6449 = vst [vmem:[#allocation31_spill] sm:$0xff] %v5496_v37 }
 0xa92   : > { %2272 = vmatpush.bf16.xpose.msrb.mxu2 %v6418_v45  ;;  %v5390_v45 = vld [vmem:[#allocation5 + $0x70] sm:$0xff] }
 0xa95   : > { %2227 = vmatpush.bf16.msrb.mxu0 %v5374_v63  ;;  %2243 = vmatpush.bf16.msra.mxu1 %v6439_v24 }
 0xa98   : > { %2228 = vmatmul.bf16.vlgmr.msrb.gmra.mxu0 %v2128_v54  ;;  %2339 = vmatpush.bf16.xpose.msra.mxu3 %v5386_v48  ;;  %v5466_v54 = vld [vmem:[#allocation5 + $0xe0] sm:$0xff] }
 0xa99   : > { %2299 = vmatpush.bf16.xpose.msra.mxu0 %v5380_v0  ;;  %2312 = vmatpush.bf16.xpose.msrb.mxu1 %v5383_v27 }
 0xa9a   : > { %2273 = vmatpush.bf16.xpose.msrb.mxu2 %v6425_v35  ;;  %v5406_v35 = vld [vmem:[#allocation5 + $0x120] sm:$0xff] }
 0xaa0   : > { %2340 = vmatpush.bf16.xpose.msra.mxu3 %v5396_v57 }
 0xaa1   : > { %2300 = vmatpush.bf16.xpose.msra.mxu0 %v5390_v45  ;;  %2313 = vmatpush.bf16.xpose.msrb.mxu1 %v5393_v7 }
 0xaa2   : > { %2274 = vmatpush.bf16.xpose.msrb.mxu2 %v6430_v58  ;;  %v5433_v58 = vld [vmem:[#allocation5 + $0x50] sm:$0xff] }
 0xaa8   : > { %2341 = vmatpush.bf16.xpose.msra.mxu3 %v5406_v35 }
 0xaa9   : > { %2301 = vmatpush.bf16.xpose.msra.mxu0 %v5400_v29  ;;  %2314 = vmatpush.bf16.xpose.msrb.mxu1 %v5403_v25 }
 0xaaa   : > { %2275 = vmatpush.bf16.xpose.msrb.mxu2 %v6434_v50  ;;  %v5454_v50 = vld [vmem:[#allocation5 + $0xe8] sm:$0xff] }
 0xab0   : > { %2342 = vmatpush.bf16.xpose.msra.mxu3 %v5416_v31 }
 0xab1   : > { %2302 = vmatpush.bf16.xpose.msra.mxu0 %v5410_v59  ;;  %2315 = vmatpush.bf16.xpose.msrb.mxu1 %v5413_v8 }
 0xab2   : > { %2276 = vmatpush.bf16.xpose.msrb.mxu2 %v6436_v33  ;;  %v5460_v33 = vld [vmem:[#allocation5 + $0x80] sm:$0xff] }
 0xab8   : > { %2343 = vmatpush.bf16.xpose.msra.mxu3 %v5426_v30 }
 0xab9   : > { %2303 = vmatpush.bf16.xpose.msra.mxu0 %v5420_v23  ;;  %2316 = vmatpush.bf16.xpose.msrb.mxu1 %v5423_v13 }
 0xaba   : > { %2277 = vmatpush.bf16.xpose.msrb.mxu2 %v6439_v24  ;;  %v5463_v24 = vld [vmem:[#allocation5 + $0x178] sm:$0xff] }
 0xac0   : > { %2344 = vmatpush.bf16.xpose.msra.mxu3 %v5439_v19 }
 0xac1   : > { %2304 = vmatpush.bf16.xpose.msra.mxu0 %v5433_v58  ;;  %2317 = vmatpush.bf16.xpose.msrb.mxu1 %v5436_v3 }
 0xac2   : > { %2325 = vmatpush.bf16.xpose.msra.mxu2 %v5430_v53 }
 0xac8   : > { %2345 = vmatpush.bf16.xpose.msra.mxu3 %v5451_v12 }
 0xac9   : > { %2305 = vmatpush.bf16.xpose.msra.mxu0 %v5445_v14  ;;  %2318 = vmatpush.bf16.xpose.msrb.mxu1 %v5448_v56 }
 0xaca   : > { %2326 = vmatpush.bf16.xpose.msra.mxu2 %v5442_v51 }
 0xad1   : > { %2306 = vmatpush.bf16.xpose.msra.mxu0 %v5457_v2  ;;  %2319 = vmatpush.bf16.xpose.msrb.mxu1 %v5460_v33 }
 0xad2   : > { %2327 = vmatpush.bf16.xpose.msra.mxu2 %v5454_v50 }
 0xad9   : > { %2351 = vmatpush.bf16.xpose.msrb.mxu0 %v5463_v24 }
 0xada   : > { %2328 = vmatpush.bf16.xpose.msra.mxu2 %v5466_v54 }
 0xae1   : > { %2352 = vmatpush.bf16.xpose.msrb.mxu0 %v5469_v9 }
 0xae2   : > { %2329 = vmatpush.bf16.xpose.msra.mxu2 %v5472_v20 }
 0xae9   : > { %2353 = vmatpush.bf16.xpose.msrb.mxu0 %v5475_v15 }
 0xaea   : > { %2330 = vmatpush.bf16.xpose.msra.mxu2 %v5478_v22 }
 0xaf1   : > { %2354 = vmatpush.bf16.xpose.msrb.mxu0 %v5481_v46 }
 0xaf2   : > { %2331 = vmatpush.bf16.xpose.msra.mxu2 %v5484_v41 }
 0xaf5   : > { %v2138_v52 = vpop.f32.mrf.mxu0  ;;  %v2151_v55 = vpop.f32.mrf.mxu1 }
 0xaf6   : > { %v2152_v62 = vadd.f32 %v2151_v55, %v2138_v52 }
 0xaf9   : > { %2355 = vmatpush.bf16.xpose.msrb.mxu0 %v5487_v39 }
 0xafa   : > { %2332 = vmatpush.bf16.xpose.msra.mxu2 %v5490_v49 }
 0xafd   : > { %v2140_v11 = vpop.f32.mrf.mxu0  ;;  %v2153_v4 = vpop.f32.mrf.mxu1 }
 0xb01   : > { %2356 = vmatpush.bf16.xpose.msrb.mxu0 %v5493_v26 }
 0xb02   : > { %v2164_v47 = vpop.f32.mrf.mxu2 }
 0xb03   : > { %v2165_v16 = vadd.f32 %v2164_v47, %v2152_v62 }
 0xb05   : > { %v2177_v61 = vpop.f32.mrf.mxu0  ;;  %v2190_v36 = vpop.f32.mrf.mxu1 }
 0xb06   : > { %v2178_v40 = vadd.f32 %v2177_v61, %v2165_v16  ;;  %v5506_v61 = vld [vmem:[#allocation5 + $0x1b0] sm:$0xff] }
 0xb07   : > { %6453 = vst [vmem:[#allocation40_spill] sm:$0xff] %v5506_v61 }
 0xb08   : > { %v2191_v44 = vadd.f32 %v2190_v36, %v2178_v40  ;;  %v5515_v36 = vld [vmem:[#allocation5 + $0x198] sm:$0xff]  ;;  %v5518_v40 = vld [vmem:[#allocation5 + $0x190] sm:$0xff] }
 0xb09   : > { %2357 = vmatpush.bf16.xpose.msrb.mxu0 %v5496_v37  ;;  %v6451_v37 = vld [vmem:[#allocation52_spill] sm:$0xff]  ;;  %6456 = vst [vmem:[#allocation45_spill] sm:$0xff] %v5515_v36 }
 0xb0a   : > { %v2166_v10 = vpop.f32.mrf.mxu2  ;;  %6457 = vst [vmem:[#allocation42_spill] sm:$0xff] %v5518_v40 }
 0xb0b   : > { %v5503_v10 = vld [vmem:[#allocation5 + $0x1b8] sm:$0xff] }
 0xb0c   : > { %6452 = vst [vmem:[#allocation50_spill] sm:$0xff] %v5503_v10 }
 0xb0d   : > { %v2179_v43 = vpop.f32.mrf.mxu0  ;;  %v2192_v17 = vpop.f32.mrf.mxu1 }
 0xb0e   : > { %v5524_v17 = vld [vmem:[#allocation5 + $0x180] sm:$0xff] }
 0xb0f   : > { %6459 = vst [vmem:[#allocation21_spill] sm:$0xff] %v5524_v17 }
 0xb11   : > { %2358 = vmatpush.bf16.xpose.msrb.mxu0 %v5499_v42 }
 0xb12   : > { %v2203_v11 = vpop.f32.mrf.mxu2  ;;  %v2216_v4 = vpop.f32.mrf.mxu3 }
 0xb13   : > { %v2204_v1 = vadd.f32 %v2203_v11, %v2191_v44  ;;  %v5509_v44 = vld [vmem:[#allocation5 + $0x1a8] sm:$0xff] }
 0xb14   : > { %6454 = vst [vmem:[#allocation51_spill] sm:$0xff] %v5509_v44 }
 0xb15   : > { %v2217_v12 = vadd.f32 %v2216_v4, %v2204_v1  ;;  %v2229_v49 = vpop.f32.mrf.mxu0  ;;  %v5512_v1 = vld [vmem:[#allocation5 + $0x1a0] sm:$0xff] }
 0xb16   : > { %6455 = vst [vmem:[#allocation53_spill] sm:$0xff] %v5512_v1 }
 0xb17   : > { %v2230_v19 = vadd.f32 %v2229_v49, %v2217_v12 }
 0xb19   : > { %v2233_v41 = vadd.f32 %v2230_v19, %v6451_v37  ;;  %v6478_v37 = vld [vmem:[#allocation12_spill] sm:$0xff] }
 0xb1a   : > { %v2205_v30 = vpop.f32.mrf.mxu2  ;;  %v2218_v26 = vpop.f32.mrf.mxu3 }
 0xb1b   : > { %v2234_v22 = vmax.f32 %v2233_v41, 0.0  ;;  %vm2283_vm5 = vcmp.gt.f32.partialorder %v2233_v41, 0.0 }
 0xb1c   : > { %vm5540_vm6 = vmpackc.low %vm2283_vm5, %vm2283_vm5 }
 0xb1d   : > { %v2235_v31 = vpack.c.bf16 %v2234_v22, %v2234_v22  ;;  %v2231_v42 = vpop.f32.mrf.mxu0 }
 0xb1e   : > { %v5521_v42 = vld [vmem:[#allocation5 + $0x188] sm:$0xff] }
 0xb1f   : > { %2244 = vmatmul.bf16.vlgmr.msra.gmra.mxu1 %v2235_v31  ;;  %6458 = vst [vmem:[#allocation48_spill] sm:$0xff] %v5521_v42 }
 0xb20   : > { %2364 = vmatpush.bf16.xpose.msra.mxu1 %v5503_v10 }
 0xb28   : > { %2365 = vmatpush.bf16.xpose.msra.mxu1 %v5506_v61 }
 0xb30   : > { %2366 = vmatpush.bf16.xpose.msra.mxu1 %v5509_v44 }
 0xb38   : > { %2367 = vmatpush.bf16.xpose.msra.mxu1 %v5512_v1 }
 0xb40   : > { %2368 = vmatpush.bf16.xpose.msra.mxu1 %v5515_v36 }
 0xb48   : > { %2369 = vmatpush.bf16.xpose.msra.mxu1 %v5518_v40 }
 0xb50   : > { %2370 = vmatpush.bf16.xpose.msra.mxu1 %v5521_v42 }
 0xb58   : > { %2371 = vmatpush.bf16.xpose.msra.mxu1 %v5524_v17 }
 0xb9c   : > { %v2245_v16 = vpop.f32.mrf.mxu1 }
 0xb9d   : > { %v2246_v62 = vadd.f32 %v5175_v34, %v2245_v16 }
 0xb9f   : > { %v2249_v43 = vmul.f32 %v2246_v62, %v2246_v62 }
 0xba1   : > { %2250 = vadd.xlane.f32.xlu1 %v2249_v43 }
 0xba4   : > { %v2247_v55 = vpop.f32.mrf.mxu1 }
 0xc14   : > { %v2251_v47 = vpop.xlane.xlu1 %2250 }
 0xc15   : > { %v2252_v22 = vmax.f32 %v2251_v47, 1e-16  ;;  %v5530_v47 = vld [vmem:[#allocation5 + $0x1f8] sm:$0xff] }
 0xc16   : > { %6460 = vst [vmem:[#allocation35_spill] sm:$0xff] %v5530_v47 }
 0xc17   : > { %3516 = vrsqrt.f32 %v2252_v22  ;;  %vm2259_vm3 = vweird.f32 %v2252_v22 }
 0xc1d   : > { %v3517_v52 = vpop.eup %3516 }
 0xc1e   : > { %v2254_v26 = vmul.f32 %v3517_v52, %v2252_v22  ;;  %vm2260_vm2 = vweird.f32 %v3517_v52 }
 0xc1f   : > { %vm2261_vm4 = vmor %vm2259_vm3, %vm2260_vm2 }
 0xc20   : > { %v2255_v49 = vmul.f32 %v3517_v52, %v2254_v26  ;;  %v3649_v26 = vld [vmem:[#allocation5 + $0x38] sm:$0xff] }
 0xc22   : > { %v2256_v31 = vmul.f32 0.5, %v2255_v49  ;;  %v3650_v49 = vld [vmem:[#allocation5 + $0x30] sm:$0xff] }
 0xc24   : > { %v2257_v30 = vsub.f32 1.5, %v2256_v31  ;;  %v3651_v31 = vld [vmem:[#allocation5 + $0x28] sm:$0xff] }
 0xc26   : > { %v2258_v19 = vmul.f32 %v3517_v52, %v2257_v30  ;;  %v3652_v30 = vld [vmem:[#allocation5 + $0x20] sm:$0xff] }
 0xc28   : > { %v2262_v12 = vsel %vm2261_vm4, %v3517_v52, %v2258_v19  ;;  %v3653_v19 = vld [vmem:[#allocation5 + $0x18] sm:$0xff]  ;;  %v6469_v52 = vld [vmem:[#allocation60_spill] sm:$0xff] }
 0xc29   : > { %v2263_v11 = vmul.f32 %v2262_v12, %v2246_v62  ;;  %v3654_v12 = vld [vmem:[#allocation5 + $0x10] sm:$0xff] }
 0xc2b   : > { %v2264_v4 = vmul.f32 %v2263_v11, %v6377_v28 }
 0xc2d   : > { %2265 = vadd.xlane.f32.xlu2 %v2264_v4  ;;  %v3656_v4 = vld [vmem:[#allocation5] sm:$0xff] }
 0xca0   : > { %v2266_v34 = vpop.xlane.xlu2 %2265 }
 0xca1   : > { %v2267_v16 = vmul.f32 %v2266_v34, %v2263_v11  ;;  %v3655_v11 = vld [vmem:[#allocation5 + $0x8] sm:$0xff]  ;;  %v6463_v34 = vld [vmem:[#allocation59_spill] sm:$0xff] }
 0xca3   : > { %v2268_v43 = vsub.f32 %v2267_v16, %v6377_v28  ;;  %v6464_v16 = vld [vmem:[#allocation62_spill] sm:$0xff] }
 0xca5   : > { %v2269_v55 = vpack.c.bf16 %v2268_v43, %v2268_v43  ;;  %v6465_v43 = vld [vmem:[#allocation34_spill] sm:$0xff] }
 0xca7   : > { %2278 = vmatmul.bf16.vlgmr.msrb.gmra.mxu2 %v2269_v55  ;;  %v6466_v55 = vld [vmem:[#allocation14_spill] sm:$0xff] }
 0xca8   : > { %2377 = vmatpush.bf16.xpose.msrb.mxu2 %v5530_v47 }
 0xcb0   : > { %2378 = vmatpush.bf16.xpose.msrb.mxu2 %v5304_v38 }
 0xcb8   : > { %2379 = vmatpush.bf16.xpose.msrb.mxu2 %v5316_v5 }
 0xcc0   : > { %2380 = vmatpush.bf16.xpose.msrb.mxu2 %v5329_v60 }
 0xcc8   : > { %2381 = vmatpush.bf16.xpose.msrb.mxu2 %v5345_v21 }
 0xcd0   : > { %2382 = vmatpush.bf16.xpose.msrb.mxu2 %v5358_v32 }
 0xcd8   : > { %2383 = vmatpush.bf16.xpose.msrb.mxu2 %v5366_v6 }
 0xce0   : > { %2384 = vmatpush.bf16.xpose.msrb.mxu2 %v5374_v63 }
 0xd2a   : > { %v2279_v62 = vpop.f32.mrf.mxu2 }
 0xd2b   : > { %v3305_v22 = vpack.c.bf16 %v2279_v62, %v2279_v62  ;;  %v6467_v62 = vld [vmem:[#allocation63_spill] sm:$0xff] }
 0xd2d   : > { %3306 = vmatmul.msk.bf16.vlgmr.msrb.gmra.mxu3 %vm5540_vm6, %v3305_v22  ;;  %3309 = vmatmul.msk.bf16.vlgmr.msra.gmra.mxu0 %vm5540_vm6, %v3305_v22 }
 0xd2e   : > { %3312 = vmatmul.msk.bf16.vlgmr.msrb.gmra.mxu1 %vm5540_vm6, %v3305_v22  ;;  %3315 = vmatmul.msk.bf16.vlgmr.msra.gmra.mxu2 %vm5540_vm6, %v3305_v22 }
 0xd2f   : > { %2454 = vmatpush.bf16.msrb.mxu3 %v3649_v26  ;;  %2480 = vmatpush.bf16.msrb.mxu1 %v5383_v27 }
 0xd30   : > { %2467 = vmatpush.bf16.msra.mxu0 %v5380_v0  ;;  %2532 = vmatpush.bf16.msra.mxu2 %v5503_v10 }
 0xd32   : > { %v2281_v41 = vpop.f32.mrf.mxu2 }
 0xd33   : > { %2455 = vmatpush.bf16.msrb.mxu3 %v3650_v49  ;;  %2481 = vmatpush.bf16.msrb.mxu1 %v5393_v7  ;;  %v6471_v41 = vld [vmem:[#allocation44_spill] sm:$0xff] }
 0xd34   : > { %2468 = vmatpush.bf16.msra.mxu0 %v5390_v45  ;;  %2533 = vmatpush.bf16.msra.mxu2 %v5506_v61 }
 0xd37   : > { %2456 = vmatpush.bf16.msrb.mxu3 %v3651_v31  ;;  %2482 = vmatpush.bf16.msrb.mxu1 %v5403_v25 }
 0xd38   : > { %2469 = vmatpush.bf16.msra.mxu0 %v5400_v29  ;;  %2534 = vmatpush.bf16.msra.mxu2 %v5509_v44 }
 0xd3b   : > { %2457 = vmatpush.bf16.msrb.mxu3 %v3652_v30  ;;  %2483 = vmatpush.bf16.msrb.mxu1 %v5413_v8 }
 0xd3c   : > { %2470 = vmatpush.bf16.msra.mxu0 %v5410_v59  ;;  %2535 = vmatpush.bf16.msra.mxu2 %v5512_v1  ;;  %v6475_v1 = vld [vmem:[#allocation54_spill] sm:$0xff] }
 0xd3d   : > { %3318 = vmatmul.msk.bf16.vlgmr.msra.gmra.mxu3 %vm5540_vm6, %v3305_v22  ;;  %3321 = vmatmul.msk.bf16.vlgmr.msrb.gmra.mxu0 %vm5540_vm6, %v3305_v22 }
 0xd3e   : > { %3324 = vmatmul.msk.bf16.vlgmr.msra.gmra.mxu1 %vm5540_vm6, %v3305_v22  ;;  %3327 = vmatmul.msk.bf16.vlgmr.msrb.gmra.mxu2 %vm5540_vm6, %v3305_v22  ;;  %v6468_v22 = vld [vmem:[#allocation31_spill] sm:$0xff] }
 0xd3f   : > { %2458 = vmatpush.bf16.msrb.mxu3 %v3653_v19  ;;  %2484 = vmatpush.bf16.msrb.mxu1 %v5423_v13 }
 0xd40   : > { %2471 = vmatpush.bf16.msra.mxu0 %v5420_v23  ;;  %2536 = vmatpush.bf16.msra.mxu2 %v5515_v36 }
 0xd43   : > { %2459 = vmatpush.bf16.msrb.mxu3 %v3654_v12  ;;  %2485 = vmatpush.bf16.msrb.mxu1 %v5436_v3 }
 0xd44   : > { %2472 = vmatpush.bf16.msra.mxu0 %v5433_v58  ;;  %2537 = vmatpush.bf16.msra.mxu2 %v5518_v40  ;;  %v6474_v40 = vld [vmem:[#allocation13_spill] sm:$0xff] }
 0xd47   : > { %2460 = vmatpush.bf16.msrb.mxu3 %v3655_v11  ;;  %2486 = vmatpush.bf16.msrb.mxu1 %v5448_v56 }
 0xd48   : > { %2473 = vmatpush.bf16.msra.mxu0 %v5445_v14  ;;  %2538 = vmatpush.bf16.msra.mxu2 %v5521_v42 }
 0xd4b   : > { %2461 = vmatpush.bf16.msrb.mxu3 %v3656_v4  ;;  %2487 = vmatpush.bf16.msrb.mxu1 %v5460_v33 }
 0xd4c   : > { %2474 = vmatpush.bf16.msra.mxu0 %v5457_v2  ;;  %2539 = vmatpush.bf16.msra.mxu2 %v5524_v17  ;;  %v6473_v17 = vld [vmem:[#allocation18_spill] sm:$0xff] }
 0xd4f   : > { %2493 = vmatpush.bf16.msra.mxu3 %v5430_v53  ;;  %2519 = vmatpush.bf16.msra.mxu1 %v5463_v24 }
 0xd50   : > { %2506 = vmatpush.bf16.msrb.mxu0 %v5363_v18  ;;  %2611 = vmatpush.bf16.xpose.msrb.mxu2 %v3649_v26  ;;  %v6470_v26 = vld [vmem:[#allocation65_spill] sm:$0xff] }
 0xd53   : > { %2494 = vmatpush.bf16.msra.mxu3 %v5442_v51  ;;  %2520 = vmatpush.bf16.msra.mxu1 %v5469_v9 }
 0xd54   : > { %2507 = vmatpush.bf16.msrb.mxu0 %v5386_v48 }
 0xd57   : > { %2495 = vmatpush.bf16.msra.mxu3 %v5454_v50  ;;  %2521 = vmatpush.bf16.msra.mxu1 %v5475_v15 }
 0xd58   : > { %2508 = vmatpush.bf16.msrb.mxu0 %v5396_v57  ;;  %2612 = vmatpush.bf16.xpose.msrb.mxu2 %v3650_v49  ;;  %v6472_v49 = vld [vmem:[#allocation61_spill] sm:$0xff] }
 0xd5b   : > { %2496 = vmatpush.bf16.msra.mxu3 %v5466_v54  ;;  %2522 = vmatpush.bf16.msra.mxu1 %v5481_v46 }
 0xd5c   : > { %2509 = vmatpush.bf16.msrb.mxu0 %v5406_v35 }
 0xd5f   : > { %2497 = vmatpush.bf16.msra.mxu3 %v5472_v20  ;;  %2523 = vmatpush.bf16.msra.mxu1 %v5487_v39  ;;  %v6481_v39 = vld [vmem:[#allocation15_spill] sm:$0xff] }
 0xd60   : > { %2510 = vmatpush.bf16.msrb.mxu0 %v6463_v34  ;;  %2613 = vmatpush.bf16.xpose.msrb.mxu2 %v3651_v31 }
 0xd63   : > { %2498 = vmatpush.bf16.msra.mxu3 %v6464_v16  ;;  %2524 = vmatpush.bf16.msra.mxu1 %v6465_v43 }
 0xd64   : > { %2511 = vmatpush.bf16.msrb.mxu0 %v6466_v55 }
 0xd67   : > { %2499 = vmatpush.bf16.msra.mxu3 %v6467_v62  ;;  %2525 = vmatpush.bf16.msra.mxu1 %v6468_v22  ;;  %v6479_v22 = vld [vmem:[#allocation23_spill] sm:$0xff] }
 0xd68   : > { %2512 = vmatpush.bf16.msrb.mxu0 %v6469_v52  ;;  %2614 = vmatpush.bf16.xpose.msrb.mxu2 %v3652_v30 }
 0xd6b   : > { %2500 = vmatpush.bf16.msra.mxu3 %v6470_v26  ;;  %2526 = vmatpush.bf16.msra.mxu1 %v6471_v41 }
 0xd6c   : > { %2513 = vmatpush.bf16.msrb.mxu0 %v6472_v49 }
 0xd70   : > { %2615 = vmatpush.bf16.xpose.msrb.mxu2 %v3653_v19  ;;  %v6476_v19 = vld [vmem:[#allocation55_spill] sm:$0xff] }
 0xd78   : > { %2616 = vmatpush.bf16.xpose.msrb.mxu2 %v3654_v12 }
 0xd80   : > { %2617 = vmatpush.bf16.xpose.msrb.mxu2 %v3655_v11  ;;  %v6477_v11 = vld [vmem:[#allocation20_spill] sm:$0xff] }
 0xd88   : > { %2618 = vmatpush.bf16.xpose.msrb.mxu2 %v3656_v4 }
 0xdaa   : > { %v2308_v31 = vpop.f32.mrf.mxu0 }
 0xdab   : > { %vm2391_vm7 = vcmp.gt.f32.partialorder %v2308_v31, 0.0  ;;  %vm2399_vm8 = vcmp.lt.f32.partialorder %v2308_v31, 0.0  ;;  %v2321_v28 = vpop.f32.mrf.mxu1 }
 0xdac   : > { %v2407_v42 = vsel %vm2399_vm8, %v6473_v17, 0.0  ;;  %vm2392_vm9 = vcmp.gt.f32.partialorder %v2321_v28, 0.0  ;;  %vm2400_vm10 = vcmp.lt.f32.partialorder %v2321_v28, 0.0 }
 0xdad   : > { %v2415_v30 = vsel %vm2391_vm7, %v6474_v40, %v2407_v42  ;;  %v2408_v36 = vsel %vm2400_vm10, %v6473_v17, 0.0 }
 0xdae   : > { %v2423_v44 = vadd.f32 %v2415_v30, %v6475_v1  ;;  %v2416_v61 = vsel %vm2392_vm9, %v6474_v40, %v2408_v36  ;;  %v6483_v30 = vld [vmem:[#allocation46_spill] sm:$0xff] }
 0xdaf   : > { %v2424_v12 = vadd.f32 %v2416_v61, %v6476_v19 }
 0xdb0   : > { %v2431_v4 = vmax.f32 %v6477_v11, %v2423_v44  ;;  %v2295_v10 = vpop.f32.mrf.mxu3 }
 0xdb1   : > { %v2432_v31 = vmax.f32 %v6478_v37, %v2424_v12  ;;  %vm2390_vm11 = vcmp.gt.f32.partialorder %v2295_v10, 0.0  ;;  %vm2398_vm12 = vcmp.lt.f32.partialorder %v2295_v10, 0.0  ;;  %v2334_v41 = vpop.f32.mrf.mxu2  ;;  %v6484_v12 = vld [vmem:[#allocation17_spill] sm:$0xff] }
 0xdb2   : > { %v5617_v28 = vmin.f32 %v6479_v22, %v2431_v4  ;;  %v2406_v42 = vsel %vm2398_vm12, %v6473_v17, 0.0  ;;  %v2310_v43 = vpop.f32.mrf.mxu0  ;;  %vm2401_vm13 = vcmp.lt.f32.partialorder %v2334_v41, 0.0  ;;  %vm2393_vm14 = vcmp.gt.f32.partialorder %v2334_v41, 0.0 }
 0xdb3   : > { %v5621_v1 = vmin.f32 %v6481_v39, %v2432_v31  ;;  %v2414_v36 = vsel %vm2390_vm11, %v6474_v40, %v2406_v42  ;;  %v2323_v61 = vpop.f32.mrf.mxu1  ;;  %v3657_v43 = vld [vmem:[%s5894_s5 + $0x38] sm:$0xff]  ;;  %v6491_v39 = vld [vmem:[#allocation25_spill] sm:$0xff] }
 0xdb4   : > { %6480 = vst [vmem:[#allocation26_spill] sm:$0xff] %v5617_v28  ;;  %v2447_v44 = vpack.c.bf16 %v5617_v28, %v5617_v28  ;;  %v2422_v19 = vadd.f32 %v2414_v36, %v6483_v30  ;;  %v6485_v31 = vld [vmem:[#allocation19_spill] sm:$0xff]  ;;  %v2409_v61 = vsel %vm2401_vm13, %v6473_v17, 0.0 }
 0xdb5   : > { %6482 = vst [vmem:[#allocation33_spill] sm:$0xff] %v5621_v1  ;;  %v2448_v10 = vpack.c.bf16 %v5621_v1, %v5621_v1  ;;  %v6495_v1 = vld [vmem:[#allocation36_spill] sm:$0xff] }
 0xdb6   : > { %v2430_v4 = vmax.f32 %v6484_v12, %v2422_v19  ;;  %2475 = vmatmul.bf16.vlgmr.msra.gmra.mxu0 %v2447_v44  ;;  %v2417_v44 = vsel %vm2393_vm14, %v6474_v40, %v2409_v61  ;;  %v6487_v61 = vld [vmem:[#allocation41_spill] sm:$0xff] }
 0xdb7   : > { %2488 = vmatmul.bf16.vlgmr.msrb.gmra.mxu1 %v2448_v10  ;;  %2561 = vmatpush.bf16.msra.mxu0 %v3657_v43  ;;  %v6489_v12 = vld [vmem:[#allocation57_spill] sm:$0xff] }
 0xdb8   : > { %v5634_v42 = vmin.f32 %v6485_v31, %v2430_v4  ;;  %v2297_v36 = vpop.f32.mrf.mxu3  ;;  %2595 = vmatpush.bf16.xpose.msrb.mxu1 %v3657_v43  ;;  %v3658_v4 = vld [vmem:[%s5894_s5 + $0x30] sm:$0xff] }
 0xdb9   : > { %v2336_v30 = vpop.f32.mrf.mxu2 }
 0xdba   : > { %6486 = vst [vmem:[#allocation38_spill] sm:$0xff] %v5634_v42  ;;  %v2446_v22 = vpack.c.bf16 %v5634_v42, %v5634_v42  ;;  %v2360_v19 = vpop.f32.mrf.mxu0  ;;  %v2425_v30 = vadd.f32 %v2417_v44, %v6487_v61  ;;  %v3659_v42 = vld [vmem:[%s5894_s5 + $0x28] sm:$0xff]  ;;  %v6493_v61 = vld [vmem:[#allocation39_spill] sm:$0xff] }
 0xdbb   : > { %vm2395_vm15 = vcmp.gt.f32.partialorder %v2360_v19, 0.0  ;;  %vm2403_vm0 = vcmp.lt.f32.partialorder %v2360_v19, 0.0  ;;  %v2373_v10 = vpop.f32.mrf.mxu1  ;;  %2562 = vmatpush.bf16.msra.mxu0 %v3658_v4  ;;  %v6488_v19 = vld [vmem:[#allocation49_spill] sm:$0xff] }
 0xdbc   : > { %v2411_v41 = vsel %vm2403_vm0, %v6473_v17, 0.0  ;;  %vm2396_vm1 = vcmp.gt.f32.partialorder %v2373_v10, 0.0  ;;  %vm2404_vm2 = vcmp.lt.f32.partialorder %v2373_v10, 0.0  ;;  %2462 = vmatmul.bf16.vlgmr.msrb.gmra.mxu3 %v2446_v22  ;;  %v6490_v22 = vld [vmem:[#allocation37_spill] sm:$0xff] }
 0xdbd   : > { %v2419_v43 = vsel %vm2395_vm15, %v6474_v40, %v2411_v41  ;;  %v2412_v36 = vsel %vm2404_vm2, %v6473_v17, 0.0  ;;  %2545 = vmatpush.bf16.msrb.mxu3 %v5530_v47 }
 0xdbe   : > { %v2427_v31 = vadd.f32 %v2419_v43, %v6488_v19  ;;  %v2420_v11 = vsel %vm2396_vm1, %v6474_v40, %v2412_v36  ;;  %v6492_v43 = vld [vmem:[#allocation22_spill] sm:$0xff] }
 0xdbf   : > { %v2428_v28 = vadd.f32 %v2420_v11, %v6489_v12  ;;  %2563 = vmatpush.bf16.msra.mxu0 %v3659_v42  ;;  %v2433_v36 = vmax.f32 %v6492_v43, %v2425_v30 }
 0xdc0   : > { %v2435_v10 = vmax.f32 %v6490_v22, %v2427_v31  ;;  %v2347_v41 = vpop.f32.mrf.mxu3  ;;  %2596 = vmatpush.bf16.xpose.msrb.mxu1 %v3658_v4  ;;  %v6499_v22 = vld [vmem:[#allocation29_spill] sm:$0xff] }
 0xdc1   : > { %v2436_v37 = vmax.f32 %v6491_v39, %v2428_v28  ;;  %vm2394_vm3 = vcmp.gt.f32.partialorder %v2347_v41, 0.0  ;;  %vm2402_vm4 = vcmp.lt.f32.partialorder %v2347_v41, 0.0  ;;  %v2386_v44 = vpop.f32.mrf.mxu2  ;;  %2546 = vmatpush.bf16.msrb.mxu3 %v5304_v38  ;;  %v3660_v28 = vld [vmem:[%s5894_s5 + $0x20] sm:$0xff] }
 0xdc2   : > { %v5659_v11 = vmin.f32 %v6493_v61, %v2435_v10  ;;  %v2410_v12 = vsel %vm2402_vm4, %v6473_v17, 0.0  ;;  %v2362_v19 = vpop.f32.mrf.mxu0  ;;  %v6496_v41 = vld [vmem:[#allocation56_spill] sm:$0xff]  ;;  %vm2405_vm5 = vcmp.lt.f32.partialorder %v2386_v44, 0.0  ;;  %vm2397_vm6 = vcmp.gt.f32.partialorder %v2386_v44, 0.0 }
 0xdc3   : > { %v5663_v47 = vmin.f32 %v6495_v1, %v2436_v37  ;;  %v2418_v31 = vsel %vm2394_vm3, %v6474_v40, %v2410_v12  ;;  %v2375_v4 = vpop.f32.mrf.mxu1  ;;  %2564 = vmatpush.bf16.msra.mxu0 %v3660_v28  ;;  %v6497_v37 = vld [vmem:[#allocation30_spill] sm:$0xff]  ;;  %v6498_v12 = vld [vmem:[#allocation24_spill] sm:$0xff] }
 0xdc4   : > { %6494 = vst [vmem:[#allocation66_spill] sm:$0xff] %v5659_v11  ;;  %v2451_v30 = vpack.c.bf16 %v5659_v11, %v5659_v11  ;;  %v2426_v10 = vadd.f32 %v2418_v31, %v6496_v41  ;;  %v5676_v19 = vmin.f32 %v6497_v37, %v2433_v36  ;;  %v2413_v11 = vsel %vm2405_vm5, %v6473_v17, 0.0  ;;  %v3661_v41 = vld [vmem:[%s5894_s5 + $0x18] sm:$0xff] }
 0xdc5   : > { %v2452_v61 = vpack.c.bf16 %v5663_v47, %v5663_v47  ;;  %2547 = vmatpush.bf16.msrb.mxu3 %v5316_v5 }
 0xdc6   : > { %v2434_v4 = vmax.f32 %v6498_v12, %v2426_v10  ;;  %v2449_v36 = vpack.c.bf16 %v5676_v19, %v5676_v19 }
 0xdc7   : > { %2527 = vmatmul.bf16.vlgmr.msra.gmra.mxu1 %v2451_v30  ;;  %2540 = vmatmul.bf16.vlgmr.msra.gmra.mxu2 %v2452_v61  ;;  %v2421_v61 = vsel %vm2397_vm6, %v6474_v40, %v2413_v11  ;;  %v6501_v11 = vld [vmem:[#allocation27_spill] sm:$0xff] }
 0xdc8   : > { %v5680_v1 = vmin.f32 %v6499_v22, %v2434_v4  ;;  %v2349_v31 = vpop.f32.mrf.mxu3  ;;  %2565 = vmatpush.bf16.msra.mxu0 %v3661_v41  ;;  %2597 = vmatpush.bf16.xpose.msrb.mxu1 %v3659_v42  ;;  %v6500_v42 = vld [vmem:[#allocation58_spill] sm:$0xff]  ;;  %v3664_v4 = vld [vmem:[%s5894_s5] sm:$0xff] }
 0xdc9   : > { %v2388_v39 = vpop.f32.mrf.mxu2  ;;  %2548 = vmatpush.bf16.msrb.mxu3 %v5329_v60  ;;  %2663 = vmatpush.bf16.xpose.msra.mxu2 %v5363_v18  ;;  %v2429_v30 = vadd.f32 %v2421_v61, %v6500_v42  ;;  %v3663_v18 = vld [vmem:[%s5894_s5 + $0x8] sm:$0xff]  ;;  %v6502_v31 = vld [vmem:[#allocation47_spill] sm:$0xff]  ;;  %v6514_v61 = vld [vmem:[#allocation48_spill] sm:$0xff] }
 0xdca   : > { %v2450_v44 = vpack.c.bf16 %v5680_v1, %v5680_v1  ;;  %v3662_v39 = vld [vmem:[%s5894_s5 + $0x10] sm:$0xff] }
 0xdcb   : > { %v2437_v10 = vmax.f32 %v6501_v11, %v2429_v30  ;;  %v3665_v30 = vld [vmem:[%s5895_s6] ss:$0 sm:$0xff] }
 0xdcc   : > { %2501 = vmatmul.bf16.vlgmr.msra.gmra.mxu3 %v2449_v36  ;;  %2514 = vmatmul.bf16.vlgmr.msrb.gmra.mxu0 %v2450_v44  ;;  %v6513_v44 = vld [vmem:[#allocation42_spill] sm:$0xff] }
 0xdcd   : > { %2549 = vmatpush.bf16.msrb.mxu3 %v5345_v21  ;;  %2566 = vmatpush.bf16.msra.mxu0 %v3662_v39 }
 0xdd0   : > { %2598 = vmatpush.bf16.xpose.msrb.mxu1 %v3660_v28  ;;  %v5709_v28 = vmin.f32 %v6502_v31, %v2437_v10 }
 0xdd1   : > { %2550 = vmatpush.bf16.msrb.mxu3 %v5358_v32  ;;  %2567 = vmatpush.bf16.msra.mxu0 %v3663_v18 }
 0xdd2   : > { %2664 = vmatpush.bf16.xpose.msra.mxu2 %v5386_v48  ;;  %v2453_v36 = vpack.c.bf16 %v5709_v28, %v5709_v28 }
 0xdd5   : > { %2551 = vmatpush.bf16.msrb.mxu3 %v5366_v6  ;;  %2568 = vmatpush.bf16.msra.mxu0 %v3664_v4 }
 0xdd8   : > { %2599 = vmatpush.bf16.xpose.msrb.mxu1 %v3661_v41  ;;  %v6512_v41 = vld [vmem:[#allocation45_spill] sm:$0xff] }
 0xdd9   : > { %2637 = vmatpush.bf16.xpose.msrb.mxu0 %v5383_v27  ;;  %2552 = vmatpush.bf16.msrb.mxu3 %v5374_v63  ;;  %v6503_v27 = vld [vmem:[#allocation64_spill] sm:$0xff] }
 0xdda   : > { %2665 = vmatpush.bf16.xpose.msra.mxu2 %v5396_v57 }
 0xddc   : > { %2553 = vmatmul.bf16.vlgmr.msrb.gmra.mxu3 %v2453_v36 }
 0xddd   : > { %2624 = vmatpush.bf16.xpose.msra.mxu3 %v5380_v0 }
 0xde0   : > { %2600 = vmatpush.bf16.xpose.msrb.mxu1 %v3662_v39  ;;  %v6515_v39 = vld [vmem:[#allocation21_spill] sm:$0xff] }
 0xde1   : > { %2638 = vmatpush.bf16.xpose.msrb.mxu0 %v5393_v7 }
 0xde2   : > { %2666 = vmatpush.bf16.xpose.msra.mxu2 %v5406_v35 }
 0xde5   : > { %2625 = vmatpush.bf16.xpose.msra.mxu3 %v5390_v45  ;;  %v6504_v45 = vld [vmem:[#allocation34_spill] sm:$0xff] }
 0xde8   : > { %2601 = vmatpush.bf16.xpose.msrb.mxu1 %v3663_v18 }
 0xde9   : > { %2639 = vmatpush.bf16.xpose.msrb.mxu0 %v5403_v25 }
 0xdea   : > { %2667 = vmatpush.bf16.xpose.msra.mxu2 %v6463_v34 }
 0xded   : > { %2626 = vmatpush.bf16.xpose.msra.mxu3 %v5400_v29  ;;  %v6505_v29 = vld [vmem:[#allocation31_spill] sm:$0xff] }
 0xdf0   : > { %2602 = vmatpush.bf16.xpose.msrb.mxu1 %v3664_v4 }
 0xdf1   : > { %2640 = vmatpush.bf16.xpose.msrb.mxu0 %v5413_v8 }
 0xdf2   : > { %2668 = vmatpush.bf16.xpose.msra.mxu2 %v6466_v55 }
 0xdf5   : > { %2627 = vmatpush.bf16.xpose.msra.mxu3 %v5410_v59 }
 0xdf8   : > { %2650 = vmatpush.bf16.xpose.msra.mxu1 %v5430_v53 }
 0xdf9   : > { %2641 = vmatpush.bf16.xpose.msrb.mxu0 %v5423_v13 }
 0xdfa   : > { %2669 = vmatpush.bf16.xpose.msra.mxu2 %v6469_v52  ;;  %v6509_v52 = vld [vmem:[#allocation40_spill] sm:$0xff] }
 0xdfd   : > { %2628 = vmatpush.bf16.xpose.msra.mxu3 %v5420_v23 }
 0xe00   : > { %2651 = vmatpush.bf16.xpose.msra.mxu1 %v5442_v51 }
 0xe01   : > { %2642 = vmatpush.bf16.xpose.msrb.mxu0 %v5436_v3 }
 0xe02   : > { %2670 = vmatpush.bf16.xpose.msra.mxu2 %v6472_v49  ;;  %v6511_v49 = vld [vmem:[#allocation53_spill] sm:$0xff] }
 0xe05   : > { %2629 = vmatpush.bf16.xpose.msra.mxu3 %v5433_v58 }
 0xe08   : > { %2652 = vmatpush.bf16.xpose.msra.mxu1 %v5454_v50 }
 0xe09   : > { %2643 = vmatpush.bf16.xpose.msrb.mxu0 %v5448_v56 }
 0xe0d   : > { %2630 = vmatpush.bf16.xpose.msra.mxu3 %v5445_v14 }
 0xe10   : > { %2653 = vmatpush.bf16.xpose.msra.mxu1 %v5466_v54 }
 0xe11   : > { %2644 = vmatpush.bf16.xpose.msrb.mxu0 %v5460_v33 }
 0xe15   : > { %2631 = vmatpush.bf16.xpose.msra.mxu3 %v5457_v2 }
 0xe18   : > { %2654 = vmatpush.bf16.xpose.msra.mxu1 %v5472_v20 }
 0xe1d   : > { %2676 = vmatpush.bf16.xpose.msrb.mxu3 %v5463_v24  ;;  %v6507_v24 = vld [vmem:[#allocation52_spill] sm:$0xff] }
 0xe20   : > { %2655 = vmatpush.bf16.xpose.msra.mxu1 %v6464_v16 }
 0xe25   : > { %2677 = vmatpush.bf16.xpose.msrb.mxu3 %v5469_v9 }
 0xe28   : > { %2656 = vmatpush.bf16.xpose.msra.mxu1 %v6467_v62  ;;  %v6508_v62 = vld [vmem:[#allocation50_spill] sm:$0xff] }
 0xe2d   : > { %2678 = vmatpush.bf16.xpose.msrb.mxu3 %v5475_v15  ;;  %v6506_v15 = vld [vmem:[#allocation44_spill] sm:$0xff] }
 0xe30   : > { %2657 = vmatpush.bf16.xpose.msra.mxu1 %v6470_v26  ;;  %v6510_v26 = vld [vmem:[#allocation51_spill] sm:$0xff] }
 0xe33   : > { %v2476_v0 = vpop.f32.mrf.mxu0 }
 0xe34   : > { %v2489_v20 = vpop.f32.mrf.mxu1 }
 0xe35   : > { %2679 = vmatpush.bf16.xpose.msrb.mxu3 %v5481_v46 }
 0xe3b   : > { %v2478_v48 = vpop.f32.mrf.mxu0 }
 0xe3c   : > { %v2491_v7 = vpop.f32.mrf.mxu1 }
 0xe3d   : > { %2680 = vmatpush.bf16.xpose.msrb.mxu3 %v6503_v27 }
 0xe3f   : > { %v2463_v57 = vpop.f32.mrf.mxu3 }
 0xe40   : > { %v2477_v8 = vadd.f32 %v2476_v0, %v2463_v57 }
 0xe42   : > { %v2490_v13 = vadd.f32 %v2489_v20, %v2477_v8 }
 0xe44   : > { %v2528_v9 = vpop.f32.mrf.mxu1 }
 0xe45   : > { %2681 = vmatpush.bf16.xpose.msrb.mxu3 %v6504_v45 }
 0xe47   : > { %v2465_v25 = vpop.f32.mrf.mxu3 }
 0xe48   : > { %v6516_v25 = vld [vmem:[#allocation16_spill] sm:$0xff] }
 0xe49   : > { %v2515_v35 = vpop.f32.mrf.mxu0 }
 0xe4a   : > { %v2541_v59 = vpop.f32.mrf.mxu2 }
 0xe4c   : > { %v2530_v23 = vpop.f32.mrf.mxu1 }
 0xe4d   : > { %2682 = vmatpush.bf16.xpose.msrb.mxu3 %v6505_v29 }
 0xe4f   : > { %v2502_v46 = vpop.f32.mrf.mxu3 }
 0xe50   : > { %v2503_v58 = vadd.f32 %v2502_v46, %v2490_v13  ;;  %v6517_v46 = vld [vmem:[#allocation35_spill] sm:$0xff] }
 0xe51   : > { %v2517_v53 = vpop.f32.mrf.mxu0 }
 0xe52   : > { %v2543_v3 = vpop.f32.mrf.mxu2  ;;  %v2516_v51 = vadd.f32 %v2515_v35, %v2503_v58  ;;  %v6518_v58 = vld [vmem:[#allocation33_spill] sm:$0xff] }
 0xe54   : > { %v2529_v56 = vadd.f32 %v2528_v9, %v2516_v51 }
 0xe55   : > { %2683 = vmatpush.bf16.xpose.msrb.mxu3 %v6506_v15 }
 0xe56   : > { %v2542_v50 = vadd.f32 %v2541_v59, %v2529_v56 }
 0xe57   : > { %v2504_v14 = vpop.f32.mrf.mxu3 }
 0xe5f   : > { %v2554_v2 = vpop.f32.mrf.mxu3 }
 0xe60   : > { %v2555_v33 = vadd.f32 %v2554_v2, %v2542_v50  ;;  %v6519_v50 = vld [vmem:[#allocation12_spill] sm:$0xff] }
 0xe62   : > { %v2558_v54 = vadd.f32 %v2555_v33, %v6507_v24 }
 0xe64   : > { %v2559_v34 = vmax.f32 %v2558_v54, 0.0  ;;  %vm2608_vm10 = vcmp.gt.f32.partialorder %v2558_v54, 0.0  ;;  %v6520_v54 = vld [vmem:[#allocation15_spill] sm:$0xff] }
 0xe65   : > { %vm3328_vm11 = vmpackc.low %vm2608_vm10, %vm2608_vm10 }
 0xe66   : > { %v2560_v16 = vpack.c.bf16 %v2559_v34, %v2559_v34 }
 0xe67   : > { %v2556_v55 = vpop.f32.mrf.mxu3 }
 0xe68   : > { %2569 = vmatmul.bf16.vlgmr.msra.gmra.mxu0 %v2560_v16 }
 0xe69   : > { %2689 = vmatpush.bf16.xpose.msra.mxu0 %v6508_v62 }
 0xe71   : > { %2690 = vmatpush.bf16.xpose.msra.mxu0 %v6509_v52 }
 0xe79   : > { %2691 = vmatpush.bf16.xpose.msra.mxu0 %v6510_v26  ;;  %v6521_v26 = vld [vmem:[#allocation38_spill] sm:$0xff] }
 0xe81   : > { %2692 = vmatpush.bf16.xpose.msra.mxu0 %v6511_v49 }
 0xe89   : > { %2693 = vmatpush.bf16.xpose.msra.mxu0 %v6512_v41  ;;  %v3666_v41 = vld [vmem:[%s5889_s0 + $0x10] sm:$0xff] }
 0xe91   : > { %2694 = vmatpush.bf16.xpose.msra.mxu0 %v6513_v44 }
 0xe99   : > { %2695 = vmatpush.bf16.xpose.msra.mxu0 %v6514_v61  ;;  %v3667_v61 = vld [vmem:[%s5889_s0 + $0x18] sm:$0xff] }
 0xea1   : > { %2696 = vmatpush.bf16.xpose.msra.mxu0 %v6515_v39  ;;  %v6522_v39 = vld [vmem:[#allocation26_spill] sm:$0xff] }
 0xee5   : > { %v2570_v42 = vpop.f32.mrf.mxu0 }
 0xee6   : > { %v2571_v18 = vadd.f32 %v3665_v30, %v2570_v42  ;;  %v6523_v30 = vld [vmem:[#allocation17_spill] sm:$0xff] }
 0xee8   : > { %v2574_v10 = vmul.f32 %v2571_v18, %v2571_v18 }
 0xeea   : > { %2575 = vadd.xlane.f32.xlu0 %v2574_v10  ;;  %v6524_v10 = vld [vmem:[#allocation20_spill] sm:$0xff] }
 0xeed   : > { %v2572_v4 = vpop.f32.mrf.mxu0 }
 0xf5d   : > { %v2576_v36 = vpop.xlane.xlu0 %2575 }
 0xf5e   : > { %v2577_v0 = vmax.f32 %v2576_v36, 1e-16  ;;  %v6525_v36 = vld [vmem:[#allocation19_spill] sm:$0xff] }
 0xf60   : > { %3518 = vrsqrt.f32 %v2577_v0  ;;  %vm2584_vm8 = vweird.f32 %v2577_v0 }
 0xf66   : > { %v3519_v27 = vpop.eup %3518 }
 0xf67   : > { %v2579_v20 = vmul.f32 %v3519_v27, %v2577_v0  ;;  %vm2585_vm7 = vweird.f32 %v3519_v27 }
 0xf68   : > { %vm2586_vm9 = vmor %vm2584_vm8, %vm2585_vm7 }
 0xf69   : > { %v2580_v48 = vmul.f32 %v3519_v27, %v2579_v20 }
 0xf6b   : > { %v2581_v45 = vmul.f32 0.5, %v2580_v48  ;;  %v6526_v48 = vld [vmem:[#allocation23_spill] sm:$0xff] }
 0xf6d   : > { %v2582_v7 = vsub.f32 1.5, %v2581_v45 }
 0xf6f   : > { %v2583_v57 = vmul.f32 %v3519_v27, %v2582_v7  ;;  %v3668_v7 = vld [vmem:[%s5889_s0] sm:$0xff] }
 0xf71   : > { %v2587_v29 = vsel %vm2586_vm9, %v3519_v27, %v2583_v57 }
 0xf72   : > { %v2588_v9 = vmul.f32 %v2587_v29, %v2571_v18  ;;  %v3669_v29 = vld [vmem:[%s5889_s0 + $0x8] sm:$0xff] }
 0xf74   : > { %v2589_v35 = vmul.f32 %v2588_v9, %v6516_v25 }
 0xf76   : > { %2590 = vadd.xlane.f32.xlu1 %v2589_v35 }
 0xfe9   : > { %v2591_v59 = vpop.xlane.xlu1 %2590 }
 0xfea   : > { %v2592_v15 = vmul.f32 %v2591_v59, %v2588_v9 }
 0xfec   : > { %v2593_v8 = vsub.f32 %v2592_v15, %v6516_v25 }
 0xfee   : > { %v2594_v23 = vpack.c.bf16 %v2593_v8, %v2593_v8 }
 0xff0   : > { %2603 = vmatmul.bf16.vlgmr.msrb.gmra.mxu1 %v2594_v23 }
 0xff1   : > { %2702 = vmatpush.bf16.xpose.msrb.mxu1 %v6517_v46 }
 0xff9   : > { %2703 = vmatpush.bf16.xpose.msrb.mxu1 %v5304_v38 }
0x1001   : > { %2704 = vmatpush.bf16.xpose.msrb.mxu1 %v5316_v5 }
0x1009   : > { %2705 = vmatpush.bf16.xpose.msrb.mxu1 %v5329_v60 }
0x1011   : > { %2706 = vmatpush.bf16.xpose.msrb.mxu1 %v5345_v21 }
0x1019   : > { %2707 = vmatpush.bf16.xpose.msrb.mxu1 %v5358_v32 }
0x1021   : > { %2708 = vmatpush.bf16.xpose.msrb.mxu1 %v5366_v6 }
0x1029   : > { %2709 = vmatpush.bf16.xpose.msrb.mxu1 %v5374_v63 }
0x106d   : > { %v2604_v13 = vpop.f32.mrf.mxu1 }
0x106e   : > { %v3329_v53 = vpack.c.bf16 %v2604_v13, %v2604_v13 }
0x1070   : > { %3330 = vmatmul.msk.bf16.vlgmr.msrb.gmra.mxu2 %vm3328_vm11, %v3329_v53  ;;  %3333 = vmatmul.msk.bf16.vlgmr.msra.gmra.mxu3 %vm3328_vm11, %v3329_v53 }
0x1071   : > { %3336 = vmatmul.msk.bf16.vlgmr.msrb.gmra.mxu0 %vm3328_vm11, %v3329_v53  ;;  %3339 = vmatmul.msk.bf16.vlgmr.msra.gmra.mxu1 %vm3328_vm11, %v3329_v53 }
0x1075   : > { %v2606_v38 = vpop.f32.mrf.mxu1 }
0x1080   : > { %3342 = vmatmul.msk.bf16.vlgmr.msra.gmra.mxu2 %vm3328_vm11, %v3329_v53  ;;  %3345 = vmatmul.msk.bf16.vlgmr.msrb.gmra.mxu3 %vm3328_vm11, %v3329_v53 }
0x1081   : > { %3348 = vmatmul.msk.bf16.vlgmr.msra.gmra.mxu0 %vm3328_vm11, %v3329_v53  ;;  %3351 = vmatmul.msk.bf16.vlgmr.msrb.gmra.mxu1 %vm3328_vm11, %v3329_v53 }
0x10ee   : > { %v2646_v5 = vpop.f32.mrf.mxu0  ;;  %v2659_v60 = vpop.f32.mrf.mxu1 }
0x10ef   : > { %vm2717_vm12 = vcmp.gt.f32.partialorder %v2646_v5, 0.0  ;;  %vm2725_vm13 = vcmp.lt.f32.partialorder %v2646_v5, 0.0  ;;  %vm2718_vm14 = vcmp.gt.f32.partialorder %v2659_v60, 0.0  ;;  %vm2726_vm15 = vcmp.lt.f32.partialorder %v2659_v60, 0.0  ;;  %v6527_v5 = vld [vmem:[#allocation25_spill] sm:$0xff] }
0x10f0   : > { %v2733_v21 = vsel %vm2725_vm13, %v6473_v17, 0.0  ;;  %v2734_v32 = vsel %vm2726_vm15, %v6473_v17, 0.0 }
0x10f1   : > { %v2741_v6 = vsel %vm2717_vm12, %v6474_v40, %v2733_v21  ;;  %v2742_v63 = vsel %vm2718_vm14, %v6474_v40, %v2734_v32 }
0x10f2   : > { %v2749_v3 = vadd.f32 %v2741_v6, %v6518_v58  ;;  %v2750_v51 = vadd.f32 %v2742_v63, %v5676_v19  ;;  %v6528_v6 = vld [vmem:[#allocation36_spill] sm:$0xff] }
0x10f3   : > { %v2620_v14 = vpop.f32.mrf.mxu2  ;;  %v2633_v56 = vpop.f32.mrf.mxu3 }
0x10f4   : > { %v2757_v2 = vmax.f32 %v6519_v50, %v2749_v3  ;;  %v2758_v33 = vmax.f32 %v6492_v43, %v2750_v51  ;;  %vm2715_vm0 = vcmp.gt.f32.partialorder %v2620_v14, 0.0  ;;  %vm2723_vm1 = vcmp.lt.f32.partialorder %v2620_v14, 0.0 }
0x10f5   : > { %v2731_v24 = vsel %vm2723_vm1, %v6473_v17, 0.0  ;;  %vm2716_vm2 = vcmp.gt.f32.partialorder %v2633_v56, 0.0  ;;  %vm2724_vm3 = vcmp.lt.f32.partialorder %v2633_v56, 0.0  ;;  %v3670_v56 = vld [vmem:[%s5889_s0 + $0x30] sm:$0xff] }
0x10f6   : > { %v2765_v34 = vmin.f32 %v6520_v54, %v2757_v2  ;;  %v2766_v16 = vmin.f32 %v6497_v37, %v2758_v33  ;;  %v2739_v55 = vsel %vm2715_vm0, %v6474_v40, %v2731_v24  ;;  %v2732_v19 = vsel %vm2724_vm3, %v6473_v17, 0.0  ;;  %v2648_v62 = vpop.f32.mrf.mxu0  ;;  %v2661_v52 = vpop.f32.mrf.mxu1  ;;  %v6529_v33 = vld [vmem:[#allocation66_spill] sm:$0xff] }
0x10f7   : > { %v2747_v49 = vadd.f32 %v2739_v55, %v6521_v26  ;;  %v2740_v43 = vsel %vm2716_vm2, %v6474_v40, %v2732_v19  ;;  %v6531_v55 = vld [vmem:[#allocation39_spill] sm:$0xff]  ;;  %v3673_v52 = vld [vmem:[%s5889_s0 + $0x28] sm:$0xff] }
0x10f8   : > { %v2773_v44 = vadd.f32 %v3666_v41, %v2765_v34  ;;  %v2774_v37 = vadd.f32 %v3667_v61, %v2766_v16  ;;  %v2748_v42 = vadd.f32 %v2740_v43, %v6522_v39 }
0x10f9   : > { %v2755_v18 = vmax.f32 %v6523_v30, %v2747_v49 }
0x10fa   : > { %2781 = vst [vmem:[%s5799_s16 + $0x10] sm:$0xff] %v2773_v44  ;;  %v2756_v4 = vmax.f32 %v6524_v10, %v2748_v42 }
0x10fb   : > { %2782 = vst [vmem:[%s5799_s16 + $0x18] sm:$0xff] %v2774_v37  ;;  %v2763_v0 = vmin.f32 %v6525_v36, %v2755_v18  ;;  %v2622_v27 = vpop.f32.mrf.mxu2  ;;  %v2635_v20 = vpop.f32.mrf.mxu3 }
0x10fc   : > { %v2764_v45 = vmin.f32 %v6526_v48, %v2756_v4 }
0x10fd   : > { %v2771_v57 = vadd.f32 %v3668_v7, %v2763_v0 }
0x10fe   : > { %v2772_v9 = vadd.f32 %v3669_v29, %v2764_v45  ;;  %v2698_v25 = vpop.f32.mrf.mxu0  ;;  %v2711_v35 = vpop.f32.mrf.mxu1 }
0x10ff   : > { %2779 = vst [vmem:[%s5799_s16] sm:$0xff] %v2771_v57  ;;  %vm2721_vm4 = vcmp.gt.f32.partialorder %v2698_v25, 0.0  ;;  %vm2729_vm5 = vcmp.lt.f32.partialorder %v2698_v25, 0.0  ;;  %vm2722_vm6 = vcmp.gt.f32.partialorder %v2711_v35, 0.0  ;;  %vm2730_vm7 = vcmp.lt.f32.partialorder %v2711_v35, 0.0 }
0x1100   : > { %2780 = vst [vmem:[%s5799_s16 + $0x8] sm:$0xff] %v2772_v9  ;;  %v2737_v59 = vsel %vm2729_vm5, %v6473_v17, 0.0  ;;  %v2738_v15 = vsel %vm2730_vm7, %v6473_v17, 0.0 }
0x1101   : > { %v2745_v8 = vsel %vm2721_vm4, %v6474_v40, %v2737_v59  ;;  %v2746_v23 = vsel %vm2722_vm6, %v6474_v40, %v2738_v15 }
0x1102   : > { %v2753_v46 = vadd.f32 %v2745_v8, %v5663_v47  ;;  %v2754_v13 = vadd.f32 %v2746_v23, %v5709_v28 }
0x1103   : > { %v2672_v53 = vpop.f32.mrf.mxu2  ;;  %v2685_v38 = vpop.f32.mrf.mxu3 }
0x1104   : > { %v2761_v60 = vmax.f32 %v6527_v5, %v2753_v46  ;;  %v2762_v21 = vmax.f32 %v6501_v11, %v2754_v13  ;;  %vm2719_vm8 = vcmp.gt.f32.partialorder %v2672_v53, 0.0  ;;  %vm2727_vm9 = vcmp.lt.f32.partialorder %v2672_v53, 0.0 }
0x1105   : > { %v2735_v32 = vsel %vm2727_vm9, %v6473_v17, 0.0  ;;  %vm2720_vm10 = vcmp.gt.f32.partialorder %v2685_v38, 0.0  ;;  %vm2728_vm11 = vcmp.lt.f32.partialorder %v2685_v38, 0.0 }
0x1106   : > { %v2769_v63 = vmin.f32 %v6528_v6, %v2761_v60  ;;  %v2770_v47 = vmin.f32 %v6502_v31, %v2762_v21  ;;  %v2743_v28 = vsel %vm2719_vm8, %v6474_v40, %v2735_v32  ;;  %v2736_v58 = vsel %vm2728_vm11, %v6473_v17, 0.0  ;;  %v2700_v3 = vpop.f32.mrf.mxu0  ;;  %v2713_v51 = vpop.f32.mrf.mxu1  ;;  %v3671_v31 = vld [vmem:[%s5889_s0 + $0x38] sm:$0xff] }
0x1107   : > { %v2751_v11 = vadd.f32 %v2743_v28, %v5680_v1  ;;  %v2744_v14 = vsel %vm2720_vm10, %v6474_v40, %v2736_v58  ;;  %v6530_v40 = vld [vmem:[#allocation37_spill] sm:$0xff] }
0x1108   : > { %v2777_v50 = vadd.f32 %v3670_v56, %v2769_v63  ;;  %v2778_v2 = vadd.f32 %v3671_v31, %v2770_v47  ;;  %v2752_v24 = vadd.f32 %v2744_v14, %v6529_v33 }
0x1109   : > { %v2759_v17 = vmax.f32 %v6498_v12, %v2751_v11  ;;  %v3672_v12 = vld [vmem:[%s5889_s0 + $0x20] sm:$0xff] }
0x110a   : > { %2785 = vst [vmem:[%s5799_s16 + $0x30] sm:$0xff] %v2777_v50  ;;  %v2760_v1 = vmax.f32 %v6530_v40, %v2752_v24 }
0x110b   : > { %2786 = vst [vmem:[%s5799_s16 + $0x38] sm:$0xff] %v2778_v2  ;;  %v2767_v54 = vmin.f32 %v6499_v22, %v2759_v17  ;;  %v2674_v34 = vpop.f32.mrf.mxu2  ;;  %v2687_v16 = vpop.f32.mrf.mxu3 }
0x110c   : > { %v2768_v19 = vmin.f32 %v6531_v55, %v2760_v1 }
0x110d   : > { %v2775_v62 = vadd.f32 %v3672_v12, %v2767_v54 }
0x110e   : > { %v2776_v26 = vadd.f32 %v3673_v52, %v2768_v19 }
0x110f   : > { %2783 = vst [vmem:[%s5799_s16 + $0x20] sm:$0xff] %v2775_v62 }
0x1110   : > { %2784 = vst [vmem:[%s5799_s16 + $0x28] sm:$0xff] %v2776_v26 }
0x1111   : > { %3761 = shalt.err (!%p3758_p2)
}
0x1112   : > { %3437 = dma.vmem_to_hbm [thread:$0]  (%p3936_p4), %s2804_s11, 1024, %s2806_s15, %s2788_s19  }
0x1113 PF: > { %s2817_s18 = sand.u32 1, %s3800_s24   ;;  %p3448_p5 = pnand %p2935_p6, %p3944_p7 }
0x1114   : > { %s2818_s16 = scalar_lea.sflag [#allocation4], %s2817_s18 }
0x1115   : > { %p3449_p8 = pneg %p3448_p5 }
0x1117   : > { %3795 = dma.done.wait (%p3449_p8), %s2818_s16, 1024  }
0x1118   : > { %3797 = vsyncadd (%p3449_p8), %s2818_s16, 4294966272  ;;  %s24_s29 = sadd.s32 1, %s3820_s29   ;;  %s6532_s23 = sld [smem:[#allocation11_spill]] }
0x1119   : > { %p21_p1 = scmp.ge.s32.totalorder %s24_s29, 4   ;;  %s6533_s24 = smov %s3804_s25 }
0x111a   : > { %s6534_s25 = smov %s3808_s26  ;;  %s6535_s26 = smov %s3942_s9 }
0x111b   : > { %s6536_s27 = smov %s3816_s28  ;;  %23 = sbr.rel (!%p21_p1) target bundleno = 9 (0x9), region = 103 }
0x111e   : > { %s6537_s28 = smov %s6532_s23 }
0x1120   :  { %2824 = vsyncpa [#allocation3], 1 }
0x1121   :  { %2826 = vsyncpa [#allocation3 + $0x1], 1 }
0x1122   :  { %2827 = vsyncpa [#allocation6], 1 }
0x1123   :  { %2828 = vsyncpa [#allocation4], 1 }
0x1124   :  { %2830 = vsyncpa [#allocation4 + $0x1], 1 }

</bundles_post_ra>
